<compile_context>
chip_gen: v7x
topology: tpu7x:2x2x1
jax: 0.10.0
libtpu: 0.0.40
codegen_flags: <defaults>
</compile_context>

<pallas_src>
import functools

import jax
import jax.numpy as jnp
from jax import lax
from jax.experimental import pallas as pl
from jax.experimental.pallas import tpu as pltpu

LANE = 128  # TPU lane width — feature dims padded to a multiple of this


def _round_up(v, m):
    return ((v + m - 1) // m) * m


def _pad2d(a, rows, cols):
    out = jnp.zeros((rows, cols), a.dtype)
    return out.at[: a.shape[0], : a.shape[1]].set(a)


def _vmem_limit_bytes():
    """Generation-aware VMEM budget: ~3/4 of physical, clamped to [48, 100] MiB."""
    try:
        cap = int(pltpu.get_tpu_info().vmem_capacity_bytes)
    except Exception:
        cap = 64 * 1024 * 1024  # conservative (v7x-sized) fallback
    return max(48 * 1024 * 1024, min(cap * 3 // 4, 100 * 1024 * 1024))


# --------------------------- Pallas kernels ---------------------------------

def stage1_kernel(x_ref, dinv_ref, wfc_ref, bfc_ref, w1_ref, m1_ref):
    """Per-node messages for conv1: m1 = dinv * (relu(x @ Wfc + bfc) @ W1)."""
    h0 = jnp.dot(x_ref[...], wfc_ref[...], preferred_element_type=jnp.float32)
    h0 = jnp.maximum(h0 + bfc_ref[...], 0.0)
    xw1 = jnp.dot(h0.astype(jnp.bfloat16), w1_ref[...],
                  preferred_element_type=jnp.float32)
    m1_ref[...] = (dinv_ref[...] * xw1).astype(m1_ref.dtype)


def stage2_kernel(a_ref, m1_ref, dinv_ref, b1_ref, w2_ref, m2_ref, acc_ref):
    """K-tiled aggregation for conv1, then per-node conv2 messages.

    acc += (A+I)[i, k] @ m1[k]         (int8 A cast to bf16 in-kernel, fp32 acc)
    at last k: h1 = dinv*acc + b1 ; h2 = relu(h1) ; m2 = dinv*(h2 @ W2)
    """
    k = pl.program_id(1)

    @pl.when(k == 0)
    def _():
        acc_ref[...] = jnp.zeros_like(acc_ref)

    a_blk = a_ref[...].astype(jnp.bfloat16)          # int8 stored, bf16 compute
    acc_ref[...] += jnp.dot(a_blk, m1_ref[...],
                            preferred_element_type=jnp.float32)

    @pl.when(k == pl.num_programs(1) - 1)
    def _():
        h1 = dinv_ref[...] * acc_ref[...] + b1_ref[...]
        h2 = jnp.maximum(h1, 0.0)
        xw2 = jnp.dot(h2.astype(jnp.bfloat16), w2_ref[...],
                      preferred_element_type=jnp.float32)
        m2_ref[...] = (dinv_ref[...] * xw2).astype(m2_ref.dtype)


def stage3_kernel(a_ref, m2_ref, dinv_ref, b2_ref, out_ref, acc_ref):
    """K-tiled aggregation for conv2: out = dinv*((A+I)@m2) + b2."""
    k = pl.program_id(1)

    @pl.when(k == 0)
    def _():
        acc_ref[...] = jnp.zeros_like(acc_ref)

    a_blk = a_ref[...].astype(jnp.bfloat16)
    acc_ref[...] += jnp.dot(a_blk, m2_ref[...],
                            preferred_element_type=jnp.float32)

    @pl.when(k == pl.num_programs(1) - 1)
    def _():
        out_ref[...] = dinv_ref[...] * acc_ref[...] + b2_ref[...]


# ------------------------------- wrapper -------------------------------------

@functools.partial(
    jax.jit, static_argnames=("num_nodes", "tile_m", "tile_k", "tile_m1"))
def gcn_forward(x, edge_index, params, *, num_nodes,
                tile_m=256, tile_k=512, tile_m1=512):
    wfc, bfc, w1, b1, w2, b2 = params
    n, in_dim = x.shape
    assert n == num_nodes
    fc_dim = wfc.shape[0]
    latent_dim = w1.shape[0]
    out_dim = w2.shape[0]

    # Padded sizes: lane-dense feature dims, node rows padded to tile multiples.
    in_p = _round_up(in_dim, LANE)
    fc_p = _round_up(fc_dim, LANE)
    lat_p = _round_up(latent_dim, LANE)
    out_p = _round_up(out_dim, LANE)

    tm, tk, tm1 = tile_m, tile_k, tile_m1
    gran = max(tm, tk, tm1)          # tiles are powers of two -> lcm == max
    n_pad = _round_up(n, gran)
    rows2 = n_pad // tm
    nk = n_pad // tk
    rows1 = n_pad // tm1

    # --- glue (plain JAX): (A+I) built directly in int8 + the D^{-1/2} vector ---
    src, dst = edge_index[0], edge_index[1]
    a = jnp.zeros((n_pad, n_pad), jnp.int8)
    a = a.at[dst, src].add(1)                      # message flows src -> dst
    diag = jnp.arange(n)
    a = a.at[diag, diag].add(1)                    # self-loops on real nodes only
    deg = jnp.sum(a, axis=1, dtype=jnp.float32)
    dinv = jnp.where(deg > 0, lax.rsqrt(deg), 0.0)  # 0 for padded rows
    dinv_col = dinv.reshape(n_pad, 1)               # (N_pad, 1) fp32

    # --- pad operands; weights pre-transposed to [in, out], bf16 inputs ---
    x_p = _pad2d(x, n_pad, in_p).astype(jnp.bfloat16)
    wfc_p = _pad2d(wfc.T, in_p, fc_p).astype(jnp.bfloat16)
    w1_p = _pad2d(w1.T, fc_p, lat_p).astype(jnp.bfloat16)
    w2_p = _pad2d(w2.T, lat_p, out_p).astype(jnp.bfloat16)
    bfc_p = _pad2d(bfc.reshape(1, fc_dim), 1, fc_p)      # fp32
    b1_p = _pad2d(b1.reshape(1, latent_dim), 1, lat_p)   # fp32
    b2_p = _pad2d(b2.reshape(1, out_dim), 1, out_p)      # fp32

    vmem_limit = _vmem_limit_bytes()
    cp1 = pltpu.CompilerParams(
        dimension_semantics=("parallel",), vmem_limit_bytes=vmem_limit)
    cp23 = pltpu.CompilerParams(
        dimension_semantics=("parallel", "arbitrary"),
        vmem_limit_bytes=vmem_limit)

    # Stage 1: per-node fc + relu + W1, dinv-scaled messages (no A, big row tile).
    m1 = pl.pallas_call(
        stage1_kernel,
        out_shape=jax.ShapeDtypeStruct((n_pad, lat_p), jnp.bfloat16),
        grid=(rows1,),
        in_specs=[
            pl.BlockSpec((tm1, in_p), lambda i: (i, 0)),     # x row tile (streamed)
            pl.BlockSpec((tm1, 1), lambda i: (i, 0)),        # dinv row tile
            pl.BlockSpec((in_p, fc_p), lambda i: (0, 0)),    # Wfc (resident)
            pl.BlockSpec((1, fc_p), lambda i: (0, 0)),       # bfc (resident)
            pl.BlockSpec((fc_p, lat_p), lambda i: (0, 0)),   # W1  (resident)
        ],
        out_specs=pl.BlockSpec((tm1, lat_p), lambda i: (i, 0)),
        compiler_params=cp1,
    )(x_p, dinv_col, wfc_p, bfc_p, w1_p)

    # Stage 2: K-tiled aggregate of conv1, then bias/relu/W2 messages for conv2.
    m2 = pl.pallas_call(
        stage2_kernel,
        out_shape=jax.ShapeDtypeStruct((n_pad, out_p), jnp.bfloat16),
        grid=(rows2, nk),
        in_specs=[
            pl.BlockSpec((tm, tk), lambda i, k: (i, k)),        # int8 A block (streamed)
            pl.BlockSpec((tk, lat_p), lambda i, k: (k, 0)),     # m1 K block (streamed)
            pl.BlockSpec((tm, 1), lambda i, k: (i, 0)),         # dinv row tile
            pl.BlockSpec((1, lat_p), lambda i, k: (0, 0)),      # b1 (resident)
            pl.BlockSpec((lat_p, out_p), lambda i, k: (0, 0)),  # W2 (resident)
        ],
        out_specs=pl.BlockSpec((tm, out_p), lambda i, k: (i, 0)),
        scratch_shapes=[pltpu.VMEM((tm, lat_p), jnp.float32)],
        compiler_params=cp23,
    )(a, m1, dinv_col, b1_p, w2_p)

    # Stage 3: K-tiled aggregate of conv2 + bias.
    out_full = pl.pallas_call(
        stage3_kernel,
        out_shape=jax.ShapeDtypeStruct((n_pad, out_p), jnp.float32),
        grid=(rows2, nk),
        in_specs=[
            pl.BlockSpec((tm, tk), lambda i, k: (i, k)),        # int8 A block (streamed)
            pl.BlockSpec((tk, out_p), lambda i, k: (k, 0)),     # m2 K block (streamed)
            pl.BlockSpec((tm, 1), lambda i, k: (i, 0)),         # dinv row tile
            pl.BlockSpec((1, out_p), lambda i, k: (0, 0)),      # b2 (resident)
        ],
        out_specs=pl.BlockSpec((tm, out_p), lambda i, k: (i, 0)),
        scratch_shapes=[pltpu.VMEM((tm, out_p), jnp.float32)],
        compiler_params=cp23,
    )(a, m2, dinv_col, b2_p)

    return out_full[:n, :out_dim]


# ------------------------------ reference ------------------------------------

def gcn_reference(x, edge_index, params, num_nodes):
    """Pure-JAX fp32 reference of the same forward, for correctness checking."""
    wfc, bfc, w1, b1, w2, b2 = params
    src, dst = edge_index[0], edge_index[1]
    a = jnp.zeros((num_nodes, num_nodes), jnp.float32)
    a = a.at[dst, src].add(1.0)
    a = a + jnp.eye(num_nodes, dtype=jnp.float32)
    deg = jnp.sum(a, axis=1)
    dinv = jnp.where(deg > 0, 1.0 / jnp.sqrt(deg), 0.0)
    a_norm = a * dinv[:, None] * dinv[None, :]
    h0 = jnp.maximum(x @ wfc.T + bfc, 0.0)
    h1 = a_norm @ (h0 @ w1.T) + b1
    h2 = jnp.maximum(h1, 0.0)
    return a_norm @ (h2 @ w2.T) + b2


if __name__ == "__main__":
    # Small deterministic shapes consistent with GCN(input_dim, fc_dim, latent_dim, out_dim).
    # 600 nodes (non-tile-multiple) exercises padding plus both grid axes
    # (rows2 = 4, nk = 2 with the default tiles).
    num_nodes = 600
    input_dim = 16
    fc_dim = 32
    latent_dim = 32
    out_dim = 8

    key = jax.random.PRNGKey(0)
    kx, kfc, kbfc, kw1, kb1, kw2, kb2 = jax.random.split(key, 7)

    # Node features
    x = jax.random.normal(kx, (num_nodes, input_dim), jnp.float32)

    # Deterministic graph: bidirectional ring (undirected), [2, E]
    idx = jnp.arange(num_nodes, dtype=jnp.int32)
    src = jnp.concatenate([idx, (idx + 1) % num_nodes])
    dst = jnp.concatenate([(idx + 1) % num_nodes, idx])
    edge_index = jnp.stack([src, dst], axis=0)  # [2, 2*num_nodes]

    # Deterministic parameters (shapes from the module's __init__)
    wfc = 0.1 * jax.random.normal(kfc, (fc_dim, input_dim), jnp.float32)
    bfc = 0.1 * jax.random.normal(kbfc, (fc_dim,), jnp.float32)
    w1 = 0.1 * jax.random.normal(kw1, (latent_dim, fc_dim), jnp.float32)
    b1 = 0.1 * jax.random.normal(kb1, (latent_dim,), jnp.float32)
    w2 = 0.1 * jax.random.normal(kw2, (out_dim, latent_dim), jnp.float32)
    b2 = 0.1 * jax.random.normal(kb2, (out_dim,), jnp.float32)
    params = (wfc, bfc, w1, b1, w2, b2)

    out = gcn_forward(x, edge_index, params, num_nodes=num_nodes)
    out = jax.block_until_ready(out)

    ref = gcn_reference(x, edge_index, params, num_nodes)
    assert out.shape == (num_nodes, out_dim)
    # bf16 inputs/messages with fp32 accumulation -> looser tolerance vs fp32 reference
    assert jnp.allclose(out, ref, atol=3e-2, rtol=3e-2), "Pallas output mismatch"

    print("KERNEL_OK")
</pallas_src>

<mosaic_0001>
module attributes {stable_mosaic.version = 11 : i64} {
  func.func @stage1_kernel(%arg0: i32, %arg1: memref<512x128xbf16, #tpu.memory_space<vmem>>, %arg2: memref<512x1xf32, #tpu.memory_space<vmem>>, %arg3: memref<128x128xbf16, #tpu.memory_space<vmem>>, %arg4: memref<1x128xf32, #tpu.memory_space<vmem>>, %arg5: memref<128x128xbf16, #tpu.memory_space<vmem>>, %arg6: memref<512x128xbf16, #tpu.memory_space<vmem>>) attributes {dimension_semantics = [#tpu.dimension_semantics<parallel>], iteration_bounds = array<i64: 2>, scalar_prefetch = 0 : i64, scratch_operands = 0 : i64, tpu.core_type = #tpu.core_type<tc>, window_params = [{transform_indices = @transform_0, window_bounds = array<i64: 512, 128>}, {transform_indices = @transform_1, window_bounds = array<i64: 512, 1>}, {pipeline_mode = #tpu.pipeline_mode<synchronous>, transform_indices = @transform_2, window_bounds = array<i64: 128, 128>}, {pipeline_mode = #tpu.pipeline_mode<synchronous>, transform_indices = @transform_3, window_bounds = array<i64: 1, 128>}, {pipeline_mode = #tpu.pipeline_mode<synchronous>, transform_indices = @transform_4, window_bounds = array<i64: 128, 128>}, {transform_indices = @transform_5, window_bounds = array<i64: 512, 128>}]} {
    %c0 = arith.constant 0 : index
    %c0_0 = arith.constant 0 : index
    %0 = vector.load %arg1[%c0, %c0_0] : memref<512x128xbf16, #tpu.memory_space<vmem>>, vector<512x128xbf16>
    %c0_1 = arith.constant 0 : index
    %c0_2 = arith.constant 0 : index
    %1 = vector.load %arg3[%c0_1, %c0_2] : memref<128x128xbf16, #tpu.memory_space<vmem>>, vector<128x128xbf16>
    %cst = arith.constant dense<0.000000e+00> : vector<512x128xf32>
    %2 = tpu.matmul %0, %1, %cst {dimension_numbers = #tpu.dot_dimension_numbers<[1], [0], [0], [1], [0, 0, 1, 1], [], []>} : vector<512x128xbf16>, vector<128x128xbf16>, vector<512x128xf32> -> vector<512x128xf32>
    %c0_3 = arith.constant 0 : index
    %c0_4 = arith.constant 0 : index
    %3 = vector.load %arg4[%c0_3, %c0_4] : memref<1x128xf32, #tpu.memory_space<vmem>>, vector<1x128xf32>
    %4 = vector.broadcast %3 : vector<1x128xf32> to vector<512x128xf32>
    %5 = arith.addf %2, %4 : vector<512x128xf32>
    %cst_5 = arith.constant 0.000000e+00 : f32
    %6 = vector.broadcast %cst_5 : f32 to vector<512x128xf32>
    %7 = arith.maximumf %5, %6 : vector<512x128xf32>
    %8 = arith.truncf %7 : vector<512x128xf32> to vector<512x128xbf16>
    %c0_6 = arith.constant 0 : index
    %c0_7 = arith.constant 0 : index
    %9 = vector.load %arg5[%c0_6, %c0_7] : memref<128x128xbf16, #tpu.memory_space<vmem>>, vector<128x128xbf16>
    %cst_8 = arith.constant dense<0.000000e+00> : vector<512x128xf32>
    %10 = tpu.matmul %8, %9, %cst_8 {dimension_numbers = #tpu.dot_dimension_numbers<[1], [0], [0], [1], [0, 0, 1, 1], [], []>} : vector<512x128xbf16>, vector<128x128xbf16>, vector<512x128xf32> -> vector<512x128xf32>
    %c0_9 = arith.constant 0 : index
    %c0_10 = arith.constant 0 : index
    %11 = vector.load %arg2[%c0_9, %c0_10] : memref<512x1xf32, #tpu.memory_space<vmem>>, vector<512x1xf32>
    %12 = vector.broadcast %11 : vector<512x1xf32> to vector<512x128xf32>
    %13 = arith.mulf %12, %10 : vector<512x128xf32>
    %14 = arith.truncf %13 : vector<512x128xf32> to vector<512x128xbf16>
    %c0_11 = arith.constant 0 : index
    %c0_12 = arith.constant 0 : index
    %15 = vector.load %arg6[%c0_11, %c0_12] : memref<512x128xbf16, #tpu.memory_space<vmem>>, vector<512x128xbf16>
    tpu.vector_store %arg6[%c0_11, %c0_12], %14 {strides = array<i32>} : memref<512x128xbf16, #tpu.memory_space<vmem>>, vector<512x128xbf16>,
    return
  }
  func.func @transform_0(%arg0: i32) -> (i32, i32) {
    %c0_i32 = arith.constant 0 : i32
    %c0_i32_0 = arith.constant 0 : i32
    return %arg0, %c0_i32 : i32, i32
  }
  func.func @transform_1(%arg0: i32) -> (i32, i32) {
    %c0_i32 = arith.constant 0 : i32
    %c0_i32_0 = arith.constant 0 : i32
    return %arg0, %c0_i32 : i32, i32
  }
  func.func @transform_2(%arg0: i32) -> (i32, i32) {
    %c0_i32 = arith.constant 0 : i32
    %c0_i32_0 = arith.constant 0 : i32
    %c0_i32_1 = arith.constant 0 : i32
    return %c0_i32, %c0_i32_0 : i32, i32
  }
  func.func @transform_3(%arg0: i32) -> (i32, i32) {
    %c0_i32 = arith.constant 0 : i32
    %c0_i32_0 = arith.constant 0 : i32
    %c0_i32_1 = arith.constant 0 : i32
    return %c0_i32, %c0_i32_0 : i32, i32
  }
  func.func @transform_4(%arg0: i32) -> (i32, i32) {
    %c0_i32 = arith.constant 0 : i32
    %c0_i32_0 = arith.constant 0 : i32
    %c0_i32_1 = arith.constant 0 : i32
    return %c0_i32, %c0_i32_0 : i32, i32
  }
  func.func @transform_5(%arg0: i32) -> (i32, i32) {
    %c0_i32 = arith.constant 0 : i32
    %c0_i32_0 = arith.constant 0 : i32
    return %arg0, %c0_i32 : i32, i32
  }
}

module attributes {stable_mosaic.version = 11 : i64} {
  func.func @stage2_kernel(%arg0: i32, %arg1: i32, %arg2: memref<256x512xi8, #tpu.memory_space<vmem>>, %arg3: memref<512x128xbf16, #tpu.memory_space<vmem>>, %arg4: memref<256x1xf32, #tpu.memory_space<vmem>>, %arg5: memref<1x128xf32, #tpu.memory_space<vmem>>, %arg6: memref<128x128xbf16, #tpu.memory_space<vmem>>, %arg7: memref<256x128xbf16, #tpu.memory_space<vmem>>, %arg8: memref<256x128xf32, #tpu.memory_space<vmem>>) attributes {dimension_semantics = [#tpu.dimension_semantics<parallel>, #tpu.dimension_semantics<arbitrary>], iteration_bounds = array<i64: 4, 2>, scalar_prefetch = 0 : i64, scratch_operands = 1 : i64, tpu.core_type = #tpu.core_type<tc>, window_params = [{transform_indices = @transform_0, window_bounds = array<i64: 256, 512>}, {transform_indices = @transform_1, window_bounds = array<i64: 512, 128>}, {transform_indices = @transform_2, window_bounds = array<i64: 256, 1>}, {pipeline_mode = #tpu.pipeline_mode<synchronous>, transform_indices = @transform_3, window_bounds = array<i64: 1, 128>}, {pipeline_mode = #tpu.pipeline_mode<synchronous>, transform_indices = @transform_4, window_bounds = array<i64: 128, 128>}, {transform_indices = @transform_5, window_bounds = array<i64: 256, 128>}]} {
    %c0_i32 = arith.constant 0 : i32
    %0 = arith.cmpi eq, %arg1, %c0_i32 : i32
    %1 = arith.extui %0 : i1 to i32
    %c0_i32_0 = arith.constant 0 : i32
    %2 = arith.cmpi ne, %1, %c0_i32_0 : i32
    scf.if %2 {
      %cst_9 = arith.constant 0.000000e+00 : f32
      %13 = vector.broadcast %cst_9 : f32 to vector<256x128xf32>
      %c0_10 = arith.constant 0 : index
      %c0_11 = arith.constant 0 : index
      %14 = vector.load %arg8[%c0_10, %c0_11] : memref<256x128xf32, #tpu.memory_space<vmem>>, vector<256x128xf32>
      tpu.vector_store %arg8[%c0_10, %c0_11], %13 {strides = array<i32>} : memref<256x128xf32, #tpu.memory_space<vmem>>, vector<256x128xf32>,
    } else {
    }
    %c0 = arith.constant 0 : index
    %c0_1 = arith.constant 0 : index
    %3 = vector.load %arg2[%c0, %c0_1] : memref<256x512xi8, #tpu.memory_space<vmem>>, vector<256x512xi8>
    %4 = arith.sitofp %3 : vector<256x512xi8> to vector<256x512xbf16>
    %c0_2 = arith.constant 0 : index
    %c0_3 = arith.constant 0 : index
    %5 = vector.load %arg8[%c0_2, %c0_3] : memref<256x128xf32, #tpu.memory_space<vmem>>, vector<256x128xf32>
    %c0_4 = arith.constant 0 : index
    %c0_5 = arith.constant 0 : index
    %6 = vector.load %arg3[%c0_4, %c0_5] : memref<512x128xbf16, #tpu.memory_space<vmem>>, vector<512x128xbf16>
    %cst = arith.constant dense<0.000000e+00> : vector<256x128xf32>
    %7 = tpu.matmul %4, %6, %cst {dimension_numbers = #tpu.dot_dimension_numbers<[1], [0], [0], [1], [0, 0, 1, 1], [], []>} : vector<256x512xbf16>, vector<512x128xbf16>, vector<256x128xf32> -> vector<256x128xf32>
    %8 = arith.addf %5, %7 : vector<256x128xf32>
    %c0_6 = arith.constant 0 : index
    %c0_7 = arith.constant 0 : index
    %9 = vector.load %arg8[%c0_6, %c0_7] : memref<256x128xf32, #tpu.memory_space<vmem>>, vector<256x128xf32>
    tpu.vector_store %arg8[%c0_6, %c0_7], %8 {strides = array<i32>} : memref<256x128xf32, #tpu.memory_space<vmem>>, vector<256x128xf32>,
    %c1_i32 = arith.constant 1 : i32
    %10 = arith.cmpi eq, %arg1, %c1_i32 : i32
    %11 = arith.extui %10 : i1 to i32
    %c0_i32_8 = arith.constant 0 : i32
    %12 = arith.cmpi ne, %11, %c0_i32_8 : i32
    scf.if %12 {
      %c0_9 = arith.constant 0 : index
      %c0_10 = arith.constant 0 : index
      %13 = vector.load %arg4[%c0_9, %c0_10] : memref<256x1xf32, #tpu.memory_space<vmem>>, vector<256x1xf32>
      %c0_11 = arith.constant 0 : index
      %c0_12 = arith.constant 0 : index
      %14 = vector.load %arg8[%c0_11, %c0_12] : memref<256x128xf32, #tpu.memory_space<vmem>>, vector<256x128xf32>
      %15 = vector.broadcast %13 : vector<256x1xf32> to vector<256x128xf32>
      %16 = arith.mulf %15, %14 : vector<256x128xf32>
      %c0_13 = arith.constant 0 : index
      %c0_14 = arith.constant 0 : index
      %17 = vector.load %arg5[%c0_13, %c0_14] : memref<1x128xf32, #tpu.memory_space<vmem>>, vector<1x128xf32>
      %18 = vector.broadcast %17 : vector<1x128xf32> to vector<256x128xf32>
      %19 = arith.addf %16, %18 : vector<256x128xf32>
      %cst_15 = arith.constant 0.000000e+00 : f32
      %20 = vector.broadcast %cst_15 : f32 to vector<256x128xf32>
      %21 = arith.maximumf %19, %20 : vector<256x128xf32>
      %22 = arith.truncf %21 : vector<256x128xf32> to vector<256x128xbf16>
      %c0_16 = arith.constant 0 : index
      %c0_17 = arith.constant 0 : index
      %23 = vector.load %arg6[%c0_16, %c0_17] : memref<128x128xbf16, #tpu.memory_space<vmem>>, vector<128x128xbf16>
      %cst_18 = arith.constant dense<0.000000e+00> : vector<256x128xf32>
      %24 = tpu.matmul %22, %23, %cst_18 {dimension_numbers = #tpu.dot_dimension_numbers<[1], [0], [0], [1], [0, 0, 1, 1], [], []>} : vector<256x128xbf16>, vector<128x128xbf16>, vector<256x128xf32> -> vector<256x128xf32>
      %c0_19 = arith.constant 0 : index
      %c0_20 = arith.constant 0 : index
      %25 = vector.load %arg4[%c0_19, %c0_20] : memref<256x1xf32, #tpu.memory_space<vmem>>, vector<256x1xf32>
      %26 = vector.broadcast %25 : vector<256x1xf32> to vector<256x128xf32>
      %27 = arith.mulf %26, %24 : vector<256x128xf32>
      %28 = arith.truncf %27 : vector<256x128xf32> to vector<256x128xbf16>
      %c0_21 = arith.constant 0 : index
      %c0_22 = arith.constant 0 : index
      %29 = vector.load %arg7[%c0_21, %c0_22] : memref<256x128xbf16, #tpu.memory_space<vmem>>, vector<256x128xbf16>
      tpu.vector_store %arg7[%c0_21, %c0_22], %28 {strides = array<i32>} : memref<256x128xbf16, #tpu.memory_space<vmem>>, vector<256x128xbf16>,
    } else {
    }
    return
  }
  func.func @transform_0(%arg0: i32, %arg1: i32) -> (i32, i32) {
    %c0_i32 = arith.constant 0 : i32
    return %arg0, %arg1 : i32, i32
  }
  func.func @transform_1(%arg0: i32, %arg1: i32) -> (i32, i32) {
    %c0_i32 = arith.constant 0 : i32
    %c0_i32_0 = arith.constant 0 : i32
    return %arg1, %c0_i32 : i32, i32
  }
  func.func @transform_2(%arg0: i32, %arg1: i32) -> (i32, i32) {
    %c0_i32 = arith.constant 0 : i32
    %c0_i32_0 = arith.constant 0 : i32
    return %arg0, %c0_i32 : i32, i32
  }
  func.func @transform_3(%arg0: i32, %arg1: i32) -> (i32, i32) {
    %c0_i32 = arith.constant 0 : i32
    %c0_i32_0 = arith.constant 0 : i32
    %c0_i32_1 = arith.constant 0 : i32
    return %c0_i32, %c0_i32_0 : i32, i32
  }
  func.func @transform_4(%arg0: i32, %arg1: i32) -> (i32, i32) {
    %c0_i32 = arith.constant 0 : i32
    %c0_i32_0 = arith.constant 0 : i32
    %c0_i32_1 = arith.constant 0 : i32
    return %c0_i32, %c0_i32_0 : i32, i32
  }
  func.func @transform_5(%arg0: i32, %arg1: i32) -> (i32, i32) {
    %c0_i32 = arith.constant 0 : i32
    %c0_i32_0 = arith.constant 0 : i32
    return %arg0, %c0_i32 : i32, i32
  }
}

module attributes {stable_mosaic.version = 11 : i64} {
  func.func @stage3_kernel(%arg0: i32, %arg1: i32, %arg2: memref<256x512xi8, #tpu.memory_space<vmem>>, %arg3: memref<512x128xbf16, #tpu.memory_space<vmem>>, %arg4: memref<256x1xf32, #tpu.memory_space<vmem>>, %arg5: memref<1x128xf32, #tpu.memory_space<vmem>>, %arg6: memref<256x128xf32, #tpu.memory_space<vmem>>, %arg7: memref<256x128xf32, #tpu.memory_space<vmem>>) attributes {dimension_semantics = [#tpu.dimension_semantics<parallel>, #tpu.dimension_semantics<arbitrary>], iteration_bounds = array<i64: 4, 2>, scalar_prefetch = 0 : i64, scratch_operands = 1 : i64, tpu.core_type = #tpu.core_type<tc>, window_params = [{transform_indices = @transform_0, window_bounds = array<i64: 256, 512>}, {transform_indices = @transform_1, window_bounds = array<i64: 512, 128>}, {transform_indices = @transform_2, window_bounds = array<i64: 256, 1>}, {pipeline_mode = #tpu.pipeline_mode<synchronous>, transform_indices = @transform_3, window_bounds = array<i64: 1, 128>}, {transform_indices = @transform_4, window_bounds = array<i64: 256, 128>}]} {
    %c0_i32 = arith.constant 0 : i32
    %0 = arith.cmpi eq, %arg1, %c0_i32 : i32
    %1 = arith.extui %0 : i1 to i32
    %c0_i32_0 = arith.constant 0 : i32
    %2 = arith.cmpi ne, %1, %c0_i32_0 : i32
    scf.if %2 {
      %cst_9 = arith.constant 0.000000e+00 : f32
      %13 = vector.broadcast %cst_9 : f32 to vector<256x128xf32>
      %c0_10 = arith.constant 0 : index
      %c0_11 = arith.constant 0 : index
      %14 = vector.load %arg7[%c0_10, %c0_11] : memref<256x128xf32, #tpu.memory_space<vmem>>, vector<256x128xf32>
      tpu.vector_store %arg7[%c0_10, %c0_11], %13 {strides = array<i32>} : memref<256x128xf32, #tpu.memory_space<vmem>>, vector<256x128xf32>,
    } else {
    }
    %c0 = arith.constant 0 : index
    %c0_1 = arith.constant 0 : index
    %3 = vector.load %arg2[%c0, %c0_1] : memref<256x512xi8, #tpu.memory_space<vmem>>, vector<256x512xi8>
    %4 = arith.sitofp %3 : vector<256x512xi8> to vector<256x512xbf16>
    %c0_2 = arith.constant 0 : index
    %c0_3 = arith.constant 0 : index
    %5 = vector.load %arg7[%c0_2, %c0_3] : memref<256x128xf32, #tpu.memory_space<vmem>>, vector<256x128xf32>
    %c0_4 = arith.constant 0 : index
    %c0_5 = arith.constant 0 : index
    %6 = vector.load %arg3[%c0_4, %c0_5] : memref<512x128xbf16, #tpu.memory_space<vmem>>, vector<512x128xbf16>
    %cst = arith.constant dense<0.000000e+00> : vector<256x128xf32>
    %7 = tpu.matmul %4, %6, %cst {dimension_numbers = #tpu.dot_dimension_numbers<[1], [0], [0], [1], [0, 0, 1, 1], [], []>} : vector<256x512xbf16>, vector<512x128xbf16>, vector<256x128xf32> -> vector<256x128xf32>
    %8 = arith.addf %5, %7 : vector<256x128xf32>
    %c0_6 = arith.constant 0 : index
    %c0_7 = arith.constant 0 : index
    %9 = vector.load %arg7[%c0_6, %c0_7] : memref<256x128xf32, #tpu.memory_space<vmem>>, vector<256x128xf32>
    tpu.vector_store %arg7[%c0_6, %c0_7], %8 {strides = array<i32>} : memref<256x128xf32, #tpu.memory_space<vmem>>, vector<256x128xf32>,
    %c1_i32 = arith.constant 1 : i32
    %10 = arith.cmpi eq, %arg1, %c1_i32 : i32
    %11 = arith.extui %10 : i1 to i32
    %c0_i32_8 = arith.constant 0 : i32
    %12 = arith.cmpi ne, %11, %c0_i32_8 : i32
    scf.if %12 {
      %c0_9 = arith.constant 0 : index
      %c0_10 = arith.constant 0 : index
      %13 = vector.load %arg4[%c0_9, %c0_10] : memref<256x1xf32, #tpu.memory_space<vmem>>, vector<256x1xf32>
      %c0_11 = arith.constant 0 : index
      %c0_12 = arith.constant 0 : index
      %14 = vector.load %arg7[%c0_11, %c0_12] : memref<256x128xf32, #tpu.memory_space<vmem>>, vector<256x128xf32>
      %15 = vector.broadcast %13 : vector<256x1xf32> to vector<256x128xf32>
      %16 = arith.mulf %15, %14 : vector<256x128xf32>
      %c0_13 = arith.constant 0 : index
      %c0_14 = arith.constant 0 : index
      %17 = vector.load %arg5[%c0_13, %c0_14] : memref<1x128xf32, #tpu.memory_space<vmem>>, vector<1x128xf32>
      %18 = vector.broadcast %17 : vector<1x128xf32> to vector<256x128xf32>
      %19 = arith.addf %16, %18 : vector<256x128xf32>
      %c0_15 = arith.constant 0 : index
      %c0_16 = arith.constant 0 : index
      %20 = vector.load %arg6[%c0_15, %c0_16] : memref<256x128xf32, #tpu.memory_space<vmem>>, vector<256x128xf32>
      tpu.vector_store %arg6[%c0_15, %c0_16], %19 {strides = array<i32>} : memref<256x128xf32, #tpu.memory_space<vmem>>, vector<256x128xf32>,
    } else {
    }
    return
  }
  func.func @transform_0(%arg0: i32, %arg1: i32) -> (i32, i32) {
    %c0_i32 = arith.constant 0 : i32
    return %arg0, %arg1 : i32, i32
  }
  func.func @transform_1(%arg0: i32, %arg1: i32) -> (i32, i32) {
    %c0_i32 = arith.constant 0 : i32
    %c0_i32_0 = arith.constant 0 : i32
    return %arg1, %c0_i32 : i32, i32
  }
  func.func @transform_2(%arg0: i32, %arg1: i32) -> (i32, i32) {
    %c0_i32 = arith.constant 0 : i32
    %c0_i32_0 = arith.constant 0 : i32
    return %arg0, %c0_i32 : i32, i32
  }
  func.func @transform_3(%arg0: i32, %arg1: i32) -> (i32, i32) {
    %c0_i32 = arith.constant 0 : i32
    %c0_i32_0 = arith.constant 0 : i32
    %c0_i32_1 = arith.constant 0 : i32
    return %c0_i32, %c0_i32_0 : i32, i32
  }
  func.func @transform_4(%arg0: i32, %arg1: i32) -> (i32, i32) {
    %c0_i32 = arith.constant 0 : i32
    %c0_i32_0 = arith.constant 0 : i32
    return %arg0, %c0_i32 : i32, i32
  }
}

</mosaic_0001>

<bundles_post_ra>
// kernel: gcn_forward.4
= control target key start
LH: loop header
LB: loop body
LE: loop exit
PB: predicated region body
PF: predicated region fallthrough
CT: control target
= control target key end

     0   :  { %s3226_s18 = smov 0   ;;  %s3228_s19 = smov 0   ;;  %s3700_s0 = inlined_call_operand.vmem [shape: s8[1024,1024], index: 0, kind: input, shape index: {}]   ;;  %s3701_s1 = inlined_call_operand.vmem [shape: bf16[1024,128], index: 1, kind: input, shape index: {}]   ;;  %s3702_s2 = inlined_call_operand.vmem [shape: f32[1024,1], index: 2, kind: input, shape index: {}]   ;;  %s3703_s3 = inlined_call_operand.vmem [shape: f32[1,128], index: 3, kind: input, shape index: {}]   ;;  %s3704_s4 = inlined_call_operand.vmem [shape: bf16[128,128], index: 4, kind: input, shape index: {}]   ;;  %s3705_s5 = inlined_call_operand.vmem [shape: bf16[1024,128], index: 5, kind: output, shape index: {}]  }
   0x1   :  { %s3230_s20 = smov 0   ;;  %s3232_s21 = smov 0  }
   0x2   :  { %s3234_s22 = smov 0   ;;  %s3236_s23 = smov 0  }
   0x3   :  { %s3238_s24 = smov 0  }
   0x4 LB: > { %s24_s25 = sadd.s32 1, %s3184_s22  ;;  %s27_s26 = sadd.s32 1, %s3188_s23  ;;  %s3192_s24 = sphi %s3238_s24, %s15_s24   ;;  %s3188_s23 = sphi %s3236_s23, %s3711_s23   ;;  %s3184_s22 = sphi %s3234_s22, %s3710_s22   ;;  %s3180_s21 = sphi %s3232_s21, %s3709_s21   ;;  %s3176_s20 = sphi %s3230_s20, %s3708_s20   ;;  %s3172_s19 = sphi %s3228_s19, %s3707_s19   ;;  %s3168_s18 = sphi %s3226_s18, %s3706_s18  }
   0x5   : > { %p25_p0 = scmp.ge.s32.totalorder %s24_s25, 2  ;;  %p43_p1 = scmp.ne.s32.totalorder %s3172_s19, %s3168_s18 }
   0x6   : > { %p44_p2 = scmp.eq.s32.totalorder %s3192_s24, 0  ;;  %s36_s30 = sadd.s32 1, %s3172_s19 }
   0x7   : > { %s3713_s25 = smov (%p25_p0, %s24_s25), 0  ;;  %s3715_s26 = smov (!%p25_p0, %s27_s26), %s3188_s23 }
   0x8   : > { %p45_p3 = por %p44_p2, %p43_p1  ;;  %p29_p4 = scmp.ge.s32.totalorder %s3715_s26, 4 }
   0x9   : > { %s32_s27 = ssub.s32 %s3184_s22, %s3713_s25  ;;  %p2443_p6 = scmp.ge.s32.totalorder %s3192_s24, 8 }
   0xa   : > { %s3717_s26 = smov (%p29_p4, %s3715_s26), 0 }
   0xb   : > { %s31_s28 = ssub.s32 %s3188_s23, %s3717_s26  ;;  %195 = sbr.rel (%p2443_p6) target bundleno = 41 (0x29), region = 24 }
   0xc   : > { %s33_s29 = sor.u32 %s32_s27, %s31_s28 }
   0xd   : > { %p34_p5 = scmp.eq.s32.totalorder %s33_s29, 0 }
   0xf   : > { %s3277_s6 = scalar_select %p34_p5, %s3172_s19, %s36_s30  }
  0x12   : > { %198 = sbr.rel (!%p45_p3) target bundleno = 41 (0x29), region = 28  ;;  %s200_s7 = sand.u32 (%p45_p3), 1, %s3172_s19  }
  0x13   : > { %s2446_s8 = sshll.u32 (%p45_p3), %s3184_s22, 2  ;;  %s2444_s9 = sshll.u32 (%p45_p3), %s200_s7, 8 }
  0x14   : > { %s2598_s10 = sshll.u32 (%p45_p3), %s3188_s23, 8  ;;  %s3291_s16 = scalar_lea.vmem (%p45_p3), [#allocation3], %s2444_s9 }
  0x15   : > { %s206_s11 = sadd.s32 (%p45_p3), %s2598_s10, %s2446_s8 }
  0x16   : > { %s2448_s12 = sshll.u32 (%p45_p3), %s206_s11, 1 }
  0x17   : > { %s3286_s15 = scalar_lea.vmem (%p45_p3), %s3700_s0, %s2448_s12 }
  0x18   : > { %v298_v0 = vld [vmem:[%s3286_s15] sm:$0xff] (%p45_p3)  ;;  %v300_v1 = vld [vmem:[%s3286_s15 + $0x10] sm:$0xff] (%p45_p3) }
  0x19   : > { %v302_v2 = vld [vmem:[%s3286_s15 + $0x20] sm:$0xff]  ;;  %299 = vst [vmem:[%s3291_s16] sm:$0xff] %v298_v0  ;;  %301 = vst [vmem:[%s3291_s16 + $0x8] sm:$0xff] %v300_v1  ;;  %v304_v3 = vld [vmem:[%s3286_s15 + $0x30] sm:$0xff] }
  0x1a   : > { %303 = vst [vmem:[%s3291_s16 + $0x10] sm:$0xff] %v302_v2  ;;  %v306_v4 = vld [vmem:[%s3286_s15 + $0x40] sm:$0xff]  ;;  %v308_v5 = vld [vmem:[%s3286_s15 + $0x50] sm:$0xff]  ;;  %305 = vst [vmem:[%s3291_s16 + $0x18] sm:$0xff] %v304_v3 }
  0x1b   : > { %307 = vst [vmem:[%s3291_s16 + $0x20] sm:$0xff] %v306_v4  ;;  %309 = vst [vmem:[%s3291_s16 + $0x28] sm:$0xff] %v308_v5  ;;  %v310_v6 = vld [vmem:[%s3286_s15 + $0x60] sm:$0xff]  ;;  %v312_v7 = vld [vmem:[%s3286_s15 + $0x70] sm:$0xff] }
  0x1c   : > { %v314_v8 = vld [vmem:[%s3286_s15 + $0x80] sm:$0xff]  ;;  %311 = vst [vmem:[%s3291_s16 + $0x30] sm:$0xff] %v310_v6  ;;  %313 = vst [vmem:[%s3291_s16 + $0x38] sm:$0xff] %v312_v7  ;;  %v316_v9 = vld [vmem:[%s3286_s15 + $0x90] sm:$0xff] }
  0x1d   : > { %315 = vst [vmem:[%s3291_s16 + $0x40] sm:$0xff] %v314_v8  ;;  %v318_v10 = vld [vmem:[%s3286_s15 + $0xa0] sm:$0xff]  ;;  %v320_v11 = vld [vmem:[%s3286_s15 + $0xb0] sm:$0xff]  ;;  %317 = vst [vmem:[%s3291_s16 + $0x48] sm:$0xff] %v316_v9 }
  0x1e   : > { %319 = vst [vmem:[%s3291_s16 + $0x50] sm:$0xff] %v318_v10  ;;  %321 = vst [vmem:[%s3291_s16 + $0x58] sm:$0xff] %v320_v11  ;;  %v322_v12 = vld [vmem:[%s3286_s15 + $0xc0] sm:$0xff]  ;;  %v324_v13 = vld [vmem:[%s3286_s15 + $0xd0] sm:$0xff] }
  0x1f   : > { %v326_v14 = vld [vmem:[%s3286_s15 + $0xe0] sm:$0xff]  ;;  %323 = vst [vmem:[%s3291_s16 + $0x60] sm:$0xff] %v322_v12  ;;  %325 = vst [vmem:[%s3291_s16 + $0x68] sm:$0xff] %v324_v13  ;;  %v328_v15 = vld [vmem:[%s3286_s15 + $0xf0] sm:$0xff] }
  0x20   : > { %327 = vst [vmem:[%s3291_s16 + $0x70] sm:$0xff] %v326_v14  ;;  %v330_v16 = vld [vmem:[%s3286_s15 + $0x100] sm:$0xff]  ;;  %v332_v17 = vld [vmem:[%s3286_s15 + $0x110] sm:$0xff]  ;;  %329 = vst [vmem:[%s3291_s16 + $0x78] sm:$0xff] %v328_v15 }
  0x21   : > { %331 = vst [vmem:[%s3291_s16 + $0x80] sm:$0xff] %v330_v16  ;;  %333 = vst [vmem:[%s3291_s16 + $0x88] sm:$0xff] %v332_v17  ;;  %v334_v18 = vld [vmem:[%s3286_s15 + $0x120] sm:$0xff]  ;;  %v336_v19 = vld [vmem:[%s3286_s15 + $0x130] sm:$0xff] }
  0x22   : > { %v338_v20 = vld [vmem:[%s3286_s15 + $0x140] sm:$0xff]  ;;  %335 = vst [vmem:[%s3291_s16 + $0x90] sm:$0xff] %v334_v18  ;;  %337 = vst [vmem:[%s3291_s16 + $0x98] sm:$0xff] %v336_v19  ;;  %v340_v21 = vld [vmem:[%s3286_s15 + $0x150] sm:$0xff] }
  0x23   : > { %339 = vst [vmem:[%s3291_s16 + $0xa0] sm:$0xff] %v338_v20  ;;  %v342_v22 = vld [vmem:[%s3286_s15 + $0x160] sm:$0xff]  ;;  %v344_v23 = vld [vmem:[%s3286_s15 + $0x170] sm:$0xff]  ;;  %341 = vst [vmem:[%s3291_s16 + $0xa8] sm:$0xff] %v340_v21 }
  0x24   : > { %343 = vst [vmem:[%s3291_s16 + $0xb0] sm:$0xff] %v342_v22  ;;  %345 = vst [vmem:[%s3291_s16 + $0xb8] sm:$0xff] %v344_v23  ;;  %v346_v24 = vld [vmem:[%s3286_s15 + $0x180] sm:$0xff]  ;;  %v348_v25 = vld [vmem:[%s3286_s15 + $0x190] sm:$0xff] }
  0x25   : > { %v350_v26 = vld [vmem:[%s3286_s15 + $0x1a0] sm:$0xff]  ;;  %347 = vst [vmem:[%s3291_s16 + $0xc0] sm:$0xff] %v346_v24  ;;  %349 = vst [vmem:[%s3291_s16 + $0xc8] sm:$0xff] %v348_v25  ;;  %v352_v27 = vld [vmem:[%s3286_s15 + $0x1b0] sm:$0xff] }
  0x26   : > { %351 = vst [vmem:[%s3291_s16 + $0xd0] sm:$0xff] %v350_v26  ;;  %v354_v28 = vld [vmem:[%s3286_s15 + $0x1c0] sm:$0xff]  ;;  %v356_v29 = vld [vmem:[%s3286_s15 + $0x1d0] sm:$0xff]  ;;  %353 = vst [vmem:[%s3291_s16 + $0xd8] sm:$0xff] %v352_v27 }
  0x27   : > { %355 = vst [vmem:[%s3291_s16 + $0xe0] sm:$0xff] %v354_v28  ;;  %357 = vst [vmem:[%s3291_s16 + $0xe8] sm:$0xff] %v356_v29  ;;  %v358_v30 = vld [vmem:[%s3286_s15 + $0x1e0] sm:$0xff]  ;;  %v360_v31 = vld [vmem:[%s3286_s15 + $0x1f0] sm:$0xff] }
  0x28   : > { %359 = vst [vmem:[%s3291_s16 + $0xf0] sm:$0xff] %v358_v30  ;;  %361 = vst [vmem:[%s3291_s16 + $0xf8] sm:$0xff] %v360_v31 }
  0x29 PF: > { %p2449_p7 = scmp.ge.s32.totalorder %s3192_s24, 1  ;;  %p384_p8 = scmp.lt.s32.totalorder %s3192_s24, 9 }
  0x2b   : > { %p385_p9 = pnand %p2449_p7, %p384_p8 }
  0x2c   : > { %s391_s17 = sand.u32 (!%p385_p9), 1, %s3168_s18   ;;  %s2451_s27 = sshll.u32 (!%p385_p9), %s3176_s20, 6 }
  0x2d   : > { %388 = sbr.rel (%p385_p9) target bundleno = 835 (0x343), region = 74  ;;  %s2450_s28 = sshll.u32 (!%p385_p9), %s391_s17, 8 }
  0x2e   : > { %p431_p10 = scmp.lt.s32.totalorder (!%p385_p9), %s2451_s27, 127  ;;  %s2453_s29 = sshll.u32 (!%p385_p9), %s3180_s21, 5 }
  0x2f   : > { %p437_p11 = scmp.lt.s32.totalorder (!%p385_p9), %s2453_s29, 127  ;;  %s3374_s16 = scalar_lea.vmem (!%p385_p9), [#allocation3], %s2450_s28 }
  0x30   : > { %p2457_p12 = scmp.ne.s32.totalorder (!%p385_p9), %s3176_s20, 0 }
  0x34   : > { %s3719_s27 = smov (!%p431_p10, %s2451_s27), 127  ;;  %s3721_s29 = smov (!%p437_p11, %s2453_s29), 127 }
  0x35   : > { %s2452_s30 = sshll.u32 %s3719_s27, 2  ;;  %s2454_s10 = sshll.u32 %s3721_s29, 3  ;;  %v3194_v32 = vmov (!%p2457_p12), 0.0  }
  0x36   : > { %s3362_s9 = scalar_lea.vmem %s3701_s1, %s2452_s30  ;;  %s2456_s11 = sshll.u32 %s3721_s29, 2  ;;  %453 = vst [vmem:[#allocation2] sm:$0xff] (!%p2457_p12), %v3194_v32  ;;  %454 = vst [vmem:[#allocation2 + $0x8] sm:$0xff] (!%p2457_p12), %v3194_v32 }
  0x37   : > { %s3367_s14 = scalar_lea.vmem %s3702_s2, %s2454_s10  ;;  %s3372_s21 = scalar_lea.vmem %s3705_s5, %s2456_s11  ;;  %455 = vst [vmem:[#allocation2 + $0x10] sm:$0xff] (!%p2457_p12), %v3194_v32  ;;  %456 = vst [vmem:[#allocation2 + $0x18] sm:$0xff] (!%p2457_p12), %v3194_v32 }
  0x38   : > { %452 = sbr.rel (%p2457_p12) target bundleno = 70 (0x46), region = 82  ;;  %457 = vst [vmem:[#allocation2 + $0x20] sm:$0xff] (!%p2457_p12), %v3194_v32  ;;  %458 = vst [vmem:[#allocation2 + $0x28] sm:$0xff] (!%p2457_p12), %v3194_v32 }
  0x39   : > { %459 = vst [vmem:[#allocation2 + $0x30] sm:$0xff] (!%p2457_p12), %v3194_v32  ;;  %460 = vst [vmem:[#allocation2 + $0x38] sm:$0xff] (!%p2457_p12), %v3194_v32 }
  0x3a   : > { %461 = vst [vmem:[#allocation2 + $0x40] sm:$0xff] (!%p2457_p12), %v3194_v32  ;;  %462 = vst [vmem:[#allocation2 + $0x48] sm:$0xff] (!%p2457_p12), %v3194_v32 }
  0x3b   : > { %463 = vst [vmem:[#allocation2 + $0x50] sm:$0xff] (!%p2457_p12), %v3194_v32  ;;  %464 = vst [vmem:[#allocation2 + $0x58] sm:$0xff] (!%p2457_p12), %v3194_v32 }
  0x3c   : > { %465 = vst [vmem:[#allocation2 + $0x60] sm:$0xff] (!%p2457_p12), %v3194_v32  ;;  %466 = vst [vmem:[#allocation2 + $0x68] sm:$0xff] (!%p2457_p12), %v3194_v32 }
  0x3d   : > { %467 = vst [vmem:[#allocation2 + $0x70] sm:$0xff] (!%p2457_p12), %v3194_v32  ;;  %468 = vst [vmem:[#allocation2 + $0x78] sm:$0xff] (!%p2457_p12), %v3194_v32 }
  0x3e   : > { %469 = vst [vmem:[#allocation2 + $0x80] sm:$0xff] (!%p2457_p12), %v3194_v32  ;;  %470 = vst [vmem:[#allocation2 + $0x88] sm:$0xff] (!%p2457_p12), %v3194_v32 }
  0x3f   : > { %471 = vst [vmem:[#allocation2 + $0x90] sm:$0xff] %v3194_v32  ;;  %472 = vst [vmem:[#allocation2 + $0x98] sm:$0xff] %v3194_v32 }
  0x40   : > { %473 = vst [vmem:[#allocation2 + $0xa0] sm:$0xff] %v3194_v32  ;;  %474 = vst [vmem:[#allocation2 + $0xa8] sm:$0xff] %v3194_v32 }
  0x41   : > { %475 = vst [vmem:[#allocation2 + $0xb0] sm:$0xff] %v3194_v32  ;;  %476 = vst [vmem:[#allocation2 + $0xb8] sm:$0xff] %v3194_v32 }
  0x42   : > { %477 = vst [vmem:[#allocation2 + $0xc0] sm:$0xff] %v3194_v32  ;;  %478 = vst [vmem:[#allocation2 + $0xc8] sm:$0xff] %v3194_v32 }
  0x43   : > { %479 = vst [vmem:[#allocation2 + $0xd0] sm:$0xff] %v3194_v32  ;;  %480 = vst [vmem:[#allocation2 + $0xd8] sm:$0xff] %v3194_v32 }
  0x44   : > { %481 = vst [vmem:[#allocation2 + $0xe0] sm:$0xff] %v3194_v32  ;;  %482 = vst [vmem:[#allocation2 + $0xe8] sm:$0xff] %v3194_v32 }
  0x45   : > { %483 = vst [vmem:[#allocation2 + $0xf0] sm:$0xff] %v3194_v32  ;;  %484 = vst [vmem:[#allocation2 + $0xf8] sm:$0xff] %v3194_v32 }
  0x46 PF: > { %v3096_v33 = vld [vmem:[%s3362_s9 + $0x40] sm:$0xff]   ;;  %v3100_v37 = vld [vmem:[%s3362_s9 + $0x48] sm:$0xff]   ;;  %v3104_v41 = vld [vmem:[%s3362_s9 + $0x50] sm:$0xff]   ;;  %p2554_p13 = scmp.ne.s32.totalorder %s3176_s20, 1 }
  0x47   : > { %v3097_v34 = vld [vmem:[%s3362_s9 + $0xc0] sm:$0xff]   ;;  %2726 = vmatprep.subr.bf16.mxu0 %v3096_v33  ;;  %v3101_v38 = vld [vmem:[%s3362_s9 + $0xc8] sm:$0xff]   ;;  %v3105_v42 = vld [vmem:[%s3362_s9 + $0xd0] sm:$0xff]  }
  0x48   : > { %v3098_v35 = vld [vmem:[%s3362_s9] sm:$0xff]   ;;  %2838 = vmatprep.subr.bf16.mxu1 %v3097_v34  ;;  %v3102_v39 = vld [vmem:[%s3362_s9 + $0x8] sm:$0xff]   ;;  %v3106_v43 = vld [vmem:[%s3362_s9 + $0x10] sm:$0xff]  }
  0x49   : > { %v3099_v36 = vld [vmem:[%s3362_s9 + $0x80] sm:$0xff]   ;;  %2727 = vmatpush3.bf16.msra.mxu0 %v3098_v35  ;;  %v3103_v40 = vld [vmem:[%s3362_s9 + $0x88] sm:$0xff]   ;;  %v3107_v44 = vld [vmem:[%s3362_s9 + $0x90] sm:$0xff]  }
  0x4a   : > { %2839 = vmatpush3.bf16.msra.mxu1 %v3099_v36  ;;  %2728 = vmatprep.subr.bf16.mxu0 %v3100_v37  ;;  %v3108_v45 = vld [vmem:[%s3362_s9 + $0x58] sm:$0xff]   ;;  %v3112_v49 = vld [vmem:[%s3362_s9 + $0x60] sm:$0xff]   ;;  %v3116_v53 = vld [vmem:[%s3362_s9 + $0x68] sm:$0xff]  }
  0x4b   : > { %2840 = vmatprep.subr.bf16.mxu1 %v3101_v38  ;;  %v3109_v46 = vld [vmem:[%s3362_s9 + $0xd8] sm:$0xff]   ;;  %v3113_v50 = vld [vmem:[%s3362_s9 + $0xe0] sm:$0xff]   ;;  %v3117_v54 = vld [vmem:[%s3362_s9 + $0xe8] sm:$0xff]  }
  0x4c   : > { %v3110_v47 = vld [vmem:[%s3362_s9 + $0x18] sm:$0xff]   ;;  %v3114_v51 = vld [vmem:[%s3362_s9 + $0x20] sm:$0xff]   ;;  %v3118_v55 = vld [vmem:[%s3362_s9 + $0x28] sm:$0xff]  }
  0x4d   : > { %2729 = vmatpush3.bf16.msra.mxu0 %v3102_v39  ;;  %v3111_v48 = vld [vmem:[%s3362_s9 + $0x98] sm:$0xff]   ;;  %v3115_v52 = vld [vmem:[%s3362_s9 + $0xa0] sm:$0xff]   ;;  %v3119_v56 = vld [vmem:[%s3362_s9 + $0xa8] sm:$0xff]  }
  0x4e   : > { %2841 = vmatpush3.bf16.msra.mxu1 %v3103_v40  ;;  %2730 = vmatprep.subr.bf16.mxu0 %v3104_v41  ;;  %v3120_v57 = vld [vmem:[%s3362_s9 + $0x70] sm:$0xff]   ;;  %v3124_v61 = vld [vmem:[%s3362_s9 + $0x78] sm:$0xff]   ;;  %v485_v1 = vld [vmem:[%s3374_s16] sm:$0xff] }
  0x4f   : > { %2842 = vmatprep.subr.bf16.mxu1 %v3105_v42  ;;  %v3121_v58 = vld [vmem:[%s3362_s9 + $0xf0] sm:$0xff]   ;;  %v3125_v62 = vld [vmem:[%s3362_s9 + $0xf8] sm:$0xff]   ;;  %v486_v2 = vld [vmem:[%s3374_s16 + $0x8] sm:$0xff]  ;;  %v517_v4 = vunpack.c.l.s8.bf16 %v485_v1  ;;  %v518_v6 = vunpack.c.h.s8.bf16 %v485_v1 }
  0x50   : > { %v3122_v59 = vld [vmem:[%s3362_s9 + $0x30] sm:$0xff]   ;;  %v3126_v63 = vld [vmem:[%s3362_s9 + $0x38] sm:$0xff]   ;;  %v519_v5 = vunpack.c.l.s8.bf16 %v486_v2  ;;  %v520_v7 = vunpack.c.h.s8.bf16 %v486_v2  ;;  %v489_v19 = vld [vmem:[%s3374_s16 + $0x20] sm:$0xff] }
  0x51   : > { %2731 = vmatpush3.bf16.msra.mxu0 %v3106_v43  ;;  %v3123_v60 = vld [vmem:[%s3362_s9 + $0xb0] sm:$0xff]   ;;  %v3127_v0 = vld [vmem:[%s3362_s9 + $0xb8] sm:$0xff]   ;;  %v490_v20 = vld [vmem:[%s3374_s16 + $0x28] sm:$0xff]  ;;  %v525_v21 = vunpack.c.l.s8.bf16 %v489_v19  ;;  %v526_v23 = vunpack.c.h.s8.bf16 %v489_v19 }
  0x52   : > { %2843 = vmatpush3.bf16.msra.mxu1 %v3107_v44  ;;  %2732 = vmatprep.subr.bf16.mxu0 %v3108_v45  ;;  %v487_v3 = vld [vmem:[%s3374_s16 + $0x10] sm:$0xff]  ;;  %v488_v8 = vld [vmem:[%s3374_s16 + $0x18] sm:$0xff]  ;;  %v2459_v13 = vcombine.high %v517_v4, %v519_v5  ;;  %v2461_v14 = vcombine.high %v518_v6, %v520_v7  ;;  %v2458_v15 = vcombine.low %v517_v4, %v519_v5  ;;  %v527_v22 = vunpack.c.l.s8.bf16 %v490_v20  ;;  %v493_v39 = vld [vmem:[%s3374_s16 + $0x40] sm:$0xff] }
  0x53   : > { %2844 = vmatprep.subr.bf16.mxu1 %v3109_v46  ;;  %v521_v9 = vunpack.c.l.s8.bf16 %v487_v3  ;;  %v523_v10 = vunpack.c.l.s8.bf16 %v488_v8  ;;  %v522_v11 = vunpack.c.h.s8.bf16 %v487_v3  ;;  %v524_v12 = vunpack.c.h.s8.bf16 %v488_v8  ;;  %v491_v29 = vld [vmem:[%s3374_s16 + $0x30] sm:$0xff]  ;;  %v492_v30 = vld [vmem:[%s3374_s16 + $0x38] sm:$0xff]  ;;  %v494_v40 = vld [vmem:[%s3374_s16 + $0x48] sm:$0xff] }
  0x54   : > { %v2460_v16 = vcombine.low %v518_v6, %v520_v7  ;;  %1221 = vmatprep.mubr.bf16.mxu0 %v2459_v13  ;;  %1382 = vmatprep.mubr.bf16.mxu1 %v2461_v14  ;;  %v528_v24 = vunpack.c.h.s8.bf16 %v490_v20  ;;  %v2467_v27 = vcombine.high %v525_v21, %v527_v22  ;;  %v529_v31 = vunpack.c.l.s8.bf16 %v491_v29  ;;  %v499_v5 = vld [vmem:[%s3374_s16 + $0x70] sm:$0xff]  ;;  %v500_v6 = vld [vmem:[%s3374_s16 + $0x78] sm:$0xff] }
  0x55   : > { %2733 = vmatpush3.bf16.msra.mxu0 %v3110_v47  ;;  %v2463_v17 = vcombine.high %v521_v9, %v523_v10  ;;  %v2465_v18 = vcombine.high %v522_v11, %v524_v12  ;;  %v2462_v25 = vcombine.low %v521_v9, %v523_v10  ;;  %v2464_v26 = vcombine.low %v522_v11, %v524_v12 }
  0x56   : > { %2845 = vmatpush3.bf16.msra.mxu1 %v3111_v48  ;;  %2734 = vmatprep.subr.bf16.mxu0 %v3112_v49  ;;  %v2469_v28 = vcombine.high %v526_v23, %v528_v24  ;;  %v531_v32 = vunpack.c.l.s8.bf16 %v492_v30  ;;  %v530_v33 = vunpack.c.h.s8.bf16 %v491_v29  ;;  %v532_v34 = vunpack.c.h.s8.bf16 %v492_v30  ;;  %v495_v49 = vld [vmem:[%s3374_s16 + $0x50] sm:$0xff] }
  0x57   : > { %2846 = vmatprep.subr.bf16.mxu1 %v3113_v50  ;;  %v2466_v35 = vcombine.low %v525_v21, %v527_v22  ;;  %v2468_v36 = vcombine.low %v526_v23, %v528_v24  ;;  %v533_v41 = vunpack.c.l.s8.bf16 %v493_v39  ;;  %v535_v42 = vunpack.c.l.s8.bf16 %v494_v40  ;;  %v496_v50 = vld [vmem:[%s3374_s16 + $0x58] sm:$0xff] }
  0x58   : > { %v2471_v37 = vcombine.high %v529_v31, %v531_v32  ;;  %v2473_v38 = vcombine.high %v530_v33, %v532_v34  ;;  %v534_v43 = vunpack.c.h.s8.bf16 %v493_v39  ;;  %v536_v44 = vunpack.c.h.s8.bf16 %v494_v40 }
  0x59   : > { %2735 = vmatpush3.bf16.msra.mxu0 %v3114_v51  ;;  %v2470_v45 = vcombine.low %v529_v31, %v531_v32  ;;  %v2472_v46 = vcombine.low %v530_v33, %v532_v34  ;;  %v2475_v47 = vcombine.high %v533_v41, %v535_v42  ;;  %v537_v51 = vunpack.c.l.s8.bf16 %v495_v49 }
  0x5a   : > { %2847 = vmatpush3.bf16.msra.mxu1 %v3115_v52  ;;  %2736 = vmatprep.subr.bf16.mxu0 %v3116_v53  ;;  %v2477_v48 = vcombine.high %v534_v43, %v536_v44  ;;  %v539_v52 = vunpack.c.l.s8.bf16 %v496_v50  ;;  %v538_v53 = vunpack.c.h.s8.bf16 %v495_v49  ;;  %v545_v7 = vunpack.c.l.s8.bf16 %v499_v5 }
  0x5b   : > { %2848 = vmatprep.subr.bf16.mxu1 %v3117_v54  ;;  %v540_v54 = vunpack.c.h.s8.bf16 %v496_v50  ;;  %v547_v8 = vunpack.c.l.s8.bf16 %v500_v6  ;;  %v546_v9 = vunpack.c.h.s8.bf16 %v499_v5  ;;  %v548_v10 = vunpack.c.h.s8.bf16 %v500_v6 }
  0x5c   : > { %v2478_v1 = vcombine.low %v537_v51, %v539_v52 }
  0x5d   : > { %2737 = vmatpush3.bf16.msra.mxu0 %v3118_v55  ;;  %v2474_v55 = vcombine.low %v533_v41, %v535_v42  ;;  %v2480_v2 = vcombine.low %v538_v53, %v540_v54  ;;  %v2487_v13 = vcombine.high %v545_v7, %v547_v8  ;;  %v2489_v14 = vcombine.high %v546_v9, %v548_v10 }
  0x5e   : > { %2849 = vmatpush3.bf16.msra.mxu1 %v3119_v56  ;;  %2738 = vmatprep.subr.bf16.mxu0 %v3120_v57  ;;  %v2476_v56 = vcombine.low %v534_v43, %v536_v44  ;;  %v2479_v57 = vcombine.high %v537_v51, %v539_v52  ;;  %v2486_v21 = vcombine.low %v545_v7, %v547_v8 }
  0x5f   : > { %2850 = vmatprep.subr.bf16.mxu1 %v3121_v58  ;;  %v2481_v58 = vcombine.high %v538_v53, %v540_v54  ;;  %v2488_v22 = vcombine.low %v546_v9, %v548_v10 }
  0x61   : > { %2739 = vmatpush3.bf16.msra.mxu0 %v3122_v59  ;;  %v497_v59 = vld [vmem:[%s3374_s16 + $0x60] sm:$0xff] }
  0x62   : > { %2851 = vmatpush3.bf16.msra.mxu1 %v3123_v60  ;;  %2740 = vmatprep.subr.bf16.mxu0 %v3124_v61  ;;  %v498_v60 = vld [vmem:[%s3374_s16 + $0x68] sm:$0xff]  ;;  %v541_v61 = vunpack.c.l.s8.bf16 %v497_v59 }
  0x63   : > { %2852 = vmatprep.subr.bf16.mxu1 %v3125_v62  ;;  %v543_v62 = vunpack.c.l.s8.bf16 %v498_v60 }
  0x65   : > { %2741 = vmatpush3.bf16.msra.mxu0 %v3126_v63  ;;  %v542_v63 = vunpack.c.h.s8.bf16 %v497_v59  ;;  %v2483_v3 = vcombine.high %v541_v61, %v543_v62  ;;  %v2482_v11 = vcombine.low %v541_v61, %v543_v62 }
  0x66   : > { %2853 = vmatpush3.bf16.msra.mxu1 %v3127_v0  ;;  %v544_v0 = vunpack.c.h.s8.bf16 %v498_v60 }
  0x68   : > { %1222 = vmatmul.mubr.bf16.vlgmr.msra.gmra.mrb[0].mxu0 %v2458_v15  ;;  %v2485_v4 = vcombine.high %v542_v63, %v544_v0  ;;  %v2484_v12 = vcombine.low %v542_v63, %v544_v0  ;;  %v501_v15 = vld [vmem:[%s3374_s16 + $0x80] sm:$0xff] }
  0x69   : > { %1383 = vmatmul.mubr.bf16.vlgmr.msra.gmra.mrb[0].mxu1 %v2460_v16  ;;  %1229 = vmatprep.mubr.bf16.mxu0 %v2463_v17  ;;  %v502_v16 = vld [vmem:[%s3374_s16 + $0x88] sm:$0xff]  ;;  %v549_v17 = vunpack.c.l.s8.bf16 %v501_v15  ;;  %v550_v19 = vunpack.c.h.s8.bf16 %v501_v15 }
  0x6a   : > { %1390 = vmatprep.mubr.bf16.mxu1 %v2465_v18  ;;  %v551_v18 = vunpack.c.l.s8.bf16 %v502_v16  ;;  %v552_v20 = vunpack.c.h.s8.bf16 %v502_v16 }
  0x6c   : > { %v2491_v23 = vcombine.high %v549_v17, %v551_v18  ;;  %v2493_v24 = vcombine.high %v550_v19, %v552_v20  ;;  %v2490_v31 = vcombine.low %v549_v17, %v551_v18  ;;  %v2492_v32 = vcombine.low %v550_v19, %v552_v20 }
  0x70   : > { %1230 = vmatmul.mubr.bf16.gmra.mrb[4].mxu0 %v2462_v25  ;;  %v503_v25 = vld [vmem:[%s3374_s16 + $0x90] sm:$0xff] }
  0x71   : > { %1391 = vmatmul.mubr.bf16.gmra.mrb[4].mxu1 %v2464_v26  ;;  %1237 = vmatprep.mubr.bf16.mxu0 %v2467_v27  ;;  %v504_v26 = vld [vmem:[%s3374_s16 + $0x98] sm:$0xff]  ;;  %v553_v27 = vunpack.c.l.s8.bf16 %v503_v25  ;;  %v554_v29 = vunpack.c.h.s8.bf16 %v503_v25 }
  0x72   : > { %1398 = vmatprep.mubr.bf16.mxu1 %v2469_v28  ;;  %v555_v28 = vunpack.c.l.s8.bf16 %v504_v26  ;;  %v556_v30 = vunpack.c.h.s8.bf16 %v504_v26 }
  0x74   : > { %v2495_v33 = vcombine.high %v553_v27, %v555_v28  ;;  %v2497_v34 = vcombine.high %v554_v29, %v556_v30  ;;  %v2494_v41 = vcombine.low %v553_v27, %v555_v28  ;;  %v2496_v42 = vcombine.low %v554_v29, %v556_v30 }
  0x78   : > { %1238 = vmatmul.mubr.bf16.gmra.mrb[8].mxu0 %v2466_v35  ;;  %v505_v35 = vld [vmem:[%s3374_s16 + $0xa0] sm:$0xff] }
  0x79   : > { %1399 = vmatmul.mubr.bf16.gmra.mrb[8].mxu1 %v2468_v36  ;;  %1245 = vmatprep.mubr.bf16.mxu0 %v2471_v37  ;;  %v506_v36 = vld [vmem:[%s3374_s16 + $0xa8] sm:$0xff]  ;;  %v557_v37 = vunpack.c.l.s8.bf16 %v505_v35  ;;  %v558_v39 = vunpack.c.h.s8.bf16 %v505_v35 }
  0x7a   : > { %1406 = vmatprep.mubr.bf16.mxu1 %v2473_v38  ;;  %v559_v38 = vunpack.c.l.s8.bf16 %v506_v36  ;;  %v560_v40 = vunpack.c.h.s8.bf16 %v506_v36 }
  0x7c   : > { %v2499_v43 = vcombine.high %v557_v37, %v559_v38  ;;  %v2501_v44 = vcombine.high %v558_v39, %v560_v40  ;;  %v2498_v51 = vcombine.low %v557_v37, %v559_v38  ;;  %v2500_v52 = vcombine.low %v558_v39, %v560_v40 }
  0x80   : > { %1246 = vmatmul.mubr.bf16.gmra.mrb[12].mxu0 %v2470_v45  ;;  %v507_v45 = vld [vmem:[%s3374_s16 + $0xb0] sm:$0xff] }
  0x81   : > { %1407 = vmatmul.mubr.bf16.gmra.mrb[12].mxu1 %v2472_v46  ;;  %1253 = vmatprep.mubr.bf16.mxu0 %v2475_v47  ;;  %v508_v46 = vld [vmem:[%s3374_s16 + $0xb8] sm:$0xff]  ;;  %v561_v47 = vunpack.c.l.s8.bf16 %v507_v45  ;;  %v562_v49 = vunpack.c.h.s8.bf16 %v507_v45 }
  0x82   : > { %1414 = vmatprep.mubr.bf16.mxu1 %v2477_v48  ;;  %v563_v48 = vunpack.c.l.s8.bf16 %v508_v46  ;;  %v564_v50 = vunpack.c.h.s8.bf16 %v508_v46 }
  0x84   : > { %v2503_v53 = vcombine.high %v561_v47, %v563_v48  ;;  %v2505_v54 = vcombine.high %v562_v49, %v564_v50  ;;  %v2502_v61 = vcombine.low %v561_v47, %v563_v48  ;;  %v2504_v62 = vcombine.low %v562_v49, %v564_v50  ;;  %v582_v47 = vld [vmem:[#allocation2 + $0x8] sm:$0xff] }
  0x88   : > { %1254 = vmatmul.mubr.bf16.gmra.mrb[16].mxu0 %v2474_v55  ;;  %v509_v55 = vld [vmem:[%s3374_s16 + $0xc0] sm:$0xff] }
  0x89   : > { %1415 = vmatmul.mubr.bf16.gmra.mrb[16].mxu1 %v2476_v56  ;;  %1261 = vmatprep.mubr.bf16.mxu0 %v2479_v57  ;;  %v510_v56 = vld [vmem:[%s3374_s16 + $0xc8] sm:$0xff]  ;;  %v565_v57 = vunpack.c.l.s8.bf16 %v509_v55  ;;  %v566_v59 = vunpack.c.h.s8.bf16 %v509_v55 }
  0x8a   : > { %1422 = vmatprep.mubr.bf16.mxu1 %v2481_v58  ;;  %v567_v58 = vunpack.c.l.s8.bf16 %v510_v56  ;;  %v568_v60 = vunpack.c.h.s8.bf16 %v510_v56 }
  0x8c   : > { %v2507_v63 = vcombine.high %v565_v57, %v567_v58  ;;  %v2509_v0 = vcombine.high %v566_v59, %v568_v60  ;;  %v2506_v7 = vcombine.low %v565_v57, %v567_v58  ;;  %v2508_v8 = vcombine.low %v566_v59, %v568_v60  ;;  %v583_v59 = vld [vmem:[#allocation2 + $0x10] sm:$0xff] }
  0x90   : > { %1262 = vmatmul.mubr.bf16.gmra.mrb[20].mxu0 %v2478_v1  ;;  %v511_v1 = vld [vmem:[%s3374_s16 + $0xd0] sm:$0xff] }
  0x91   : > { %1423 = vmatmul.mubr.bf16.gmra.mrb[20].mxu1 %v2480_v2  ;;  %1269 = vmatprep.mubr.bf16.mxu0 %v2483_v3  ;;  %v512_v2 = vld [vmem:[%s3374_s16 + $0xd8] sm:$0xff]  ;;  %v569_v3 = vunpack.c.l.s8.bf16 %v511_v1  ;;  %v570_v5 = vunpack.c.h.s8.bf16 %v511_v1 }
  0x92   : > { %1430 = vmatprep.mubr.bf16.mxu1 %v2485_v4  ;;  %v571_v4 = vunpack.c.l.s8.bf16 %v512_v2  ;;  %v572_v6 = vunpack.c.h.s8.bf16 %v512_v2  ;;  %v584_v1 = vld [vmem:[#allocation2 + $0x18] sm:$0xff] }
  0x94   : > { %v2511_v9 = vcombine.high %v569_v3, %v571_v4  ;;  %v2513_v10 = vcombine.high %v570_v5, %v572_v6  ;;  %v2510_v17 = vcombine.low %v569_v3, %v571_v4  ;;  %v2512_v18 = vcombine.low %v570_v5, %v572_v6 }
  0x98   : > { %1270 = vmatmul.mubr.bf16.gmra.mrb[24].mxu0 %v2482_v11  ;;  %v513_v11 = vld [vmem:[%s3374_s16 + $0xe0] sm:$0xff] }
  0x99   : > { %1431 = vmatmul.mubr.bf16.gmra.mrb[24].mxu1 %v2484_v12  ;;  %1277 = vmatprep.mubr.bf16.mxu0 %v2487_v13  ;;  %v514_v12 = vld [vmem:[%s3374_s16 + $0xe8] sm:$0xff]  ;;  %v573_v13 = vunpack.c.l.s8.bf16 %v513_v11  ;;  %v574_v15 = vunpack.c.h.s8.bf16 %v513_v11 }
  0x9a   : > { %1438 = vmatprep.mubr.bf16.mxu1 %v2489_v14  ;;  %v575_v14 = vunpack.c.l.s8.bf16 %v514_v12  ;;  %v576_v16 = vunpack.c.h.s8.bf16 %v514_v12 }
  0x9c   : > { %v2515_v19 = vcombine.high %v573_v13, %v575_v14  ;;  %v2517_v20 = vcombine.high %v574_v15, %v576_v16  ;;  %v2514_v27 = vcombine.low %v573_v13, %v575_v14  ;;  %v2516_v28 = vcombine.low %v574_v15, %v576_v16  ;;  %v585_v13 = vld [vmem:[#allocation2 + $0x20] sm:$0xff] }
  0xa0   : > { %1278 = vmatmul.mubr.bf16.gmra.mrb[28].mxu0 %v2486_v21  ;;  %v515_v21 = vld [vmem:[%s3374_s16 + $0xf0] sm:$0xff] }
  0xa1   : > { %1439 = vmatmul.mubr.bf16.gmra.mrb[28].mxu1 %v2488_v22  ;;  %1285 = vmatprep.mubr.bf16.mxu0 %v2491_v23  ;;  %v516_v22 = vld [vmem:[%s3374_s16 + $0xf8] sm:$0xff]  ;;  %v577_v23 = vunpack.c.l.s8.bf16 %v515_v21  ;;  %v578_v25 = vunpack.c.h.s8.bf16 %v515_v21 }
  0xa2   : > { %1446 = vmatprep.mubr.bf16.mxu1 %v2493_v24  ;;  %v579_v24 = vunpack.c.l.s8.bf16 %v516_v22  ;;  %v580_v26 = vunpack.c.h.s8.bf16 %v516_v22 }
  0xa4   : > { %v2519_v29 = vcombine.high %v577_v23, %v579_v24  ;;  %v2521_v30 = vcombine.high %v578_v25, %v580_v26 }
  0xa8   : > { %1286 = vmatmul.mubr.bf16.gmra.mrb[32].mxu0 %v2490_v31  ;;  %v2518_v31 = vcombine.low %v577_v23, %v579_v24 }
  0xa9   : > { %1447 = vmatmul.mubr.bf16.gmra.mrb[32].mxu1 %v2492_v32  ;;  %1293 = vmatprep.mubr.bf16.mxu0 %v2495_v33  ;;  %v2520_v32 = vcombine.low %v578_v25, %v580_v26 }
  0xaa   : > { %1454 = vmatprep.mubr.bf16.mxu1 %v2497_v34 }
  0xb0   : > { %1294 = vmatmul.mubr.bf16.gmra.mrb[36].mxu0 %v2494_v41  ;;  %v581_v41 = vld [vmem:[#allocation2] sm:$0xff] }
  0xb1   : > { %1455 = vmatmul.mubr.bf16.gmra.mrb[36].mxu1 %v2496_v42  ;;  %1301 = vmatprep.mubr.bf16.mxu0 %v2499_v43 }
  0xb2   : > { %1462 = vmatprep.mubr.bf16.mxu1 %v2501_v44 }
  0xb8   : > { %1302 = vmatmul.mubr.bf16.gmra.mrb[40].mxu0 %v2498_v51 }
  0xb9   : > { %1463 = vmatmul.mubr.bf16.gmra.mrb[40].mxu1 %v2500_v52  ;;  %1309 = vmatprep.mubr.bf16.mxu0 %v2503_v53 }
  0xba   : > { %1470 = vmatprep.mubr.bf16.mxu1 %v2505_v54 }
  0xc0   : > { %1310 = vmatmul.mubr.bf16.gmra.mrb[44].mxu0 %v2502_v61 }
  0xc1   : > { %1471 = vmatmul.mubr.bf16.gmra.mrb[44].mxu1 %v2504_v62  ;;  %1317 = vmatprep.mubr.bf16.mxu0 %v2507_v63 }
  0xc2   : > { %1478 = vmatprep.mubr.bf16.mxu1 %v2509_v0 }
  0xc8   : > { %1318 = vmatmul.mubr.bf16.gmra.mrb[48].mxu0 %v2506_v7 }
  0xc9   : > { %1479 = vmatmul.mubr.bf16.gmra.mrb[48].mxu1 %v2508_v8  ;;  %1325 = vmatprep.mubr.bf16.mxu0 %v2511_v9 }
  0xca   : > { %1486 = vmatprep.mubr.bf16.mxu1 %v2513_v10 }
  0xd0   : > { %1326 = vmatmul.mubr.bf16.gmra.mrb[52].mxu0 %v2510_v17 }
  0xd1   : > { %1487 = vmatmul.mubr.bf16.gmra.mrb[52].mxu1 %v2512_v18  ;;  %1333 = vmatprep.mubr.bf16.mxu0 %v2515_v19  ;;  %v586_v19 = vld [vmem:[#allocation2 + $0x28] sm:$0xff] }
  0xd2   : > { %1494 = vmatprep.mubr.bf16.mxu1 %v2517_v20 }
  0xd8   : > { %1334 = vmatmul.mubr.bf16.gmra.mrb[56].mxu0 %v2514_v27 }
  0xd9   : > { %1495 = vmatmul.mubr.bf16.gmra.mrb[56].mxu1 %v2516_v28  ;;  %1341 = vmatprep.mubr.bf16.mxu0 %v2519_v29 }
  0xda   : > { %1502 = vmatprep.mubr.bf16.mxu1 %v2521_v30 }
  0xe0   : > { %1342 = vmatmul.mubr.bf16.gmra.mrb[60].mxu0 %v2518_v31  ;;  %v587_v31 = vld [vmem:[#allocation2 + $0x30] sm:$0xff] }
  0xe1   : > { %1503 = vmatmul.mubr.bf16.gmra.mrb[60].mxu1 %v2520_v32 }
 0x13b   : > { %v2742_v33 = vpop.f32.mrb[0].mxu0 }
 0x13c   : > { %v2854_v34 = vpop.f32.mrb[0].mxu1  ;;  %v2743_v35 = vpop.f32.mrb[1].mxu0 }
 0x13d   : > { %v2855_v36 = vpop.f32.mrb[1].mxu1  ;;  %v2744_v37 = vadd.f32 %v2743_v35, %v2742_v33  ;;  %v2745_v39 = vpop.f32.mrb[2].mxu0 }
 0x13e   : > { %v2856_v38 = vadd.f32 %v2855_v36, %v2854_v34  ;;  %v2857_v40 = vpop.f32.mrb[2].mxu1  ;;  %v2746_v42 = vpop.f32.mrb[3].mxu0 }
 0x13f   : > { %v2858_v43 = vpop.f32.mrb[3].mxu1  ;;  %v2747_v45 = vadd.f32 %v2746_v42, %v2745_v39 }
 0x140   : > { %v1385_v44 = vadd.f32 %v2856_v38, %v2744_v37  ;;  %v2859_v46 = vadd.f32 %v2858_v43, %v2857_v40  ;;  %v588_v37 = vld [vmem:[#allocation2 + $0x38] sm:$0xff] }
 0x142   : > { %v1511_v48 = vadd.f32 %v1385_v44, %v581_v41  ;;  %v1388_v49 = vadd.f32 %v2859_v46, %v2747_v45 }
 0x143   : > { %v2748_v51 = vpop.f32.mrb[4].mxu0 }
 0x144   : > { %1543 = vst [vmem:[#allocation2] sm:$0xff] %v1511_v48  ;;  %v1512_v50 = vadd.f32 %v1388_v49, %v582_v47  ;;  %v2860_v52 = vpop.f32.mrb[4].mxu1  ;;  %v2749_v53 = vpop.f32.mrb[5].mxu0  ;;  %v589_v49 = vld [vmem:[#allocation2 + $0x40] sm:$0xff] }
 0x145   : > { %v2861_v54 = vpop.f32.mrb[5].mxu1  ;;  %v2750_v55 = vadd.f32 %v2749_v53, %v2748_v51  ;;  %v2751_v57 = vpop.f32.mrb[6].mxu0 }
 0x146   : > { %1544 = vst [vmem:[#allocation2 + $0x8] sm:$0xff] %v1512_v50  ;;  %v2862_v56 = vadd.f32 %v2861_v54, %v2860_v52  ;;  %v2863_v58 = vpop.f32.mrb[6].mxu1  ;;  %v2752_v60 = vpop.f32.mrb[7].mxu0 }
 0x147   : > { %v2864_v61 = vpop.f32.mrb[7].mxu1  ;;  %v2753_v63 = vadd.f32 %v2752_v60, %v2751_v57 }
 0x148   : > { %v1393_v62 = vadd.f32 %v2862_v56, %v2750_v55  ;;  %v2865_v0 = vadd.f32 %v2864_v61, %v2863_v58  ;;  %v590_v55 = vld [vmem:[#allocation2 + $0x48] sm:$0xff] }
 0x14a   : > { %v1513_v2 = vadd.f32 %v1393_v62, %v583_v59  ;;  %v1396_v3 = vadd.f32 %v2865_v0, %v2753_v63 }
 0x14b   : > { %v2754_v5 = vpop.f32.mrb[8].mxu0 }
 0x14c   : > { %1545 = vst [vmem:[#allocation2 + $0x10] sm:$0xff] %v1513_v2  ;;  %v1514_v4 = vadd.f32 %v1396_v3, %v584_v1  ;;  %v2866_v6 = vpop.f32.mrb[8].mxu1  ;;  %v2755_v7 = vpop.f32.mrb[9].mxu0  ;;  %v591_v3 = vld [vmem:[#allocation2 + $0x50] sm:$0xff] }
 0x14d   : > { %v2867_v8 = vpop.f32.mrb[9].mxu1  ;;  %v2756_v9 = vadd.f32 %v2755_v7, %v2754_v5  ;;  %v2757_v11 = vpop.f32.mrb[10].mxu0 }
 0x14e   : > { %1546 = vst [vmem:[#allocation2 + $0x18] sm:$0xff] %v1514_v4  ;;  %v2868_v10 = vadd.f32 %v2867_v8, %v2866_v6  ;;  %v2869_v12 = vpop.f32.mrb[10].mxu1  ;;  %v2758_v14 = vpop.f32.mrb[11].mxu0 }
 0x14f   : > { %v2870_v15 = vpop.f32.mrb[11].mxu1  ;;  %v2759_v17 = vadd.f32 %v2758_v14, %v2757_v11 }
 0x150   : > { %v1401_v16 = vadd.f32 %v2868_v10, %v2756_v9  ;;  %v2871_v18 = vadd.f32 %v2870_v15, %v2869_v12  ;;  %v592_v9 = vld [vmem:[#allocation2 + $0x58] sm:$0xff] }
 0x152   : > { %v1515_v20 = vadd.f32 %v1401_v16, %v585_v13  ;;  %v1404_v21 = vadd.f32 %v2871_v18, %v2759_v17 }
 0x153   : > { %v2760_v23 = vpop.f32.mrb[12].mxu0 }
 0x154   : > { %1547 = vst [vmem:[#allocation2 + $0x20] sm:$0xff] %v1515_v20  ;;  %v1516_v22 = vadd.f32 %v1404_v21, %v586_v19  ;;  %v2872_v24 = vpop.f32.mrb[12].mxu1  ;;  %v2761_v25 = vpop.f32.mrb[13].mxu0  ;;  %v593_v21 = vld [vmem:[#allocation2 + $0x60] sm:$0xff] }
 0x155   : > { %v2873_v26 = vpop.f32.mrb[13].mxu1  ;;  %v2762_v27 = vadd.f32 %v2761_v25, %v2760_v23  ;;  %v2763_v29 = vpop.f32.mrb[14].mxu0 }
 0x156   : > { %1548 = vst [vmem:[#allocation2 + $0x28] sm:$0xff] %v1516_v22  ;;  %v2874_v28 = vadd.f32 %v2873_v26, %v2872_v24  ;;  %v2875_v30 = vpop.f32.mrb[14].mxu1  ;;  %v2764_v32 = vpop.f32.mrb[15].mxu0 }
 0x157   : > { %v2876_v33 = vpop.f32.mrb[15].mxu1  ;;  %v2765_v35 = vadd.f32 %v2764_v32, %v2763_v29 }
 0x158   : > { %v1409_v34 = vadd.f32 %v2874_v28, %v2762_v27  ;;  %v2877_v36 = vadd.f32 %v2876_v33, %v2875_v30  ;;  %v594_v27 = vld [vmem:[#allocation2 + $0x68] sm:$0xff] }
 0x15a   : > { %v1517_v38 = vadd.f32 %v1409_v34, %v587_v31  ;;  %v1412_v39 = vadd.f32 %v2877_v36, %v2765_v35 }
 0x15b   : > { %v2766_v41 = vpop.f32.mrb[16].mxu0 }
 0x15c   : > { %1549 = vst [vmem:[#allocation2 + $0x30] sm:$0xff] %v1517_v38  ;;  %v1518_v40 = vadd.f32 %v1412_v39, %v588_v37  ;;  %v2878_v42 = vpop.f32.mrb[16].mxu1  ;;  %v2767_v43 = vpop.f32.mrb[17].mxu0  ;;  %v595_v39 = vld [vmem:[#allocation2 + $0x70] sm:$0xff] }
 0x15d   : > { %v2879_v44 = vpop.f32.mrb[17].mxu1  ;;  %v2768_v45 = vadd.f32 %v2767_v43, %v2766_v41  ;;  %v2769_v47 = vpop.f32.mrb[18].mxu0 }
 0x15e   : > { %1550 = vst [vmem:[#allocation2 + $0x38] sm:$0xff] %v1518_v40  ;;  %v2880_v46 = vadd.f32 %v2879_v44, %v2878_v42  ;;  %v2881_v48 = vpop.f32.mrb[18].mxu1  ;;  %v2770_v50 = vpop.f32.mrb[19].mxu0 }
 0x15f   : > { %v2882_v51 = vpop.f32.mrb[19].mxu1  ;;  %v2771_v53 = vadd.f32 %v2770_v50, %v2769_v47 }
 0x160   : > { %v1417_v52 = vadd.f32 %v2880_v46, %v2768_v45  ;;  %v2883_v54 = vadd.f32 %v2882_v51, %v2881_v48  ;;  %v596_v45 = vld [vmem:[#allocation2 + $0x78] sm:$0xff] }
 0x162   : > { %v1519_v56 = vadd.f32 %v1417_v52, %v589_v49  ;;  %v1420_v57 = vadd.f32 %v2883_v54, %v2771_v53 }
 0x163   : > { %v2772_v59 = vpop.f32.mrb[20].mxu0 }
 0x164   : > { %1551 = vst [vmem:[#allocation2 + $0x40] sm:$0xff] %v1519_v56  ;;  %v1520_v58 = vadd.f32 %v1420_v57, %v590_v55  ;;  %v2884_v60 = vpop.f32.mrb[20].mxu1  ;;  %v2773_v61 = vpop.f32.mrb[21].mxu0  ;;  %v597_v57 = vld [vmem:[#allocation2 + $0x80] sm:$0xff] }
 0x165   : > { %v2885_v62 = vpop.f32.mrb[21].mxu1  ;;  %v2774_v63 = vadd.f32 %v2773_v61, %v2772_v59  ;;  %v2775_v1 = vpop.f32.mrb[22].mxu0 }
 0x166   : > { %1552 = vst [vmem:[#allocation2 + $0x48] sm:$0xff] %v1520_v58  ;;  %v2886_v0 = vadd.f32 %v2885_v62, %v2884_v60  ;;  %v2887_v2 = vpop.f32.mrb[22].mxu1  ;;  %v2776_v4 = vpop.f32.mrb[23].mxu0 }
 0x167   : > { %v2888_v5 = vpop.f32.mrb[23].mxu1  ;;  %v2777_v7 = vadd.f32 %v2776_v4, %v2775_v1 }
 0x168   : > { %v1425_v6 = vadd.f32 %v2886_v0, %v2774_v63  ;;  %v2889_v8 = vadd.f32 %v2888_v5, %v2887_v2  ;;  %v598_v63 = vld [vmem:[#allocation2 + $0x88] sm:$0xff] }
 0x16a   : > { %v1521_v10 = vadd.f32 %v1425_v6, %v591_v3  ;;  %v1428_v11 = vadd.f32 %v2889_v8, %v2777_v7 }
 0x16b   : > { %v2778_v13 = vpop.f32.mrb[24].mxu0 }
 0x16c   : > { %1553 = vst [vmem:[#allocation2 + $0x50] sm:$0xff] %v1521_v10  ;;  %v1522_v12 = vadd.f32 %v1428_v11, %v592_v9  ;;  %v2890_v14 = vpop.f32.mrb[24].mxu1  ;;  %v2779_v15 = vpop.f32.mrb[25].mxu0  ;;  %v599_v11 = vld [vmem:[#allocation2 + $0x90] sm:$0xff] }
 0x16d   : > { %v2891_v16 = vpop.f32.mrb[25].mxu1  ;;  %v2780_v17 = vadd.f32 %v2779_v15, %v2778_v13  ;;  %v2781_v19 = vpop.f32.mrb[26].mxu0 }
 0x16e   : > { %1554 = vst [vmem:[#allocation2 + $0x58] sm:$0xff] %v1522_v12  ;;  %v2892_v18 = vadd.f32 %v2891_v16, %v2890_v14  ;;  %v2893_v20 = vpop.f32.mrb[26].mxu1  ;;  %v2782_v22 = vpop.f32.mrb[27].mxu0 }
 0x16f   : > { %v2894_v23 = vpop.f32.mrb[27].mxu1  ;;  %v2783_v25 = vadd.f32 %v2782_v22, %v2781_v19 }
 0x170   : > { %v1433_v24 = vadd.f32 %v2892_v18, %v2780_v17  ;;  %v2895_v26 = vadd.f32 %v2894_v23, %v2893_v20  ;;  %v600_v17 = vld [vmem:[#allocation2 + $0x98] sm:$0xff] }
 0x172   : > { %v1523_v28 = vadd.f32 %v1433_v24, %v593_v21  ;;  %v1436_v29 = vadd.f32 %v2895_v26, %v2783_v25 }
 0x173   : > { %v2784_v31 = vpop.f32.mrb[28].mxu0 }
 0x174   : > { %1555 = vst [vmem:[#allocation2 + $0x60] sm:$0xff] %v1523_v28  ;;  %v1524_v30 = vadd.f32 %v1436_v29, %v594_v27  ;;  %v2896_v32 = vpop.f32.mrb[28].mxu1  ;;  %v2785_v33 = vpop.f32.mrb[29].mxu0  ;;  %v601_v29 = vld [vmem:[#allocation2 + $0xa0] sm:$0xff] }
 0x175   : > { %v2897_v34 = vpop.f32.mrb[29].mxu1  ;;  %v2786_v35 = vadd.f32 %v2785_v33, %v2784_v31  ;;  %v2787_v37 = vpop.f32.mrb[30].mxu0 }
 0x176   : > { %1556 = vst [vmem:[#allocation2 + $0x68] sm:$0xff] %v1524_v30  ;;  %v2898_v36 = vadd.f32 %v2897_v34, %v2896_v32  ;;  %v2899_v38 = vpop.f32.mrb[30].mxu1  ;;  %v2788_v40 = vpop.f32.mrb[31].mxu0 }
 0x177   : > { %v2900_v41 = vpop.f32.mrb[31].mxu1  ;;  %v2789_v43 = vadd.f32 %v2788_v40, %v2787_v37 }
 0x178   : > { %v1441_v42 = vadd.f32 %v2898_v36, %v2786_v35  ;;  %v2901_v44 = vadd.f32 %v2900_v41, %v2899_v38  ;;  %v602_v35 = vld [vmem:[#allocation2 + $0xa8] sm:$0xff] }
 0x17a   : > { %v1525_v46 = vadd.f32 %v1441_v42, %v595_v39  ;;  %v1444_v47 = vadd.f32 %v2901_v44, %v2789_v43 }
 0x17b   : > { %v2790_v49 = vpop.f32.mrb[32].mxu0 }
 0x17c   : > { %1557 = vst [vmem:[#allocation2 + $0x70] sm:$0xff] %v1525_v46  ;;  %v1526_v48 = vadd.f32 %v1444_v47, %v596_v45  ;;  %v2902_v50 = vpop.f32.mrb[32].mxu1  ;;  %v2791_v51 = vpop.f32.mrb[33].mxu0  ;;  %v603_v47 = vld [vmem:[#allocation2 + $0xb0] sm:$0xff] }
 0x17d   : > { %v2903_v52 = vpop.f32.mrb[33].mxu1  ;;  %v2792_v53 = vadd.f32 %v2791_v51, %v2790_v49  ;;  %v2793_v55 = vpop.f32.mrb[34].mxu0 }
 0x17e   : > { %1558 = vst [vmem:[#allocation2 + $0x78] sm:$0xff] %v1526_v48  ;;  %v2904_v54 = vadd.f32 %v2903_v52, %v2902_v50  ;;  %v2905_v56 = vpop.f32.mrb[34].mxu1  ;;  %v2794_v58 = vpop.f32.mrb[35].mxu0 }
 0x17f   : > { %v2906_v59 = vpop.f32.mrb[35].mxu1  ;;  %v2795_v61 = vadd.f32 %v2794_v58, %v2793_v55 }
 0x180   : > { %v1449_v60 = vadd.f32 %v2904_v54, %v2792_v53  ;;  %v2907_v62 = vadd.f32 %v2906_v59, %v2905_v56  ;;  %v604_v53 = vld [vmem:[#allocation2 + $0xb8] sm:$0xff] }
 0x182   : > { %v1527_v0 = vadd.f32 %v1449_v60, %v597_v57  ;;  %v1452_v1 = vadd.f32 %v2907_v62, %v2795_v61 }
 0x183   : > { %v2796_v3 = vpop.f32.mrb[36].mxu0 }
 0x184   : > { %1559 = vst [vmem:[#allocation2 + $0x80] sm:$0xff] %v1527_v0  ;;  %v1528_v2 = vadd.f32 %v1452_v1, %v598_v63  ;;  %v2908_v4 = vpop.f32.mrb[36].mxu1  ;;  %v2797_v5 = vpop.f32.mrb[37].mxu0  ;;  %v605_v1 = vld [vmem:[#allocation2 + $0xc0] sm:$0xff] }
 0x185   : > { %v2909_v6 = vpop.f32.mrb[37].mxu1  ;;  %v2798_v7 = vadd.f32 %v2797_v5, %v2796_v3  ;;  %v2799_v9 = vpop.f32.mrb[38].mxu0 }
 0x186   : > { %1560 = vst [vmem:[#allocation2 + $0x88] sm:$0xff] %v1528_v2  ;;  %v2910_v8 = vadd.f32 %v2909_v6, %v2908_v4  ;;  %v2911_v10 = vpop.f32.mrb[38].mxu1  ;;  %v2800_v12 = vpop.f32.mrb[39].mxu0 }
 0x187   : > { %v2912_v13 = vpop.f32.mrb[39].mxu1  ;;  %v2801_v15 = vadd.f32 %v2800_v12, %v2799_v9 }
 0x188   : > { %v1457_v14 = vadd.f32 %v2910_v8, %v2798_v7  ;;  %v2913_v16 = vadd.f32 %v2912_v13, %v2911_v10  ;;  %v606_v7 = vld [vmem:[#allocation2 + $0xc8] sm:$0xff] }
 0x18a   : > { %v1529_v18 = vadd.f32 %v1457_v14, %v599_v11  ;;  %v1460_v19 = vadd.f32 %v2913_v16, %v2801_v15 }
 0x18b   : > { %v2802_v21 = vpop.f32.mrb[40].mxu0 }
 0x18c   : > { %1561 = vst [vmem:[#allocation2 + $0x90] sm:$0xff] %v1529_v18  ;;  %v1530_v20 = vadd.f32 %v1460_v19, %v600_v17  ;;  %v2914_v22 = vpop.f32.mrb[40].mxu1  ;;  %v2803_v23 = vpop.f32.mrb[41].mxu0  ;;  %v607_v19 = vld [vmem:[#allocation2 + $0xd0] sm:$0xff] }
 0x18d   : > { %v2915_v24 = vpop.f32.mrb[41].mxu1  ;;  %v2804_v25 = vadd.f32 %v2803_v23, %v2802_v21  ;;  %v2805_v27 = vpop.f32.mrb[42].mxu0 }
 0x18e   : > { %1562 = vst [vmem:[#allocation2 + $0x98] sm:$0xff] %v1530_v20  ;;  %v2916_v26 = vadd.f32 %v2915_v24, %v2914_v22  ;;  %v2917_v28 = vpop.f32.mrb[42].mxu1  ;;  %v2806_v30 = vpop.f32.mrb[43].mxu0 }
 0x18f   : > { %v2918_v31 = vpop.f32.mrb[43].mxu1  ;;  %v2807_v33 = vadd.f32 %v2806_v30, %v2805_v27 }
 0x190   : > { %v1465_v32 = vadd.f32 %v2916_v26, %v2804_v25  ;;  %v2919_v34 = vadd.f32 %v2918_v31, %v2917_v28  ;;  %v608_v25 = vld [vmem:[#allocation2 + $0xd8] sm:$0xff] }
 0x192   : > { %v1531_v36 = vadd.f32 %v1465_v32, %v601_v29  ;;  %v1468_v37 = vadd.f32 %v2919_v34, %v2807_v33 }
 0x193   : > { %v2808_v39 = vpop.f32.mrb[44].mxu0 }
 0x194   : > { %1563 = vst [vmem:[#allocation2 + $0xa0] sm:$0xff] %v1531_v36  ;;  %v1532_v38 = vadd.f32 %v1468_v37, %v602_v35  ;;  %v2920_v40 = vpop.f32.mrb[44].mxu1  ;;  %v2809_v41 = vpop.f32.mrb[45].mxu0  ;;  %v609_v37 = vld [vmem:[#allocation2 + $0xe0] sm:$0xff] }
 0x195   : > { %v2921_v42 = vpop.f32.mrb[45].mxu1  ;;  %v2810_v43 = vadd.f32 %v2809_v41, %v2808_v39  ;;  %v2811_v45 = vpop.f32.mrb[46].mxu0 }
 0x196   : > { %1564 = vst [vmem:[#allocation2 + $0xa8] sm:$0xff] %v1532_v38  ;;  %v2922_v44 = vadd.f32 %v2921_v42, %v2920_v40  ;;  %v2923_v46 = vpop.f32.mrb[46].mxu1  ;;  %v2812_v48 = vpop.f32.mrb[47].mxu0 }
 0x197   : > { %v2924_v49 = vpop.f32.mrb[47].mxu1  ;;  %v2813_v51 = vadd.f32 %v2812_v48, %v2811_v45 }
 0x198   : > { %v1473_v50 = vadd.f32 %v2922_v44, %v2810_v43  ;;  %v2925_v52 = vadd.f32 %v2924_v49, %v2923_v46  ;;  %v610_v43 = vld [vmem:[#allocation2 + $0xe8] sm:$0xff] }
 0x19a   : > { %v1533_v54 = vadd.f32 %v1473_v50, %v603_v47  ;;  %v1476_v55 = vadd.f32 %v2925_v52, %v2813_v51 }
 0x19b   : > { %v2814_v57 = vpop.f32.mrb[48].mxu0 }
 0x19c   : > { %1565 = vst [vmem:[#allocation2 + $0xb0] sm:$0xff] %v1533_v54  ;;  %v1534_v56 = vadd.f32 %v1476_v55, %v604_v53  ;;  %v2926_v58 = vpop.f32.mrb[48].mxu1  ;;  %v2815_v59 = vpop.f32.mrb[49].mxu0  ;;  %v611_v55 = vld [vmem:[#allocation2 + $0xf0] sm:$0xff] }
 0x19d   : > { %v2927_v60 = vpop.f32.mrb[49].mxu1  ;;  %v2816_v61 = vadd.f32 %v2815_v59, %v2814_v57  ;;  %v2817_v63 = vpop.f32.mrb[50].mxu0 }
 0x19e   : > { %1566 = vst [vmem:[#allocation2 + $0xb8] sm:$0xff] %v1534_v56  ;;  %v2928_v62 = vadd.f32 %v2927_v60, %v2926_v58  ;;  %v2929_v0 = vpop.f32.mrb[50].mxu1  ;;  %v2818_v2 = vpop.f32.mrb[51].mxu0 }
 0x19f   : > { %v2930_v3 = vpop.f32.mrb[51].mxu1  ;;  %v2819_v5 = vadd.f32 %v2818_v2, %v2817_v63  ;;  %v1579_v2 = vld [vmem:[%s3367_s14] sm:$0xff] (!%p2554_p13) }
 0x1a0   : > { %v1481_v4 = vadd.f32 %v2928_v62, %v2816_v61  ;;  %v2931_v6 = vadd.f32 %v2930_v3, %v2929_v0  ;;  %v612_v61 = vld [vmem:[#allocation2 + $0xf8] sm:$0xff]  ;;  %v3195_v3 = vmov (!%p2554_p13), 0  }
 0x1a1   : > { %3129 = vset.pattern.permute.xlu1 (!%p2554_p13), %v3195_v3  ;;  %3128 = vset.pattern.permute.xlu0 (!%p2554_p13), %v3195_v3 }
 0x1a2   : > { %v1535_v8 = vadd.f32 %v1481_v4, %v605_v1  ;;  %v1484_v9 = vadd.f32 %v2931_v6, %v2819_v5  ;;  %v1595_v1 = vld [vmem:[%s3367_s14 + $0x80] sm:$0xff] (!%p2554_p13)  ;;  %1645 = vperm.xlu0 (!%p2554_p13), %3128, %v1579_v2   ;;  %v1596_v4 = vld [vmem:[%s3367_s14 + $0x88] sm:$0xff] (!%p2554_p13)  ;;  %v1582_v6 = vld [vmem:[%s3367_s14 + $0x18] sm:$0xff] (!%p2554_p13) }
 0x1a3   : > { %v2820_v11 = vpop.f32.mrb[52].mxu0  ;;  %1725 = vperm.xlu1 (!%p2554_p13), %3129, %v1595_v1   ;;  %v1580_v5 = vld [vmem:[%s3367_s14 + $0x8] sm:$0xff] (!%p2554_p13) }
 0x1a4   : > { %1567 = vst [vmem:[#allocation2 + $0xc0] sm:$0xff] %v1535_v8  ;;  %v1536_v10 = vadd.f32 %v1484_v9, %v606_v7  ;;  %v2932_v12 = vpop.f32.mrb[52].mxu1  ;;  %v2821_v13 = vpop.f32.mrb[53].mxu0  ;;  %v1581_v7 = vld [vmem:[%s3367_s14 + $0x10] sm:$0xff] (!%p2554_p13)  ;;  %v1598_v8 = vld [vmem:[%s3367_s14 + $0x98] sm:$0xff] (!%p2554_p13) }
 0x1a5   : > { %v2933_v14 = vpop.f32.mrb[53].mxu1  ;;  %v2822_v15 = vadd.f32 %v2821_v13, %v2820_v11  ;;  %v2823_v17 = vpop.f32.mrb[54].mxu0  ;;  %v1597_v9 = vld [vmem:[%s3367_s14 + $0x90] sm:$0xff] (!%p2554_p13)  ;;  %v3131_v11 = vld [vmem:[%s3704_s4 + $0x8] sm:$0xff] (!%p2554_p13)   ;;  %v1583_v13 = vld [vmem:[%s3367_s14 + $0x20] sm:$0xff] (!%p2554_p13) }
 0x1a6   : > { %1568 = vst [vmem:[#allocation2 + $0xc8] sm:$0xff] %v1536_v10  ;;  %v2934_v16 = vadd.f32 %v2933_v14, %v2932_v12  ;;  %v2935_v18 = vpop.f32.mrb[54].mxu1  ;;  %v2824_v20 = vpop.f32.mrb[55].mxu0  ;;  %1650 = vperm.xlu0 (!%p2554_p13), %3128, %v1580_v5   ;;  %v3130_v10 = vld [vmem:[%s3704_s4] sm:$0xff] (!%p2554_p13)   ;;  %v1584_v12 = vld [vmem:[%s3367_s14 + $0x28] sm:$0xff] (!%p2554_p13)  ;;  %v3132_v14 = vld [vmem:[%s3704_s4 + $0x10] sm:$0xff] (!%p2554_p13)  }
 0x1a7   : > { %v2936_v21 = vpop.f32.mrb[55].mxu1  ;;  %v2825_v23 = vadd.f32 %v2824_v20, %v2823_v17  ;;  %1730 = vperm.xlu1 (!%p2554_p13), %3129, %v1596_v4   ;;  %2974 = vmatprep.subr.bf16.mxu0 (!%p2554_p13), %v3130_v10  ;;  %v3133_v17 = vld [vmem:[%s3704_s4 + $0x18] sm:$0xff] (!%p2554_p13)   ;;  %v3134_v20 = vld [vmem:[%s3704_s4 + $0x20] sm:$0xff] (!%p2554_p13)  }
 0x1a8   : > { %v1489_v22 = vadd.f32 %v2934_v16, %v2822_v15  ;;  %v2937_v24 = vadd.f32 %v2936_v21, %v2935_v18  ;;  %3022 = vmatprep.subr.bf16.mxu1 (!%p2554_p13), %v3130_v10  ;;  %2975 = vmatpush3.bf16.msra.mxu0 (!%p2554_p13), %v3130_v10  ;;  %v1600_v15 = vld [vmem:[%s3367_s14 + $0xa8] sm:$0xff] (!%p2554_p13)  ;;  %v1599_v16 = vld [vmem:[%s3367_s14 + $0xa0] sm:$0xff] (!%p2554_p13)  ;;  %v1586_v18 = vld [vmem:[%s3367_s14 + $0x38] sm:$0xff] (!%p2554_p13) }
 0x1a9   : > { %3030 = vmatpush3.bf16.msra.mxu1 (!%p2554_p13), %v3130_v10  ;;  %2976 = vmatprep.subr.bf16.mxu0 (!%p2554_p13), %v3131_v11  ;;  %v1602_v21 = vld [vmem:[%s3367_s14 + $0xb8] sm:$0xff] (!%p2554_p13) }
 0x1aa   : > { %v1537_v26 = vadd.f32 %v1489_v22, %v607_v19  ;;  %v1492_v27 = vadd.f32 %v2937_v24, %v2825_v23  ;;  %1655 = vperm.xlu0 (!%p2554_p13), %3128, %v1581_v7   ;;  %3023 = vmatprep.subr.bf16.mxu1 (!%p2554_p13), %v3131_v11  ;;  %v1585_v19 = vld [vmem:[%s3367_s14 + $0x30] sm:$0xff] (!%p2554_p13)  ;;  %v3135_v23 = vld [vmem:[%s3704_s4 + $0x28] sm:$0xff] (!%p2554_p13)   ;;  %v1630_v5 = vld [vmem:[#allocation2 + $0x98] sm:$0xff] (!%p2554_p13) }
 0x1ab   : > { %v2826_v29 = vpop.f32.mrb[56].mxu0  ;;  %1660 = vperm.xlu1 (!%p2554_p13), %3129, %v1582_v6   ;;  %v1601_v22 = vld [vmem:[%s3367_s14 + $0xb0] sm:$0xff] (!%p2554_p13)  ;;  %v1588_v24 = vld [vmem:[%s3367_s14 + $0x48] sm:$0xff] (!%p2554_p13) }
 0x1ac   : > { %1569 = vst [vmem:[#allocation2 + $0xd0] sm:$0xff] %v1537_v26  ;;  %v1538_v28 = vadd.f32 %v1492_v27, %v608_v25  ;;  %v2938_v30 = vpop.f32.mrb[56].mxu1  ;;  %v2827_v31 = vpop.f32.mrb[57].mxu0  ;;  %2977 = vmatpush3.bf16.msra.mxu0 (!%p2554_p13), %v3131_v11  ;;  %v1587_v25 = vld [vmem:[%s3367_s14 + $0x40] sm:$0xff] (!%p2554_p13)  ;;  %v3136_v26 = vld [vmem:[%s3704_s4 + $0x30] sm:$0xff] (!%p2554_p13)   ;;  %v1604_v27 = vld [vmem:[%s3367_s14 + $0xc8] sm:$0xff] (!%p2554_p13) }
 0x1ad   : > { %v2939_v32 = vpop.f32.mrb[57].mxu1  ;;  %v2828_v33 = vadd.f32 %v2827_v31, %v2826_v29  ;;  %v2829_v35 = vpop.f32.mrb[58].mxu0  ;;  %3031 = vmatpush3.bf16.msra.mxu1 (!%p2554_p13), %v3131_v11  ;;  %2978 = vmatprep.subr.bf16.mxu0 (!%p2554_p13), %v3132_v14  ;;  %v3137_v29 = vld [vmem:[%s3704_s4 + $0x38] sm:$0xff] (!%p2554_p13)   ;;  %v1589_v31 = vld [vmem:[%s3367_s14 + $0x50] sm:$0xff] (!%p2554_p13) }
 0x1ae   : > { %1570 = vst [vmem:[#allocation2 + $0xd8] sm:$0xff] %v1538_v28  ;;  %v2940_v34 = vadd.f32 %v2939_v32, %v2938_v30  ;;  %v2941_v36 = vpop.f32.mrb[58].mxu1  ;;  %v2830_v38 = vpop.f32.mrb[59].mxu0  ;;  %1735 = vperm.xlu0 (!%p2554_p13), %3128, %v1597_v9   ;;  %3024 = vmatprep.subr.bf16.mxu1 (!%p2554_p13), %v3132_v14  ;;  %v1603_v28 = vld [vmem:[%s3367_s14 + $0xc0] sm:$0xff] (!%p2554_p13)  ;;  %v1590_v30 = vld [vmem:[%s3367_s14 + $0x58] sm:$0xff] (!%p2554_p13)  ;;  %v1629_v6 = vld [vmem:[#allocation2 + $0x90] sm:$0xff] (!%p2554_p13) }
 0x1af   : > { %v2942_v39 = vpop.f32.mrb[59].mxu1  ;;  %v2831_v41 = vadd.f32 %v2830_v38, %v2829_v35  ;;  %1740 = vperm.xlu1 (!%p2554_p13), %3129, %v1598_v8   ;;  %v1606_v32 = vld [vmem:[%s3367_s14 + $0xd8] sm:$0xff] (!%p2554_p13)  ;;  %v1591_v35 = vld [vmem:[%s3367_s14 + $0x60] sm:$0xff] (!%p2554_p13) }
 0x1b0   : > { %v1497_v40 = vadd.f32 %v2940_v34, %v2828_v33  ;;  %v2943_v42 = vadd.f32 %v2942_v39, %v2941_v36  ;;  %2979 = vmatpush3.bf16.msra.mxu0 (!%p2554_p13), %v3132_v14  ;;  %v1605_v33 = vld [vmem:[%s3367_s14 + $0xd0] sm:$0xff] (!%p2554_p13)  ;;  %v1592_v34 = vld [vmem:[%s3367_s14 + $0x68] sm:$0xff] (!%p2554_p13)  ;;  %v1594_v38 = vld [vmem:[%s3367_s14 + $0x78] sm:$0xff] (!%p2554_p13) }
 0x1b1   : > { %3032 = vmatpush3.bf16.msra.mxu1 (!%p2554_p13), %v3132_v14  ;;  %2980 = vmatprep.subr.bf16.mxu0 (!%p2554_p13), %v3133_v17  ;;  %v1608_v36 = vld [vmem:[%s3367_s14 + $0xe8] sm:$0xff] (!%p2554_p13)  ;;  %v1593_v39 = vld [vmem:[%s3367_s14 + $0x70] sm:$0xff] (!%p2554_p13) }
 0x1b2   : > { %v1539_v44 = vadd.f32 %v1497_v40, %v609_v37  ;;  %v1500_v45 = vadd.f32 %v2943_v42, %v2831_v41  ;;  %1665 = vperm.xlu0 (!%p2554_p13), %3128, %v1583_v13   ;;  %3025 = vmatprep.subr.bf16.mxu1 (!%p2554_p13), %v3133_v17  ;;  %v1607_v37 = vld [vmem:[%s3367_s14 + $0xe0] sm:$0xff] (!%p2554_p13)  ;;  %v1610_v40 = vld [vmem:[%s3367_s14 + $0xf8] sm:$0xff] (!%p2554_p13)  ;;  %v1609_v41 = vld [vmem:[%s3367_s14 + $0xf0] sm:$0xff] (!%p2554_p13) }
 0x1b3   : > { %v2832_v47 = vpop.f32.mrb[60].mxu0  ;;  %1670 = vperm.xlu1 (!%p2554_p13), %3129, %v1584_v12   ;;  %v1627_v42 = vld [vmem:[#allocation2 + $0x80] sm:$0xff] (!%p2554_p13) }
 0x1b4   : > { %1571 = vst [vmem:[#allocation2 + $0xe0] sm:$0xff] %v1539_v44  ;;  %v1540_v46 = vadd.f32 %v1500_v45, %v610_v43  ;;  %v2944_v48 = vpop.f32.mrb[60].mxu1  ;;  %v2833_v49 = vpop.f32.mrb[61].mxu0  ;;  %2981 = vmatpush3.bf16.msra.mxu0 (!%p2554_p13), %v3133_v17  ;;  %v1611_v43 = vld [vmem:[#allocation2] sm:$0xff] (!%p2554_p13) }
 0x1b5   : > { %v2945_v50 = vpop.f32.mrb[61].mxu1  ;;  %v2834_v51 = vadd.f32 %v2833_v49, %v2832_v47  ;;  %v2835_v53 = vpop.f32.mrb[62].mxu0  ;;  %3033 = vmatpush3.bf16.msra.mxu1 (!%p2554_p13), %v3133_v17  ;;  %2982 = vmatprep.subr.bf16.mxu0 (!%p2554_p13), %v3134_v20  ;;  %v1628_v49 = vld [vmem:[#allocation2 + $0x88] sm:$0xff] (!%p2554_p13) }
 0x1b6   : > { %1572 = vst [vmem:[#allocation2 + $0xe8] sm:$0xff] %v1540_v46  ;;  %v2946_v52 = vadd.f32 %v2945_v50, %v2944_v48  ;;  %v2947_v54 = vpop.f32.mrb[62].mxu1  ;;  %v2836_v56 = vpop.f32.mrb[63].mxu0  ;;  %1745 = vperm.xlu0 (!%p2554_p13), %3128, %v1599_v16   ;;  %3026 = vmatprep.subr.bf16.mxu1 (!%p2554_p13), %v3134_v20  ;;  %v3507_v48 = vld [vmem:[%s3703_s3] ss:$0 sm:$0xff] (!%p2554_p13)  ;;  %v1612_v50 = vld [vmem:[#allocation2 + $0x8] sm:$0xff] (!%p2554_p13) }
 0x1b7   : > { %v2948_v57 = vpop.f32.mrb[63].mxu1  ;;  %v2837_v59 = vadd.f32 %v2836_v56, %v2835_v53  ;;  %1750 = vperm.xlu1 (!%p2554_p13), %3129, %v1600_v15   ;;  %v1616_v17 = vld [vmem:[#allocation2 + $0x28] sm:$0xff] (!%p2554_p13) }
 0x1b8   : > { %v1505_v58 = vadd.f32 %v2946_v52, %v2834_v51  ;;  %v2949_v60 = vadd.f32 %v2948_v57, %v2947_v54  ;;  %1578 = sbr.rel (%p2554_p13) target bundleno = 835 (0x343), region = 86  ;;  %2983 = vmatpush3.bf16.msra.mxu0 (!%p2554_p13), %v3134_v20  ;;  %v1614_v57 = vld [vmem:[#allocation2 + $0x18] sm:$0xff] (!%p2554_p13) }
 0x1b9   : > { %3034 = vmatpush3.bf16.msra.mxu1 (!%p2554_p13), %v3134_v20  ;;  %2984 = vmatprep.subr.bf16.mxu0 (!%p2554_p13), %v3135_v23 }
 0x1ba   : > { %v1541_v62 = vadd.f32 %v1505_v58, %v611_v55  ;;  %v1508_v63 = vadd.f32 %v2949_v60, %v2837_v59  ;;  %1675 = vperm.xlu0 (!%p2554_p13), %3128, %v1585_v19   ;;  %3027 = vmatprep.subr.bf16.mxu1 (!%p2554_p13), %v3135_v23  ;;  %v1613_v58 = vld [vmem:[#allocation2 + $0x10] sm:$0xff] (!%p2554_p13) }
 0x1bb   : > { %1680 = vperm.xlu1 (!%p2554_p13), %3129, %v1586_v18   ;;  %v1615_v18 = vld [vmem:[#allocation2 + $0x20] sm:$0xff] (!%p2554_p13) }
 0x1bc   : > { %1573 = vst [vmem:[#allocation2 + $0xf0] sm:$0xff] %v1541_v62  ;;  %v1542_v0 = vadd.f32 %v1508_v63, %v612_v61  ;;  %2985 = vmatpush3.bf16.msra.mxu0 (!%p2554_p13), %v3135_v23 }
 0x1bd   : > { %3035 = vmatpush3.bf16.msra.mxu1 (!%p2554_p13), %v3135_v23  ;;  %2986 = vmatprep.subr.bf16.mxu0 (!%p2554_p13), %v3136_v26 }
 0x1be   : > { %1574 = vst [vmem:[#allocation2 + $0xf8] sm:$0xff] %v1542_v0  ;;  %1755 = vperm.xlu0 (!%p2554_p13), %3128, %v1601_v22   ;;  %3028 = vmatprep.subr.bf16.mxu1 (!%p2554_p13), %v3136_v26 }
 0x1bf   : > { %1760 = vperm.xlu1 %3129, %v1602_v21  }
 0x1c0   : > { %2987 = vmatpush3.bf16.msra.mxu0 %v3136_v26 }
 0x1c1   : > { %3036 = vmatpush3.bf16.msra.mxu1 %v3136_v26  ;;  %2988 = vmatprep.subr.bf16.mxu0 %v3137_v29 }
 0x1c2   : > { %1685 = vperm.xlu0 %3128, %v1587_v25   ;;  %3029 = vmatprep.subr.bf16.mxu1 %v3137_v29 }
 0x1c3   : > { %1690 = vperm.xlu1 %3129, %v1588_v24  }
 0x1c4   : > { %2989 = vmatpush3.bf16.msra.mxu0 %v3137_v29 }
 0x1c5   : > { %3037 = vmatpush3.bf16.msra.mxu1 %v3137_v29  ;;  %v1631_v29 = vld [vmem:[#allocation2 + $0xa0] sm:$0xff] }
 0x1c6   : > { %1765 = vperm.xlu0 %3128, %v1603_v28   ;;  %v1632_v28 = vld [vmem:[#allocation2 + $0xa8] sm:$0xff] }
 0x1c7   : > { %1770 = vperm.xlu1 %3129, %v1604_v27  }
 0x1ca   : > { %1695 = vperm.xlu0 %3128, %v1589_v31  }
 0x1cb   : > { %1700 = vperm.xlu1 %3129, %v1590_v30  }
 0x1ce   : > { %1775 = vperm.xlu0 %3128, %v1605_v33  }
 0x1cf   : > { %1780 = vperm.xlu1 %3129, %v1606_v32  }
 0x1d2   : > { %1705 = vperm.xlu0 %3128, %v1591_v35  }
 0x1d3   : > { %1710 = vperm.xlu1 %3129, %v1592_v34  }
 0x1d6   : > { %1785 = vperm.xlu0 %3128, %v1607_v37  }
 0x1d7   : > { %1790 = vperm.xlu1 %3129, %v1608_v36  }
 0x1da   : > { %1715 = vperm.xlu0 %3128, %v1593_v39   ;;  %v1618_v39 = vld [vmem:[#allocation2 + $0x38] sm:$0xff] }
 0x1db   : > { %1720 = vperm.xlu1 %3129, %v1594_v38  }
 0x1de   : > { %1795 = vperm.xlu0 %3128, %v1609_v41  }
 0x1df   : > { %1800 = vperm.xlu1 %3129, %v1610_v40   ;;  %v1617_v40 = vld [vmem:[#allocation2 + $0x30] sm:$0xff] }
 0x221   : > { %v3500_v45 = vpop.permute.xlu0 %1645 }
 0x222   : > { %v3498_v44 = vpop.permute.xlu1 %1725  ;;  %v1803_v47 = vmul.f32 %v3500_v45, %v1611_v43 }
 0x223   : > { %v1819_v46 = vmul.f32 %v3498_v44, %v1627_v42 }
 0x224   : > { %v1842_v53 = vadd.f32 %v3507_v48, %v1803_v47 }
 0x225   : > { %v3511_v52 = vpop.permute.xlu0 %1650  ;;  %v1858_v54 = vadd.f32 %v3507_v48, %v1819_v46 }
 0x226   : > { %v3509_v51 = vpop.permute.xlu1 %1730  ;;  %v1804_v56 = vmul.f32 %v3511_v52, %v1612_v50  ;;  %v1874_v63 = vmax.f32 %v1842_v53, 0.0 }
 0x227   : > { %v1820_v55 = vmul.f32 %v3509_v51, %v1628_v49  ;;  %v1890_v0 = vmax.f32 %v1858_v54, 0.0 }
 0x228   : > { %v1843_v59 = vadd.f32 %v3507_v48, %v1804_v56  ;;  %v1633_v56 = vld [vmem:[#allocation2 + $0xb0] sm:$0xff] }
 0x229   : > { %v1859_v60 = vadd.f32 %v3507_v48, %v1820_v55  ;;  %v3521_v62 = vpop.permute.xlu0 %1655  ;;  %v1634_v55 = vld [vmem:[#allocation2 + $0xb8] sm:$0xff] }
 0x22a   : > { %v3519_v61 = vpop.permute.xlu1 %1660  ;;  %v1805_v2 = vmul.f32 %v3521_v62, %v1613_v58  ;;  %v1875_v3 = vmax.f32 %v1843_v59, 0.0 }
 0x22b   : > { %v1806_v1 = vmul.f32 %v3519_v61, %v1614_v57  ;;  %v1891_v4 = vmax.f32 %v1859_v60, 0.0 }
 0x22c   : > { %v1844_v8 = vadd.f32 %v3507_v48, %v1805_v2  ;;  %v1906_v9 = vpack.c.bf16 %v1875_v3, %v1874_v63 }
 0x22d   : > { %v1845_v7 = vadd.f32 %v3507_v48, %v1806_v1  ;;  %v1914_v10 = vpack.c.bf16 %v1891_v4, %v1890_v0  ;;  %v3529_v12 = vpop.permute.xlu0 %1735  ;;  %v1620_v4 = vld [vmem:[#allocation2 + $0x48] sm:$0xff] }
 0x22e   : > { %v3527_v11 = vpop.permute.xlu1 %1740  ;;  %v1876_v14 = vmax.f32 %v1844_v8, 0.0  ;;  %v1821_v16 = vmul.f32 %v3529_v12, %v1629_v6  ;;  %2990 = vmatprep.mubr.bf16.mxu0 %v1906_v9 }
 0x22f   : > { %v1877_v13 = vmax.f32 %v1845_v7, 0.0  ;;  %v1822_v15 = vmul.f32 %v3527_v11, %v1630_v5  ;;  %3006 = vmatprep.mubr.bf16.mxu1 %v1914_v10  ;;  %v1619_v5 = vld [vmem:[#allocation2 + $0x40] sm:$0xff] }
 0x230   : > { %v1860_v20 = vadd.f32 %v3507_v48, %v1821_v16 }
 0x231   : > { %v1861_v19 = vadd.f32 %v3507_v48, %v1822_v15  ;;  %v1907_v21 = vpack.c.bf16 %v1877_v13, %v1876_v14  ;;  %v3537_v23 = vpop.permute.xlu0 %1665 }
 0x232   : > { %v3535_v22 = vpop.permute.xlu1 %1670  ;;  %v1892_v25 = vmax.f32 %v1860_v20, 0.0  ;;  %v1807_v27 = vmul.f32 %v3537_v23, %v1615_v18  ;;  %v1635_v18 = vld [vmem:[#allocation2 + $0xc0] sm:$0xff] }
 0x233   : > { %v1893_v24 = vmax.f32 %v1861_v19, 0.0  ;;  %v1808_v26 = vmul.f32 %v3535_v22, %v1616_v17  ;;  %2991 = vmatmul.mubr.bf16.vlgmr.msra.gmra.mrb[0].mxu0 %v1907_v21  ;;  %v1636_v17 = vld [vmem:[#allocation2 + $0xc8] sm:$0xff] }
 0x234   : > { %v1846_v31 = vadd.f32 %v3507_v48, %v1807_v27 }
 0x235   : > { %v1847_v30 = vadd.f32 %v3507_v48, %v1808_v26  ;;  %v1915_v32 = vpack.c.bf16 %v1893_v24, %v1892_v25  ;;  %v3545_v34 = vpop.permute.xlu0 %1745 }
 0x236   : > { %v3543_v33 = vpop.permute.xlu1 %1750  ;;  %v1878_v36 = vmax.f32 %v1846_v31, 0.0  ;;  %v1823_v38 = vmul.f32 %v3545_v34, %v1631_v29  ;;  %v1621_v31 = vld [vmem:[#allocation2 + $0x50] sm:$0xff] }
 0x237   : > { %v1879_v35 = vmax.f32 %v1847_v30, 0.0  ;;  %v1824_v37 = vmul.f32 %v3543_v33, %v1632_v28  ;;  %3007 = vmatmul.mubr.bf16.vlgmr.msra.gmra.mrb[0].mxu1 %v1915_v32  ;;  %v1622_v30 = vld [vmem:[#allocation2 + $0x58] sm:$0xff] }
 0x238   : > { %v1862_v42 = vadd.f32 %v3507_v48, %v1823_v38 }
 0x239   : > { %v1863_v41 = vadd.f32 %v3507_v48, %v1824_v37  ;;  %v1908_v43 = vpack.c.bf16 %v1879_v35, %v1878_v36  ;;  %v3553_v47 = vpop.permute.xlu0 %1675 }
 0x23a   : > { %v3551_v46 = vpop.permute.xlu1 %1680  ;;  %v1894_v50 = vmax.f32 %v1862_v42, 0.0  ;;  %v1809_v54 = vmul.f32 %v3553_v47, %v1617_v40 }
 0x23b   : > { %v1895_v49 = vmax.f32 %v1863_v41, 0.0  ;;  %v1810_v53 = vmul.f32 %v3551_v46, %v1618_v39  ;;  %2994 = vmatprep.mubr.bf16.mxu0 %v1908_v43  ;;  %v1638_v43 = vld [vmem:[#allocation2 + $0xd8] sm:$0xff] }
 0x23c   : > { %v1848_v58 = vadd.f32 %v3507_v48, %v1809_v54 }
 0x23d   : > { %v1849_v57 = vadd.f32 %v3507_v48, %v1810_v53  ;;  %v1916_v59 = vpack.c.bf16 %v1895_v49, %v1894_v50  ;;  %v3561_v63 = vpop.permute.xlu0 %1755  ;;  %v1637_v49 = vld [vmem:[#allocation2 + $0xd0] sm:$0xff] }
 0x23e   : > { %v3559_v60 = vpop.permute.xlu1 %1760  ;;  %v1880_v1 = vmax.f32 %v1848_v58, 0.0  ;;  %v1825_v3 = vmul.f32 %v3561_v63, %v1633_v56 }
 0x23f   : > { %v1881_v0 = vmax.f32 %v1849_v57, 0.0  ;;  %v1826_v2 = vmul.f32 %v3559_v60, %v1634_v55  ;;  %3010 = vmatprep.mubr.bf16.mxu1 %v1916_v59 }
 0x240   : > { %v1864_v7 = vadd.f32 %v3507_v48, %v1825_v3 }
 0x241   : > { %v1865_v6 = vadd.f32 %v3507_v48, %v1826_v2  ;;  %v1909_v8 = vpack.c.bf16 %v1881_v0, %v1880_v1  ;;  %v3569_v10 = vpop.permute.xlu0 %1685  ;;  %v1624_v1 = vld [vmem:[#allocation2 + $0x68] sm:$0xff]  ;;  %v1623_v2 = vld [vmem:[#allocation2 + $0x60] sm:$0xff] }
 0x242   : > { %v3567_v9 = vpop.permute.xlu1 %1690  ;;  %v1896_v14 = vmax.f32 %v1864_v7, 0.0  ;;  %v1811_v16 = vmul.f32 %v3569_v10, %v1619_v5 }
 0x243   : > { %v1897_v13 = vmax.f32 %v1865_v6, 0.0  ;;  %v1812_v15 = vmul.f32 %v3567_v9, %v1620_v4  ;;  %2995 = vmatmul.mubr.bf16.gmra.mrb[4].mxu0 %v1909_v8 }
 0x244   : > { %v1850_v20 = vadd.f32 %v3507_v48, %v1811_v16  ;;  %v1640_v16 = vld [vmem:[#allocation2 + $0xe8] sm:$0xff] }
 0x245   : > { %v1851_v19 = vadd.f32 %v3507_v48, %v1812_v15  ;;  %v1917_v21 = vpack.c.bf16 %v1897_v13, %v1896_v14  ;;  %v3577_v25 = vpop.permute.xlu0 %1765 }
 0x246   : > { %v3575_v24 = vpop.permute.xlu1 %1770  ;;  %v1882_v27 = vmax.f32 %v1850_v20, 0.0  ;;  %v1827_v29 = vmul.f32 %v3577_v25, %v1635_v18 }
 0x247   : > { %v1883_v26 = vmax.f32 %v1851_v19, 0.0  ;;  %v1828_v28 = vmul.f32 %v3575_v24, %v1636_v17  ;;  %3011 = vmatmul.mubr.bf16.gmra.mrb[4].mxu1 %v1917_v21  ;;  %v1639_v17 = vld [vmem:[#allocation2 + $0xe0] sm:$0xff] }
 0x248   : > { %v1866_v35 = vadd.f32 %v3507_v48, %v1827_v29 }
 0x249   : > { %v1867_v32 = vadd.f32 %v3507_v48, %v1828_v28  ;;  %v1910_v36 = vpack.c.bf16 %v1883_v26, %v1882_v27  ;;  %v3585_v38 = vpop.permute.xlu0 %1695 }
 0x24a   : > { %v3583_v37 = vpop.permute.xlu1 %1700  ;;  %v1898_v40 = vmax.f32 %v1866_v35, 0.0  ;;  %v1813_v42 = vmul.f32 %v3585_v38, %v1621_v31  ;;  %v1626_v31 = vld [vmem:[#allocation2 + $0x78] sm:$0xff] }
 0x24b   : > { %v1899_v39 = vmax.f32 %v1867_v32, 0.0  ;;  %v1814_v41 = vmul.f32 %v3583_v37, %v1622_v30  ;;  %2998 = vmatprep.mubr.bf16.mxu0 %v1910_v36  ;;  %v1625_v32 = vld [vmem:[#allocation2 + $0x70] sm:$0xff] }
 0x24c   : > { %v1852_v53 = vadd.f32 %v3507_v48, %v1813_v42 }
 0x24d   : > { %v1853_v50 = vadd.f32 %v3507_v48, %v1814_v41  ;;  %v1918_v54 = vpack.c.bf16 %v1899_v39, %v1898_v40  ;;  %v3593_v56 = vpop.permute.xlu0 %1775 }
 0x24e   : > { %v3591_v55 = vpop.permute.xlu1 %1780  ;;  %v1884_v58 = vmax.f32 %v1852_v53, 0.0  ;;  %v1829_v0 = vmul.f32 %v3593_v56, %v1637_v49  ;;  %v1642_v53 = vld [vmem:[#allocation2 + $0xf8] sm:$0xff] }
 0x24f   : > { %v1885_v57 = vmax.f32 %v1853_v50, 0.0  ;;  %v1830_v59 = vmul.f32 %v3591_v55, %v1638_v43  ;;  %3014 = vmatprep.mubr.bf16.mxu1 %v1918_v54  ;;  %v1641_v54 = vld [vmem:[#allocation2 + $0xf0] sm:$0xff] }
 0x250   : > { %v1868_v4 = vadd.f32 %v3507_v48, %v1829_v0 }
 0x251   : > { %v1869_v3 = vadd.f32 %v3507_v48, %v1830_v59  ;;  %v1911_v5 = vpack.c.bf16 %v1885_v57, %v1884_v58  ;;  %v3601_v7 = vpop.permute.xlu0 %1705 }
 0x252   : > { %v3599_v6 = vpop.permute.xlu1 %1710  ;;  %v1900_v13 = vmax.f32 %v1868_v4, 0.0  ;;  %v1815_v15 = vmul.f32 %v3601_v7, %v1623_v2 }
 0x253   : > { %v1901_v8 = vmax.f32 %v1869_v3, 0.0  ;;  %v1816_v14 = vmul.f32 %v3599_v6, %v1624_v1  ;;  %2999 = vmatmul.mubr.bf16.gmra.mrb[8].mxu0 %v1911_v5 }
 0x254   : > { %v1854_v19 = vadd.f32 %v3507_v48, %v1815_v15 }
 0x255   : > { %v1855_v18 = vadd.f32 %v3507_v48, %v1816_v14  ;;  %v1919_v20 = vpack.c.bf16 %v1901_v8, %v1900_v13  ;;  %v3609_v26 = vpop.permute.xlu0 %1785 }
 0x256   : > { %v3607_v21 = vpop.permute.xlu1 %1790  ;;  %v1886_v28 = vmax.f32 %v1854_v19, 0.0  ;;  %v1831_v30 = vmul.f32 %v3609_v26, %v1639_v17 }
 0x257   : > { %v1887_v27 = vmax.f32 %v1855_v18, 0.0  ;;  %v1832_v29 = vmul.f32 %v3607_v21, %v1640_v16  ;;  %3015 = vmatmul.mubr.bf16.gmra.mrb[8].mxu1 %v1919_v20 }
 0x258   : > { %v1870_v36 = vadd.f32 %v3507_v48, %v1831_v30 }
 0x259   : > { %v1871_v35 = vadd.f32 %v3507_v48, %v1832_v29  ;;  %v1912_v39 = vpack.c.bf16 %v1887_v27, %v1886_v28  ;;  %v3617_v41 = vpop.permute.xlu0 %1715 }
 0x25a   : > { %v3615_v40 = vpop.permute.xlu1 %1720  ;;  %v1902_v43 = vmax.f32 %v1870_v36, 0.0  ;;  %v1817_v50 = vmul.f32 %v3617_v41, %v1625_v32 }
 0x25b   : > { %v1903_v42 = vmax.f32 %v1871_v35, 0.0  ;;  %v1818_v49 = vmul.f32 %v3615_v40, %v1626_v31  ;;  %3002 = vmatprep.mubr.bf16.mxu0 %v1912_v39 }
 0x25c   : > { %v1856_v58 = vadd.f32 %v3507_v48, %v1817_v50 }
 0x25d   : > { %v1857_v57 = vadd.f32 %v3507_v48, %v1818_v49  ;;  %v1920_v59 = vpack.c.bf16 %v1903_v42, %v1902_v43  ;;  %v3625_v1 = vpop.permute.xlu0 %1795 }
 0x25e   : > { %v3623_v0 = vpop.permute.xlu1 %1800  ;;  %v1888_v3 = vmax.f32 %v1856_v58, 0.0  ;;  %v1833_v5 = vmul.f32 %v3625_v1, %v1641_v54 }
 0x25f   : > { %v1889_v2 = vmax.f32 %v1857_v57, 0.0  ;;  %v1834_v4 = vmul.f32 %v3623_v0, %v1642_v53  ;;  %3018 = vmatprep.mubr.bf16.mxu1 %v1920_v59 }
 0x260   : > { %v1872_v13 = vadd.f32 %v3507_v48, %v1833_v5 }
 0x261   : > { %v1873_v8 = vadd.f32 %v3507_v48, %v1834_v4  ;;  %v1913_v14 = vpack.c.bf16 %v1889_v2, %v1888_v3 }
 0x262   : > { %v1904_v16 = vmax.f32 %v1872_v13, 0.0 }
 0x263   : > { %v1905_v15 = vmax.f32 %v1873_v8, 0.0  ;;  %3003 = vmatmul.mubr.bf16.gmra.mrb[12].mxu0 %v1913_v14 }
 0x265   : > { %v1921_v17 = vpack.c.bf16 %v1905_v15, %v1904_v16 }
 0x267   : > { %3019 = vmatmul.mubr.bf16.gmra.mrb[12].mxu1 %v1921_v17 }
 0x306   : > { %v2992_v18 = vpop.f32.mrb[0].mxu0 }
 0x307   : > { %v2020_v19 = vpop.f32.mrb[1].mxu0  ;;  %v2149_v27 = vmul.f32 %v2992_v18, %v3521_v62 }
 0x308   : > { %v2993_v20 = vpop.f32.mrb[2].mxu0  ;;  %v2147_v30 = vmul.f32 %v2020_v19, %v3500_v45 }
 0x309   : > { %v2150_v28 = vmul.f32 %v2993_v20, %v3519_v61  ;;  %v2023_v29 = vpop.f32.mrb[3].mxu0 }
 0x30a   : > { %v2148_v48 = vmul.f32 %v2023_v29, %v3511_v52  ;;  %v3008_v31 = vpop.f32.mrb[0].mxu1 }
 0x30b   : > { %v2639_v32 = vpack.c.bf16 %v2150_v28, %v2149_v27  ;;  %v2084_v35 = vpop.f32.mrb[1].mxu1  ;;  %v2165_v42 = vmul.f32 %v3008_v31, %v3529_v12 }
 0x30c   : > { %v2634_v36 = vpack.c.bf16 %v2148_v48, %v2147_v30  ;;  %v3009_v39 = vpop.f32.mrb[2].mxu1  ;;  %v2163_v61 = vmul.f32 %v2084_v35, %v3498_v44 }
 0x30d   : > { %2711 = vst [vmem:[%s3372_s21 + $0x8] sm:$0xff] %v2639_v32   ;;  %v2166_v43 = vmul.f32 %v3009_v39, %v3527_v11  ;;  %v2087_v62 = vpop.f32.mrb[3].mxu1 }
 0x30e   : > { %2635 = vst [vmem:[%s3372_s21] sm:$0xff] %v2634_v36   ;;  %v2164_v45 = vmul.f32 %v2087_v62, %v3509_v51 }
 0x30f   : > { %v2679_v49 = vpack.c.bf16 %v2166_v43, %v2165_v42 }
 0x310   : > { %v2674_v50 = vpack.c.bf16 %v2164_v45, %v2163_v61 }
 0x311   : > { %2719 = vst [vmem:[%s3372_s21 + $0x48] sm:$0xff] %v2679_v49  }
 0x312   : > { %2718 = vst [vmem:[%s3372_s21 + $0x40] sm:$0xff] %v2674_v50  }
 0x316   : > { %v2996_v52 = vpop.f32.mrb[4].mxu0 }
 0x317   : > { %v2036_v53 = vpop.f32.mrb[5].mxu0  ;;  %v2153_v57 = vmul.f32 %v2996_v52, %v3553_v47 }
 0x318   : > { %v2997_v54 = vpop.f32.mrb[6].mxu0  ;;  %v2151_v58 = vmul.f32 %v2036_v53, %v3537_v23 }
 0x319   : > { %v2154_v12 = vmul.f32 %v2997_v54, %v3551_v46  ;;  %v2039_v11 = vpop.f32.mrb[7].mxu0 }
 0x31a   : > { %v2152_v44 = vmul.f32 %v2039_v11, %v3535_v22  ;;  %v3012_v51 = vpop.f32.mrb[4].mxu1 }
 0x31b   : > { %v2649_v59 = vpack.c.bf16 %v2154_v12, %v2153_v57  ;;  %v2100_v2 = vpop.f32.mrb[5].mxu1  ;;  %v2169_v5 = vmul.f32 %v3012_v51, %v3561_v63 }
 0x31c   : > { %v2644_v3 = vpack.c.bf16 %v2152_v44, %v2151_v58  ;;  %v3013_v4 = vpop.f32.mrb[6].mxu1  ;;  %v2167_v46 = vmul.f32 %v2100_v2, %v3545_v34 }
 0x31d   : > { %2713 = vst [vmem:[%s3372_s21 + $0x18] sm:$0xff] %v2649_v59   ;;  %v2170_v8 = vmul.f32 %v3013_v4, %v3559_v60  ;;  %v2103_v47 = vpop.f32.mrb[7].mxu1 }
 0x31e   : > { %2712 = vst [vmem:[%s3372_s21 + $0x10] sm:$0xff] %v2644_v3   ;;  %v2168_v23 = vmul.f32 %v2103_v47, %v3543_v33 }
 0x31f   : > { %v2689_v13 = vpack.c.bf16 %v2170_v8, %v2169_v5 }
 0x320   : > { %v2684_v14 = vpack.c.bf16 %v2168_v23, %v2167_v46 }
 0x321   : > { %2721 = vst [vmem:[%s3372_s21 + $0x58] sm:$0xff] %v2689_v13  }
 0x322   : > { %2720 = vst [vmem:[%s3372_s21 + $0x50] sm:$0xff] %v2684_v14  }
 0x326   : > { %v3000_v22 = vpop.f32.mrb[8].mxu0 }
 0x327   : > { %v2052_v15 = vpop.f32.mrb[9].mxu0  ;;  %v2157_v17 = vmul.f32 %v3000_v22, %v3585_v38 }
 0x328   : > { %v3001_v16 = vpop.f32.mrb[10].mxu0  ;;  %v2155_v18 = vmul.f32 %v2052_v15, %v3569_v10 }
 0x329   : > { %v2158_v63 = vmul.f32 %v3001_v16, %v3583_v37  ;;  %v2055_v60 = vpop.f32.mrb[11].mxu0 }
 0x32a   : > { %v2156_v34 = vmul.f32 %v2055_v60, %v3567_v9  ;;  %v3016_v33 = vpop.f32.mrb[8].mxu1 }
 0x32b   : > { %v2659_v19 = vpack.c.bf16 %v2158_v63, %v2157_v17  ;;  %v2116_v20 = vpop.f32.mrb[9].mxu1  ;;  %v2173_v29 = vmul.f32 %v3016_v33, %v3593_v56 }
 0x32c   : > { %v2654_v27 = vpack.c.bf16 %v2156_v34, %v2155_v18  ;;  %v3017_v28 = vpop.f32.mrb[10].mxu1  ;;  %v2171_v37 = vmul.f32 %v2116_v20, %v3577_v25 }
 0x32d   : > { %2715 = vst [vmem:[%s3372_s21 + $0x28] sm:$0xff] %v2659_v19   ;;  %v2174_v30 = vmul.f32 %v3017_v28, %v3591_v55  ;;  %v2119_v38 = vpop.f32.mrb[11].mxu1 }
 0x32e   : > { %2714 = vst [vmem:[%s3372_s21 + $0x20] sm:$0xff] %v2654_v27   ;;  %v2172_v10 = vmul.f32 %v2119_v38, %v3575_v24 }
 0x32f   : > { %v2699_v48 = vpack.c.bf16 %v2174_v30, %v2173_v29 }
 0x330   : > { %v2694_v31 = vpack.c.bf16 %v2172_v10, %v2171_v37 }
 0x331   : > { %2723 = vst [vmem:[%s3372_s21 + $0x68] sm:$0xff] %v2699_v48  }
 0x332   : > { %2722 = vst [vmem:[%s3372_s21 + $0x60] sm:$0xff] %v2694_v31  }
 0x336   : > { %v3004_v9 = vpop.f32.mrb[12].mxu0 }
 0x337   : > { %v2068_v32 = vpop.f32.mrb[13].mxu0  ;;  %v2161_v36 = vmul.f32 %v3004_v9, %v3617_v41 }
 0x338   : > { %v3005_v35 = vpop.f32.mrb[14].mxu0  ;;  %v2159_v39 = vmul.f32 %v2068_v32, %v3601_v7 }
 0x339   : > { %v2162_v56 = vmul.f32 %v3005_v35, %v3615_v40  ;;  %v2071_v55 = vpop.f32.mrb[15].mxu0 }
 0x33a   : > { %v2160_v25 = vmul.f32 %v2071_v55, %v3599_v6  ;;  %v3020_v24 = vpop.f32.mrb[12].mxu1 }
 0x33b   : > { %v2669_v42 = vpack.c.bf16 %v2162_v56, %v2161_v36  ;;  %v2132_v43 = vpop.f32.mrb[13].mxu1  ;;  %v2177_v45 = vmul.f32 %v3020_v24, %v3625_v1 }
 0x33c   : > { %v2664_v62 = vpack.c.bf16 %v2160_v25, %v2159_v39  ;;  %v3021_v61 = vpop.f32.mrb[14].mxu1  ;;  %v2175_v40 = vmul.f32 %v2132_v43, %v3609_v26 }
 0x33d   : > { %2717 = vst [vmem:[%s3372_s21 + $0x38] sm:$0xff] %v2669_v42   ;;  %v2178_v49 = vmul.f32 %v3021_v61, %v3623_v0  ;;  %v2135_v41 = vpop.f32.mrb[15].mxu1 }
 0x33e   : > { %2716 = vst [vmem:[%s3372_s21 + $0x30] sm:$0xff] %v2664_v62   ;;  %v2176_v7 = vmul.f32 %v2135_v41, %v3607_v21 }
 0x33f   : > { %v2709_v50 = vpack.c.bf16 %v2178_v49, %v2177_v45 }
 0x340   : > { %v2704_v52 = vpack.c.bf16 %v2176_v7, %v2175_v40 }
 0x341   : > { %2725 = vst [vmem:[%s3372_s21 + $0x78] sm:$0xff] %v2709_v50  }
 0x342   : > { %2724 = vst [vmem:[%s3372_s21 + $0x70] sm:$0xff] %v2704_v52  }
 0x343 PF: > { %s15_s24 = sadd.s32 1, %s3192_s24   ;;  %s3706_s18 = smov %s3172_s19 }
 0x344   : > { %p12_p0 = scmp.ge.s32.totalorder %s15_s24, 10   ;;  %s3707_s19 = smov %s3277_s6 }
 0x345   : > { %s3708_s20 = smov %s3184_s22  ;;  %s3709_s21 = smov %s3188_s23 }
 0x346   : > { %s3710_s22 = smov %s3713_s25  ;;  %s3711_s23 = smov %s3717_s26 }
 0x347   :  { %14 = sbr.rel (!%p12_p0) target bundleno = 4 (0x4), region = 127 }

// kernel: gcn_forward.3
= control target key start
LH: loop header
LB: loop body
LE: loop exit
PB: predicated region body
PF: predicated region fallthrough
CT: control target
= control target key end

     0   :  { %s2871_s18 = smov 0   ;;  %s3207_s0 = inlined_call_operand.vmem [shape: bf16[1024,128], index: 0, kind: input, shape index: {}]   ;;  %s3208_s1 = inlined_call_operand.vmem [shape: f32[1024,1], index: 1, kind: input, shape index: {}]   ;;  %s3209_s2 = inlined_call_operand.vmem [shape: bf16[128,128], index: 2, kind: input, shape index: {}]   ;;  %s3210_s3 = inlined_call_operand.vmem [shape: f32[1,128], index: 3, kind: input, shape index: {}]   ;;  %s3211_s4 = inlined_call_operand.vmem [shape: bf16[128,128], index: 4, kind: input, shape index: {}]   ;;  %s3212_s5 = inlined_call_operand.vmem [shape: bf16[1024,128], index: 5, kind: output, shape index: {}]  }
   0x1 LB: > { %s2152_s19 = sadd.s32 4294967295, %s2838_s18   ;;  %p2156_p0 = scmp.ge.s32.totalorder %s2838_s18, 1  ;;  %s2838_s18 = sphi %s2871_s18, %s15_s18  }
   0x2   : > { %p199_p1 = scmp.lt.s32.totalorder %s2838_s18, 3 }
   0x4   : > { %p200_p2 = pnand %p2156_p0, %p199_p1 }
   0x5   : > { %v2784_v0 = vld [vmem:[%s3209_s2] sm:$0xff] (!%p200_p2)   ;;  %s2157_s22 = sshll.u32 (!%p200_p2), %s2152_s19, 6  ;;  %v2785_v1 = vld [vmem:[%s3209_s2 + $0x8] sm:$0xff] (!%p200_p2)   ;;  %v2786_v2 = vld [vmem:[%s3209_s2 + $0x10] sm:$0xff] (!%p200_p2)   ;;  %v2840_v9 = vmov (!%p200_p2), 0  }
   0x6   : > { %203 = sbr.rel (%p200_p2) target bundleno = 600 (0x258), region = 40  ;;  %p233_p3 = scmp.lt.s32.totalorder (!%p200_p2), %s2157_s22, 127  ;;  %2613 = vmatprep.subr.bf16.mxu0 (!%p200_p2), %v2784_v0  ;;  %v2787_v3 = vld [vmem:[%s3209_s2 + $0x18] sm:$0xff] (!%p200_p2)   ;;  %v2788_v5 = vld [vmem:[%s3209_s2 + $0x20] sm:$0xff] (!%p200_p2)   ;;  %v2789_v6 = vld [vmem:[%s3209_s2 + $0x28] sm:$0xff] (!%p200_p2)   ;;  %2783 = vset.pattern.permute.xlu1 (!%p200_p2), %v2840_v9 }
   0x7   : > { %2614 = vmatpush3.bf16.msra.mxu0 (!%p200_p2), %v2784_v0  ;;  %v2790_v7 = vld [vmem:[%s3209_s2 + $0x30] sm:$0xff] (!%p200_p2)   ;;  %v2791_v8 = vld [vmem:[%s3209_s2 + $0x38] sm:$0xff] (!%p200_p2)   ;;  %2782 = vset.pattern.permute.xlu0 (!%p200_p2), %v2840_v9  ;;  %v2824_v18 = vld [vmem:[%s3211_s4] sm:$0xff] (!%p200_p2)  }
   0x8   : > { %2615 = vmatprep.subr.bf16.mxu0 (!%p200_p2), %v2785_v1  ;;  %2693 = vmatprep.subr.bf16.mxu1 (!%p200_p2), %v2824_v18  ;;  %v2825_v19 = vld [vmem:[%s3211_s4 + $0x8] sm:$0xff] (!%p200_p2)   ;;  %v2826_v24 = vld [vmem:[%s3211_s4 + $0x10] sm:$0xff] (!%p200_p2)   ;;  %v2827_v27 = vld [vmem:[%s3211_s4 + $0x18] sm:$0xff] (!%p200_p2)  }
   0x9   : > { %2694 = vmatpush3.bf16.msra.mxu1 (!%p200_p2), %v2824_v18  ;;  %v2828_v32 = vld [vmem:[%s3211_s4 + $0x20] sm:$0xff] (!%p200_p2)   ;;  %v2829_v35 = vld [vmem:[%s3211_s4 + $0x28] sm:$0xff] (!%p200_p2)   ;;  %v2830_v57 = vld [vmem:[%s3211_s4 + $0x30] sm:$0xff] (!%p200_p2)  }
   0xa   : > { %2695 = vmatprep.subr.bf16.mxu1 (!%p200_p2), %v2825_v19  ;;  %v2831_v61 = vld [vmem:[%s3211_s4 + $0x38] sm:$0xff] (!%p200_p2)  }
   0xb   : > { %2616 = vmatpush3.bf16.msra.mxu0 (!%p200_p2), %v2785_v1 }
   0xc   : > { %2617 = vmatprep.subr.bf16.mxu0 (!%p200_p2), %v2786_v2 }
   0xd   : > { %s3214_s22 = smov (!%p233_p3, %s2157_s22), 127  ;;  %2696 = vmatpush3.bf16.msra.mxu1 %v2825_v19 }
   0xe   : > { %s2158_s27 = sshll.u32 %s3214_s22, 2  ;;  %s2160_s16 = sshll.u32 %s3214_s22, 3  ;;  %2697 = vmatprep.subr.bf16.mxu1 %v2826_v24 }
   0xf   : > { %s2896_s30 = scalar_lea.vmem %s3207_s0, %s2158_s27  ;;  %2618 = vmatpush3.bf16.msra.mxu0 %v2786_v2  ;;  %s2920_s20 = scalar_lea.vmem %s3208_s1, %s2160_s16 }
  0x10   : > { %v2792_v4 = vld [vmem:[%s2896_s30] sm:$0xff]   ;;  %2619 = vmatprep.subr.bf16.mxu0 %v2787_v3  ;;  %v2793_v10 = vld [vmem:[%s2896_s30 + $0x8] sm:$0xff]   ;;  %v2794_v11 = vld [vmem:[%s2896_s30 + $0x10] sm:$0xff]   ;;  %s3131_s19 = scalar_lea.vmem %s3212_s5, %s2158_s27 }
  0x11   : > { %2629 = vmatprep.mubr.bf16.mxu0 %v2792_v4  ;;  %v2795_v12 = vld [vmem:[%s2896_s30 + $0x18] sm:$0xff]   ;;  %v2796_v13 = vld [vmem:[%s2896_s30 + $0x20] sm:$0xff]   ;;  %v1318_v14 = vld [vmem:[%s2920_s20 + $0x10] sm:$0xff]  ;;  %2698 = vmatpush3.bf16.msra.mxu1 %v2826_v24 }
  0x12   : > { %v1316_v15 = vld [vmem:[%s2920_s20] sm:$0xff]  ;;  %1392 = vperm.xlu1 %2783, %v1318_v14   ;;  %v1319_v16 = vld [vmem:[%s2920_s20 + $0x18] sm:$0xff]  ;;  %v1317_v17 = vld [vmem:[%s2920_s20 + $0x8] sm:$0xff]  ;;  %2699 = vmatprep.subr.bf16.mxu1 %v2827_v27 }
  0x13   : > { %2620 = vmatpush3.bf16.msra.mxu0 %v2787_v3  ;;  %1382 = vperm.xlu0 %2782, %v1316_v15   ;;  %v2797_v20 = vld [vmem:[%s2896_s30 + $0x28] sm:$0xff]   ;;  %v2798_v21 = vld [vmem:[%s2896_s30 + $0x30] sm:$0xff]   ;;  %v1320_v23 = vld [vmem:[%s2920_s20 + $0x20] sm:$0xff] }
  0x14   : > { %2621 = vmatprep.subr.bf16.mxu0 %v2788_v5  ;;  %v1321_v22 = vld [vmem:[%s2920_s20 + $0x28] sm:$0xff]  ;;  %v1323_v25 = vld [vmem:[%s2920_s20 + $0x38] sm:$0xff]  ;;  %v1322_v26 = vld [vmem:[%s2920_s20 + $0x30] sm:$0xff] }
  0x15   : > { %v2799_v28 = vld [vmem:[%s2896_s30 + $0x38] sm:$0xff]   ;;  %v1325_v29 = vld [vmem:[%s2920_s20 + $0x48] sm:$0xff]  ;;  %v1324_v30 = vld [vmem:[%s2920_s20 + $0x40] sm:$0xff]  ;;  %2700 = vmatpush3.bf16.msra.mxu1 %v2827_v27 }
  0x16   : > { %1397 = vperm.xlu1 %2783, %v1319_v16   ;;  %v2800_v31 = vld [vmem:[%s2896_s30 + $0x40] sm:$0xff]   ;;  %v1327_v33 = vld [vmem:[%s2920_s20 + $0x58] sm:$0xff]  ;;  %v1326_v34 = vld [vmem:[%s2920_s20 + $0x50] sm:$0xff]  ;;  %2701 = vmatprep.subr.bf16.mxu1 %v2828_v32 }
  0x17   : > { %2622 = vmatpush3.bf16.msra.mxu0 %v2788_v5  ;;  %1387 = vperm.xlu0 %2782, %v1317_v17   ;;  %v2801_v36 = vld [vmem:[%s2896_s30 + $0x48] sm:$0xff]   ;;  %v1328_v38 = vld [vmem:[%s2920_s20 + $0x60] sm:$0xff]  ;;  %v2802_v39 = vld [vmem:[%s2896_s30 + $0x50] sm:$0xff]  }
  0x18   : > { %2623 = vmatprep.subr.bf16.mxu0 %v2789_v6  ;;  %v1329_v37 = vld [vmem:[%s2920_s20 + $0x68] sm:$0xff]  ;;  %v1331_v40 = vld [vmem:[%s2920_s20 + $0x78] sm:$0xff]  ;;  %v1330_v41 = vld [vmem:[%s2920_s20 + $0x70] sm:$0xff] }
  0x19   : > { %2702 = vmatpush3.bf16.msra.mxu1 %v2828_v32  ;;  %v2803_v42 = vld [vmem:[%s2896_s30 + $0x58] sm:$0xff]   ;;  %v2804_v43 = vld [vmem:[%s2896_s30 + $0x60] sm:$0xff]   ;;  %v2805_v44 = vld [vmem:[%s2896_s30 + $0x68] sm:$0xff]  }
  0x1a   : > { %1407 = vperm.xlu1 %2783, %v1321_v22   ;;  %2703 = vmatprep.subr.bf16.mxu1 %v2829_v35  ;;  %v2806_v45 = vld [vmem:[%s2896_s30 + $0x70] sm:$0xff]   ;;  %v2807_v46 = vld [vmem:[%s2896_s30 + $0x78] sm:$0xff]   ;;  %v2808_v47 = vld [vmem:[%s2896_s30 + $0x80] sm:$0xff]  }
  0x1b   : > { %2624 = vmatpush3.bf16.msra.mxu0 %v2789_v6  ;;  %1402 = vperm.xlu0 %2782, %v1320_v23   ;;  %v2809_v48 = vld [vmem:[%s2896_s30 + $0x88] sm:$0xff]   ;;  %v2810_v49 = vld [vmem:[%s2896_s30 + $0x90] sm:$0xff]   ;;  %v2811_v50 = vld [vmem:[%s2896_s30 + $0x98] sm:$0xff]  }
  0x1c   : > { %2625 = vmatprep.subr.bf16.mxu0 %v2790_v7  ;;  %v2812_v51 = vld [vmem:[%s2896_s30 + $0xa0] sm:$0xff]   ;;  %v2813_v52 = vld [vmem:[%s2896_s30 + $0xa8] sm:$0xff]   ;;  %v2814_v53 = vld [vmem:[%s2896_s30 + $0xb0] sm:$0xff]  }
  0x1d   : > { %2704 = vmatpush3.bf16.msra.mxu1 %v2829_v35  ;;  %v2815_v54 = vld [vmem:[%s2896_s30 + $0xb8] sm:$0xff]   ;;  %v1333_v55 = vld [vmem:[%s2920_s20 + $0x88] sm:$0xff]  ;;  %v1332_v56 = vld [vmem:[%s2920_s20 + $0x80] sm:$0xff] }
  0x1e   : > { %1417 = vperm.xlu1 %2783, %v1323_v25   ;;  %v2816_v58 = vld [vmem:[%s2896_s30 + $0xc0] sm:$0xff]   ;;  %2705 = vmatprep.subr.bf16.mxu1 %v2830_v57  ;;  %v1335_v59 = vld [vmem:[%s2920_s20 + $0x98] sm:$0xff]  ;;  %v1334_v60 = vld [vmem:[%s2920_s20 + $0x90] sm:$0xff] }
  0x1f   : > { %2626 = vmatpush3.bf16.msra.mxu0 %v2790_v7  ;;  %1412 = vperm.xlu0 %2782, %v1322_v26   ;;  %v2817_v62 = vld [vmem:[%s2896_s30 + $0xc8] sm:$0xff]   ;;  %v1336_v0 = vld [vmem:[%s2920_s20 + $0xa0] sm:$0xff]  ;;  %v2818_v1 = vld [vmem:[%s2896_s30 + $0xd0] sm:$0xff]  }
  0x20   : > { %2627 = vmatprep.subr.bf16.mxu0 %v2791_v8  ;;  %v1337_v63 = vld [vmem:[%s2920_s20 + $0xa8] sm:$0xff]  ;;  %v1339_v2 = vld [vmem:[%s2920_s20 + $0xb8] sm:$0xff]  ;;  %v1338_v3 = vld [vmem:[%s2920_s20 + $0xb0] sm:$0xff] }
  0x21   : > { %2706 = vmatpush3.bf16.msra.mxu1 %v2830_v57  ;;  %v2819_v4 = vld [vmem:[%s2896_s30 + $0xd8] sm:$0xff]   ;;  %v1341_v5 = vld [vmem:[%s2920_s20 + $0xc8] sm:$0xff]  ;;  %v1340_v6 = vld [vmem:[%s2920_s20 + $0xc0] sm:$0xff] }
  0x22   : > { %1427 = vperm.xlu1 %2783, %v1325_v29   ;;  %2707 = vmatprep.subr.bf16.mxu1 %v2831_v61  ;;  %v2820_v7 = vld [vmem:[%s2896_s30 + $0xe0] sm:$0xff]   ;;  %v1342_v9 = vld [vmem:[%s2920_s20 + $0xd0] sm:$0xff]  ;;  %v1347_v14 = vld [vmem:[%s2920_s20 + $0xf8] sm:$0xff] }
  0x23   : > { %2628 = vmatpush3.bf16.msra.mxu0 %v2791_v8  ;;  %1422 = vperm.xlu0 %2782, %v1324_v30   ;;  %v1343_v8 = vld [vmem:[%s2920_s20 + $0xd8] sm:$0xff]  ;;  %v1346_v15 = vld [vmem:[%s2920_s20 + $0xf0] sm:$0xff]  ;;  %v1349_v17 = vld [vmem:[%s2920_s20 + $0x108] sm:$0xff] }
  0x24   : > { %v2823_v16 = vld [vmem:[%s2896_s30 + $0xf8] sm:$0xff]   ;;  %v1348_v18 = vld [vmem:[%s2920_s20 + $0x100] sm:$0xff]  ;;  %v1354_v24 = vld [vmem:[%s2920_s20 + $0x130] sm:$0xff] }
  0x25   : > { %2708 = vmatpush3.bf16.msra.mxu1 %v2831_v61  ;;  %v1351_v19 = vld [vmem:[%s2920_s20 + $0x118] sm:$0xff]  ;;  %v1352_v22 = vld [vmem:[%s2920_s20 + $0x120] sm:$0xff]  ;;  %v1357_v25 = vld [vmem:[%s2920_s20 + $0x148] sm:$0xff] }
  0x26   : > { %2630 = vmatmul.mubr.bf16.vlgmr.msra.gmra.mrb[0].mxu0 %v2793_v10  ;;  %1437 = vperm.xlu1 %2783, %v1327_v33   ;;  %v2821_v10 = vld [vmem:[%s2896_s30 + $0xe8] sm:$0xff]   ;;  %v1355_v23 = vld [vmem:[%s2920_s20 + $0x138] sm:$0xff]  ;;  %v1356_v26 = vld [vmem:[%s2920_s20 + $0x140] sm:$0xff] }
  0x27   : > { %2633 = vmatprep.mubr.bf16.mxu0 %v2794_v11  ;;  %1432 = vperm.xlu0 %2782, %v1326_v34   ;;  %v1345_v11 = vld [vmem:[%s2920_s20 + $0xe8] sm:$0xff]  ;;  %v1359_v27 = vld [vmem:[%s2920_s20 + $0x158] sm:$0xff]  ;;  %v1360_v30 = vld [vmem:[%s2920_s20 + $0x160] sm:$0xff] }
  0x28   : > { %v1361_v29 = vld [vmem:[%s2920_s20 + $0x168] sm:$0xff]  ;;  %v1362_v32 = vld [vmem:[%s2920_s20 + $0x170] sm:$0xff]  ;;  %v1364_v34 = vld [vmem:[%s2920_s20 + $0x180] sm:$0xff] }
  0x29   : > { %v1365_v33 = vld [vmem:[%s2920_s20 + $0x188] sm:$0xff]  ;;  %v1367_v35 = vld [vmem:[%s2920_s20 + $0x198] sm:$0xff] }
  0x2a   : > { %1447 = vperm.xlu1 %2783, %v1329_v37   ;;  %v1369_v37 = vld [vmem:[%s2920_s20 + $0x1a8] sm:$0xff] }
  0x2b   : > { %1442 = vperm.xlu0 %2782, %v1328_v38   ;;  %v1368_v38 = vld [vmem:[%s2920_s20 + $0x1a0] sm:$0xff] }
  0x2e   : > { %2634 = vmatmul.mubr.bf16.gmra.mrb[4].mxu0 %v2795_v12  ;;  %1457 = vperm.xlu1 %2783, %v1331_v40   ;;  %v1344_v12 = vld [vmem:[%s2920_s20 + $0xe0] sm:$0xff]  ;;  %v1370_v40 = vld [vmem:[%s2920_s20 + $0x1b0] sm:$0xff] }
  0x2f   : > { %2637 = vmatprep.mubr.bf16.mxu0 %v2796_v13  ;;  %1452 = vperm.xlu0 %2782, %v1330_v41   ;;  %v2822_v13 = vld [vmem:[%s2896_s30 + $0xf0] sm:$0xff]   ;;  %v1373_v41 = vld [vmem:[%s2920_s20 + $0x1c8] sm:$0xff] }
  0x32   : > { %1467 = vperm.xlu1 %2783, %v1333_v55  }
  0x33   : > { %1462 = vperm.xlu0 %2782, %v1332_v56  }
  0x36   : > { %2638 = vmatmul.mubr.bf16.gmra.mrb[8].mxu0 %v2797_v20  ;;  %1477 = vperm.xlu1 %2783, %v1335_v59   ;;  %v1350_v20 = vld [vmem:[%s2920_s20 + $0x110] sm:$0xff] }
  0x37   : > { %2641 = vmatprep.mubr.bf16.mxu0 %v2798_v21  ;;  %1472 = vperm.xlu0 %2782, %v1334_v60   ;;  %v1353_v21 = vld [vmem:[%s2920_s20 + $0x128] sm:$0xff] }
  0x3a   : > { %1487 = vperm.xlu1 %2783, %v1337_v63  }
  0x3b   : > { %1482 = vperm.xlu0 %2782, %v1336_v0  }
  0x3e   : > { %2642 = vmatmul.mubr.bf16.gmra.mrb[12].mxu0 %v2799_v28  ;;  %1497 = vperm.xlu1 %2783, %v1339_v2   ;;  %v1358_v28 = vld [vmem:[%s2920_s20 + $0x150] sm:$0xff] }
  0x3f   : > { %2645 = vmatprep.mubr.bf16.mxu0 %v2800_v31  ;;  %1492 = vperm.xlu0 %2782, %v1338_v3   ;;  %v1363_v31 = vld [vmem:[%s2920_s20 + $0x178] sm:$0xff] }
  0x42   : > { %1507 = vperm.xlu1 %2783, %v1341_v5  }
  0x43   : > { %1502 = vperm.xlu0 %2782, %v1340_v6  }
  0x46   : > { %2646 = vmatmul.mubr.bf16.gmra.mrb[16].mxu0 %v2801_v36  ;;  %1517 = vperm.xlu1 %2783, %v1343_v8   ;;  %v1366_v36 = vld [vmem:[%s2920_s20 + $0x190] sm:$0xff] }
  0x47   : > { %2649 = vmatprep.mubr.bf16.mxu0 %v2802_v39  ;;  %1512 = vperm.xlu0 %2782, %v1342_v9   ;;  %v1371_v39 = vld [vmem:[%s2920_s20 + $0x1b8] sm:$0xff] }
  0x4a   : > { %1527 = vperm.xlu1 %2783, %v1345_v11  }
  0x4b   : > { %1522 = vperm.xlu0 %2782, %v1344_v12  }
  0x4e   : > { %2650 = vmatmul.mubr.bf16.gmra.mrb[20].mxu0 %v2803_v42  ;;  %1537 = vperm.xlu1 %2783, %v1347_v14   ;;  %v1372_v42 = vld [vmem:[%s2920_s20 + $0x1c0] sm:$0xff] }
  0x4f   : > { %2653 = vmatprep.mubr.bf16.mxu0 %v2804_v43  ;;  %1532 = vperm.xlu0 %2782, %v1346_v15   ;;  %v1375_v43 = vld [vmem:[%s2920_s20 + $0x1d8] sm:$0xff] }
  0x52   : > { %1547 = vperm.xlu1 %2783, %v1349_v17  }
  0x53   : > { %1542 = vperm.xlu0 %2782, %v1348_v18  }
  0x56   : > { %2654 = vmatmul.mubr.bf16.gmra.mrb[24].mxu0 %v2805_v44  ;;  %1557 = vperm.xlu1 %2783, %v1351_v19   ;;  %v1374_v44 = vld [vmem:[%s2920_s20 + $0x1d0] sm:$0xff] }
  0x57   : > { %2657 = vmatprep.mubr.bf16.mxu0 %v2806_v45  ;;  %1552 = vperm.xlu0 %2782, %v1350_v20   ;;  %v1377_v45 = vld [vmem:[%s2920_s20 + $0x1e8] sm:$0xff] }
  0x5a   : > { %1567 = vperm.xlu1 %2783, %v1353_v21  }
  0x5b   : > { %1562 = vperm.xlu0 %2782, %v1352_v22  }
  0x5e   : > { %2658 = vmatmul.mubr.bf16.gmra.mrb[28].mxu0 %v2807_v46  ;;  %1577 = vperm.xlu1 %2783, %v1355_v23   ;;  %v1376_v46 = vld [vmem:[%s2920_s20 + $0x1e0] sm:$0xff] }
  0x5f   : > { %2661 = vmatprep.mubr.bf16.mxu0 %v2808_v47  ;;  %1572 = vperm.xlu0 %2782, %v1354_v24   ;;  %v1379_v47 = vld [vmem:[%s2920_s20 + $0x1f8] sm:$0xff] }
  0x62   : > { %1587 = vperm.xlu1 %2783, %v1357_v25  }
  0x63   : > { %1582 = vperm.xlu0 %2782, %v1356_v26  }
  0x66   : > { %2662 = vmatmul.mubr.bf16.gmra.mrb[32].mxu0 %v2809_v48  ;;  %1597 = vperm.xlu1 %2783, %v1359_v27   ;;  %v1378_v48 = vld [vmem:[%s2920_s20 + $0x1f0] sm:$0xff] }
  0x67   : > { %2665 = vmatprep.mubr.bf16.mxu0 %v2810_v49  ;;  %1592 = vperm.xlu0 %2782, %v1358_v28   ;;  %v3042_v49 = vld [vmem:[%s3210_s3] ss:$0 sm:$0xff] }
  0x6a   : > { %1607 = vperm.xlu1 %2783, %v1361_v29  }
  0x6b   : > { %1602 = vperm.xlu0 %2782, %v1360_v30  }
  0x6e   : > { %2666 = vmatmul.mubr.bf16.gmra.mrb[36].mxu0 %v2811_v50  ;;  %1617 = vperm.xlu1 %2783, %v1363_v31  }
  0x6f   : > { %2669 = vmatprep.mubr.bf16.mxu0 %v2812_v51  ;;  %1612 = vperm.xlu0 %2782, %v1362_v32  }
  0x72   : > { %1627 = vperm.xlu1 %2783, %v1365_v33  }
  0x73   : > { %1622 = vperm.xlu0 %2782, %v1364_v34  }
  0x76   : > { %2670 = vmatmul.mubr.bf16.gmra.mrb[40].mxu0 %v2813_v52  ;;  %1637 = vperm.xlu1 %2783, %v1367_v35  }
  0x77   : > { %2673 = vmatprep.mubr.bf16.mxu0 %v2814_v53  ;;  %1632 = vperm.xlu0 %2782, %v1366_v36  }
  0x7a   : > { %1647 = vperm.xlu1 %2783, %v1369_v37  }
  0x7b   : > { %1642 = vperm.xlu0 %2782, %v1368_v38  }
  0x7e   : > { %2674 = vmatmul.mubr.bf16.gmra.mrb[44].mxu0 %v2815_v54  ;;  %1657 = vperm.xlu1 %2783, %v1371_v39  }
  0x7f   : > { %2677 = vmatprep.mubr.bf16.mxu0 %v2816_v58  ;;  %1652 = vperm.xlu0 %2782, %v1370_v40  }
  0x82   : > { %1667 = vperm.xlu1 %2783, %v1373_v41  }
  0x83   : > { %1662 = vperm.xlu0 %2782, %v1372_v42  }
  0x86   : > { %2678 = vmatmul.mubr.bf16.gmra.mrb[48].mxu0 %v2817_v62  ;;  %1677 = vperm.xlu1 %2783, %v1375_v43  }
  0x87   : > { %2681 = vmatprep.mubr.bf16.mxu0 %v2818_v1  ;;  %1672 = vperm.xlu0 %2782, %v1374_v44  }
  0x8a   : > { %1687 = vperm.xlu1 %2783, %v1377_v45  }
  0x8b   : > { %1682 = vperm.xlu0 %2782, %v1376_v46  }
  0x8e   : > { %2682 = vmatmul.mubr.bf16.gmra.mrb[52].mxu0 %v2819_v4  ;;  %1697 = vperm.xlu1 %2783, %v1379_v47  }
  0x8f   : > { %2685 = vmatprep.mubr.bf16.mxu0 %v2820_v7  ;;  %1692 = vperm.xlu0 %2782, %v1378_v48  }
  0x96   : > { %2686 = vmatmul.mubr.bf16.gmra.mrb[56].mxu0 %v2821_v10 }
  0x97   : > { %2689 = vmatprep.mubr.bf16.mxu0 %v2822_v13 }
  0x9e   : > { %2690 = vmatmul.mubr.bf16.gmra.mrb[60].mxu0 %v2823_v16 }
  0xf9   : > { %v2631_v50 = vpop.f32.mrb[0].mxu0 }
  0xfa   : > { %v621_v51 = vadd.f32 %v2631_v50, %v3042_v49  ;;  %v612_v52 = vpop.f32.mrb[1].mxu0 }
  0xfb   : > { %v613_v53 = vadd.f32 %v3042_v49, %v612_v52  ;;  %v2632_v54 = vpop.f32.mrb[2].mxu0 }
  0xfc   : > { %v624_v55 = vadd.f32 %v2632_v54, %v3042_v49  ;;  %v615_v56 = vpop.f32.mrb[3].mxu0  ;;  %v869_v58 = vmax.f32 %v621_v51, 0.0 }
  0xfd   : > { %v616_v57 = vadd.f32 %v3042_v49, %v615_v56  ;;  %v867_v60 = vmax.f32 %v613_v53, 0.0 }
  0xfe   : > { %v870_v59 = vmax.f32 %v624_v55, 0.0 }
  0xff   : > { %v868_v61 = vmax.f32 %v616_v57, 0.0 }
 0x100   : > { %v932_v62 = vpack.c.bf16 %v870_v59, %v869_v58 }
 0x101   : > { %v2635_v63 = vpop.f32.mrb[4].mxu0  ;;  %v931_v0 = vpack.c.bf16 %v868_v61, %v867_v60 }
 0x102   : > { %v637_v1 = vadd.f32 %v2635_v63, %v3042_v49  ;;  %v628_v2 = vpop.f32.mrb[5].mxu0 }
 0x103   : > { %v629_v3 = vadd.f32 %v3042_v49, %v628_v2  ;;  %v2636_v4 = vpop.f32.mrb[6].mxu0  ;;  %2709 = vmatprep.mubr.bf16.mxu1 %v931_v0 }
 0x104   : > { %v640_v5 = vadd.f32 %v2636_v4, %v3042_v49  ;;  %v631_v6 = vpop.f32.mrb[7].mxu0  ;;  %2710 = vmatmul.mubr.bf16.vlgmr.msra.gmra.mrb[0].mxu1 %v932_v62  ;;  %v873_v8 = vmax.f32 %v637_v1, 0.0 }
 0x105   : > { %v632_v7 = vadd.f32 %v3042_v49, %v631_v6  ;;  %v871_v10 = vmax.f32 %v629_v3, 0.0 }
 0x106   : > { %v874_v9 = vmax.f32 %v640_v5, 0.0 }
 0x107   : > { %v872_v11 = vmax.f32 %v632_v7, 0.0 }
 0x108   : > { %v934_v12 = vpack.c.bf16 %v874_v9, %v873_v8 }
 0x109   : > { %v933_v13 = vpack.c.bf16 %v872_v11, %v871_v10  ;;  %v2639_v14 = vpop.f32.mrb[8].mxu0 }
 0x10a   : > { %v653_v15 = vadd.f32 %v2639_v14, %v3042_v49  ;;  %v644_v16 = vpop.f32.mrb[9].mxu0 }
 0x10b   : > { %v645_v17 = vadd.f32 %v3042_v49, %v644_v16  ;;  %v2640_v18 = vpop.f32.mrb[10].mxu0  ;;  %2713 = vmatprep.mubr.bf16.mxu1 %v933_v13 }
 0x10c   : > { %v656_v19 = vadd.f32 %v2640_v18, %v3042_v49  ;;  %v647_v20 = vpop.f32.mrb[11].mxu0  ;;  %2714 = vmatmul.mubr.bf16.gmra.mrb[4].mxu1 %v934_v12  ;;  %v877_v22 = vmax.f32 %v653_v15, 0.0 }
 0x10d   : > { %v648_v21 = vadd.f32 %v3042_v49, %v647_v20  ;;  %v875_v24 = vmax.f32 %v645_v17, 0.0 }
 0x10e   : > { %v878_v23 = vmax.f32 %v656_v19, 0.0 }
 0x10f   : > { %v876_v25 = vmax.f32 %v648_v21, 0.0 }
 0x110   : > { %v936_v26 = vpack.c.bf16 %v878_v23, %v877_v22 }
 0x111   : > { %v935_v27 = vpack.c.bf16 %v876_v25, %v875_v24  ;;  %v2643_v28 = vpop.f32.mrb[12].mxu0 }
 0x112   : > { %v669_v29 = vadd.f32 %v2643_v28, %v3042_v49  ;;  %v660_v30 = vpop.f32.mrb[13].mxu0 }
 0x113   : > { %v661_v31 = vadd.f32 %v3042_v49, %v660_v30  ;;  %v2644_v32 = vpop.f32.mrb[14].mxu0  ;;  %2717 = vmatprep.mubr.bf16.mxu1 %v935_v27 }
 0x114   : > { %v672_v33 = vadd.f32 %v2644_v32, %v3042_v49  ;;  %v663_v34 = vpop.f32.mrb[15].mxu0  ;;  %2718 = vmatmul.mubr.bf16.gmra.mrb[8].mxu1 %v936_v26  ;;  %v881_v36 = vmax.f32 %v669_v29, 0.0 }
 0x115   : > { %v664_v35 = vadd.f32 %v3042_v49, %v663_v34  ;;  %v879_v38 = vmax.f32 %v661_v31, 0.0 }
 0x116   : > { %v882_v37 = vmax.f32 %v672_v33, 0.0 }
 0x117   : > { %v880_v39 = vmax.f32 %v664_v35, 0.0 }
 0x118   : > { %v938_v40 = vpack.c.bf16 %v882_v37, %v881_v36 }
 0x119   : > { %v937_v41 = vpack.c.bf16 %v880_v39, %v879_v38  ;;  %v2647_v42 = vpop.f32.mrb[16].mxu0 }
 0x11a   : > { %v685_v43 = vadd.f32 %v2647_v42, %v3042_v49  ;;  %v676_v44 = vpop.f32.mrb[17].mxu0 }
 0x11b   : > { %v677_v45 = vadd.f32 %v3042_v49, %v676_v44  ;;  %v2648_v46 = vpop.f32.mrb[18].mxu0  ;;  %2721 = vmatprep.mubr.bf16.mxu1 %v937_v41 }
 0x11c   : > { %v688_v47 = vadd.f32 %v2648_v46, %v3042_v49  ;;  %v679_v48 = vpop.f32.mrb[19].mxu0  ;;  %2722 = vmatmul.mubr.bf16.gmra.mrb[12].mxu1 %v938_v40  ;;  %v885_v51 = vmax.f32 %v685_v43, 0.0 }
 0x11d   : > { %v680_v50 = vadd.f32 %v3042_v49, %v679_v48  ;;  %v883_v53 = vmax.f32 %v677_v45, 0.0 }
 0x11e   : > { %v886_v52 = vmax.f32 %v688_v47, 0.0 }
 0x11f   : > { %v884_v54 = vmax.f32 %v680_v50, 0.0 }
 0x120   : > { %v940_v55 = vpack.c.bf16 %v886_v52, %v885_v51 }
 0x121   : > { %v939_v56 = vpack.c.bf16 %v884_v54, %v883_v53  ;;  %v2651_v57 = vpop.f32.mrb[20].mxu0 }
 0x122   : > { %v701_v58 = vadd.f32 %v2651_v57, %v3042_v49  ;;  %v692_v59 = vpop.f32.mrb[21].mxu0 }
 0x123   : > { %v693_v60 = vadd.f32 %v3042_v49, %v692_v59  ;;  %v2652_v61 = vpop.f32.mrb[22].mxu0  ;;  %2725 = vmatprep.mubr.bf16.mxu1 %v939_v56 }
 0x124   : > { %v704_v62 = vadd.f32 %v2652_v61, %v3042_v49  ;;  %v695_v63 = vpop.f32.mrb[23].mxu0  ;;  %2726 = vmatmul.mubr.bf16.gmra.mrb[16].mxu1 %v940_v55  ;;  %v889_v1 = vmax.f32 %v701_v58, 0.0 }
 0x125   : > { %v696_v0 = vadd.f32 %v3042_v49, %v695_v63  ;;  %v887_v3 = vmax.f32 %v693_v60, 0.0 }
 0x126   : > { %v890_v2 = vmax.f32 %v704_v62, 0.0 }
 0x127   : > { %v888_v4 = vmax.f32 %v696_v0, 0.0 }
 0x128   : > { %v942_v5 = vpack.c.bf16 %v890_v2, %v889_v1 }
 0x129   : > { %v941_v6 = vpack.c.bf16 %v888_v4, %v887_v3  ;;  %v2655_v7 = vpop.f32.mrb[24].mxu0 }
 0x12a   : > { %v717_v8 = vadd.f32 %v2655_v7, %v3042_v49  ;;  %v708_v9 = vpop.f32.mrb[25].mxu0 }
 0x12b   : > { %v709_v10 = vadd.f32 %v3042_v49, %v708_v9  ;;  %v2656_v11 = vpop.f32.mrb[26].mxu0  ;;  %2729 = vmatprep.mubr.bf16.mxu1 %v941_v6 }
 0x12c   : > { %v720_v12 = vadd.f32 %v2656_v11, %v3042_v49  ;;  %v711_v13 = vpop.f32.mrb[27].mxu0  ;;  %2730 = vmatmul.mubr.bf16.gmra.mrb[20].mxu1 %v942_v5  ;;  %v893_v15 = vmax.f32 %v717_v8, 0.0 }
 0x12d   : > { %v712_v14 = vadd.f32 %v3042_v49, %v711_v13  ;;  %v891_v17 = vmax.f32 %v709_v10, 0.0 }
 0x12e   : > { %v894_v16 = vmax.f32 %v720_v12, 0.0 }
 0x12f   : > { %v892_v18 = vmax.f32 %v712_v14, 0.0 }
 0x130   : > { %v944_v19 = vpack.c.bf16 %v894_v16, %v893_v15 }
 0x131   : > { %v943_v20 = vpack.c.bf16 %v892_v18, %v891_v17  ;;  %v2659_v21 = vpop.f32.mrb[28].mxu0 }
 0x132   : > { %v733_v22 = vadd.f32 %v2659_v21, %v3042_v49  ;;  %v724_v23 = vpop.f32.mrb[29].mxu0 }
 0x133   : > { %v725_v24 = vadd.f32 %v3042_v49, %v724_v23  ;;  %v2660_v25 = vpop.f32.mrb[30].mxu0  ;;  %2733 = vmatprep.mubr.bf16.mxu1 %v943_v20 }
 0x134   : > { %v736_v26 = vadd.f32 %v2660_v25, %v3042_v49  ;;  %v727_v27 = vpop.f32.mrb[31].mxu0  ;;  %2734 = vmatmul.mubr.bf16.gmra.mrb[24].mxu1 %v944_v19  ;;  %v897_v29 = vmax.f32 %v733_v22, 0.0 }
 0x135   : > { %v728_v28 = vadd.f32 %v3042_v49, %v727_v27  ;;  %v895_v31 = vmax.f32 %v725_v24, 0.0 }
 0x136   : > { %v898_v30 = vmax.f32 %v736_v26, 0.0 }
 0x137   : > { %v896_v32 = vmax.f32 %v728_v28, 0.0 }
 0x138   : > { %v946_v33 = vpack.c.bf16 %v898_v30, %v897_v29 }
 0x139   : > { %v945_v34 = vpack.c.bf16 %v896_v32, %v895_v31  ;;  %v2663_v35 = vpop.f32.mrb[32].mxu0 }
 0x13a   : > { %v749_v36 = vadd.f32 %v2663_v35, %v3042_v49  ;;  %v740_v37 = vpop.f32.mrb[33].mxu0 }
 0x13b   : > { %v741_v38 = vadd.f32 %v3042_v49, %v740_v37  ;;  %v2664_v39 = vpop.f32.mrb[34].mxu0  ;;  %2737 = vmatprep.mubr.bf16.mxu1 %v945_v34 }
 0x13c   : > { %v752_v40 = vadd.f32 %v2664_v39, %v3042_v49  ;;  %v743_v41 = vpop.f32.mrb[35].mxu0  ;;  %2738 = vmatmul.mubr.bf16.gmra.mrb[28].mxu1 %v946_v33  ;;  %v901_v43 = vmax.f32 %v749_v36, 0.0 }
 0x13d   : > { %v744_v42 = vadd.f32 %v3042_v49, %v743_v41  ;;  %v899_v45 = vmax.f32 %v741_v38, 0.0 }
 0x13e   : > { %v902_v44 = vmax.f32 %v752_v40, 0.0 }
 0x13f   : > { %v900_v46 = vmax.f32 %v744_v42, 0.0 }
 0x140   : > { %v948_v47 = vpack.c.bf16 %v902_v44, %v901_v43 }
 0x141   : > { %v947_v48 = vpack.c.bf16 %v900_v46, %v899_v45  ;;  %v2667_v50 = vpop.f32.mrb[36].mxu0 }
 0x142   : > { %v765_v51 = vadd.f32 %v2667_v50, %v3042_v49  ;;  %v756_v52 = vpop.f32.mrb[37].mxu0 }
 0x143   : > { %v757_v53 = vadd.f32 %v3042_v49, %v756_v52  ;;  %v2668_v54 = vpop.f32.mrb[38].mxu0  ;;  %2741 = vmatprep.mubr.bf16.mxu1 %v947_v48 }
 0x144   : > { %v768_v55 = vadd.f32 %v2668_v54, %v3042_v49  ;;  %v759_v56 = vpop.f32.mrb[39].mxu0  ;;  %2742 = vmatmul.mubr.bf16.gmra.mrb[32].mxu1 %v948_v47  ;;  %v905_v58 = vmax.f32 %v765_v51, 0.0 }
 0x145   : > { %v760_v57 = vadd.f32 %v3042_v49, %v759_v56  ;;  %v903_v60 = vmax.f32 %v757_v53, 0.0 }
 0x146   : > { %v906_v59 = vmax.f32 %v768_v55, 0.0 }
 0x147   : > { %v904_v61 = vmax.f32 %v760_v57, 0.0 }
 0x148   : > { %v950_v62 = vpack.c.bf16 %v906_v59, %v905_v58 }
 0x149   : > { %v949_v63 = vpack.c.bf16 %v904_v61, %v903_v60  ;;  %v2671_v0 = vpop.f32.mrb[40].mxu0 }
 0x14a   : > { %v781_v1 = vadd.f32 %v2671_v0, %v3042_v49  ;;  %v772_v2 = vpop.f32.mrb[41].mxu0 }
 0x14b   : > { %v773_v3 = vadd.f32 %v3042_v49, %v772_v2  ;;  %v2672_v4 = vpop.f32.mrb[42].mxu0  ;;  %2745 = vmatprep.mubr.bf16.mxu1 %v949_v63 }
 0x14c   : > { %v784_v5 = vadd.f32 %v2672_v4, %v3042_v49  ;;  %v775_v6 = vpop.f32.mrb[43].mxu0  ;;  %2746 = vmatmul.mubr.bf16.gmra.mrb[36].mxu1 %v950_v62  ;;  %v909_v8 = vmax.f32 %v781_v1, 0.0 }
 0x14d   : > { %v776_v7 = vadd.f32 %v3042_v49, %v775_v6  ;;  %v907_v10 = vmax.f32 %v773_v3, 0.0 }
 0x14e   : > { %v910_v9 = vmax.f32 %v784_v5, 0.0 }
 0x14f   : > { %v908_v11 = vmax.f32 %v776_v7, 0.0 }
 0x150   : > { %v952_v12 = vpack.c.bf16 %v910_v9, %v909_v8 }
 0x151   : > { %v951_v13 = vpack.c.bf16 %v908_v11, %v907_v10  ;;  %v2675_v14 = vpop.f32.mrb[44].mxu0 }
 0x152   : > { %v797_v15 = vadd.f32 %v2675_v14, %v3042_v49  ;;  %v788_v16 = vpop.f32.mrb[45].mxu0 }
 0x153   : > { %v789_v17 = vadd.f32 %v3042_v49, %v788_v16  ;;  %v2676_v18 = vpop.f32.mrb[46].mxu0  ;;  %2749 = vmatprep.mubr.bf16.mxu1 %v951_v13 }
 0x154   : > { %v800_v19 = vadd.f32 %v2676_v18, %v3042_v49  ;;  %v791_v20 = vpop.f32.mrb[47].mxu0  ;;  %2750 = vmatmul.mubr.bf16.gmra.mrb[40].mxu1 %v952_v12  ;;  %v913_v22 = vmax.f32 %v797_v15, 0.0 }
 0x155   : > { %v792_v21 = vadd.f32 %v3042_v49, %v791_v20  ;;  %v911_v24 = vmax.f32 %v789_v17, 0.0 }
 0x156   : > { %v914_v23 = vmax.f32 %v800_v19, 0.0 }
 0x157   : > { %v912_v25 = vmax.f32 %v792_v21, 0.0  ;;  %v1393_v21 = vpop.permute.xlu1 %1392 }
 0x158   : > { %v954_v26 = vpack.c.bf16 %v914_v23, %v913_v22  ;;  %v1383_v22 = vpop.permute.xlu0 %1382 }
 0x159   : > { %v953_v27 = vpack.c.bf16 %v912_v25, %v911_v24  ;;  %v2679_v28 = vpop.f32.mrb[48].mxu0 }
 0x15a   : > { %v813_v29 = vadd.f32 %v2679_v28, %v3042_v49  ;;  %v804_v30 = vpop.f32.mrb[49].mxu0 }
 0x15b   : > { %v805_v31 = vadd.f32 %v3042_v49, %v804_v30  ;;  %v2680_v32 = vpop.f32.mrb[50].mxu0  ;;  %2753 = vmatprep.mubr.bf16.mxu1 %v953_v27  ;;  %v1398_v23 = vpop.permute.xlu1 %1397 }
 0x15c   : > { %v816_v33 = vadd.f32 %v2680_v32, %v3042_v49  ;;  %v807_v34 = vpop.f32.mrb[51].mxu0  ;;  %2754 = vmatmul.mubr.bf16.gmra.mrb[44].mxu1 %v954_v26  ;;  %v917_v36 = vmax.f32 %v813_v29, 0.0  ;;  %v1388_v24 = vpop.permute.xlu0 %1387 }
 0x15d   : > { %v808_v35 = vadd.f32 %v3042_v49, %v807_v34  ;;  %v915_v38 = vmax.f32 %v805_v31, 0.0 }
 0x15e   : > { %v918_v37 = vmax.f32 %v816_v33, 0.0 }
 0x15f   : > { %v916_v39 = vmax.f32 %v808_v35, 0.0  ;;  %v1408_v25 = vpop.permute.xlu1 %1407 }
 0x160   : > { %v956_v40 = vpack.c.bf16 %v918_v37, %v917_v36  ;;  %v1403_v26 = vpop.permute.xlu0 %1402 }
 0x161   : > { %v955_v41 = vpack.c.bf16 %v916_v39, %v915_v38  ;;  %v2683_v42 = vpop.f32.mrb[52].mxu0 }
 0x162   : > { %v829_v43 = vadd.f32 %v2683_v42, %v3042_v49  ;;  %v820_v44 = vpop.f32.mrb[53].mxu0 }
 0x163   : > { %v821_v45 = vadd.f32 %v3042_v49, %v820_v44  ;;  %v2684_v46 = vpop.f32.mrb[54].mxu0  ;;  %2757 = vmatprep.mubr.bf16.mxu1 %v955_v41  ;;  %v1418_v27 = vpop.permute.xlu1 %1417 }
 0x164   : > { %v832_v47 = vadd.f32 %v2684_v46, %v3042_v49  ;;  %v823_v48 = vpop.f32.mrb[55].mxu0  ;;  %2758 = vmatmul.mubr.bf16.gmra.mrb[48].mxu1 %v956_v40  ;;  %v921_v51 = vmax.f32 %v829_v43, 0.0  ;;  %v1413_v28 = vpop.permute.xlu0 %1412 }
 0x165   : > { %v824_v50 = vadd.f32 %v3042_v49, %v823_v48  ;;  %v919_v53 = vmax.f32 %v821_v45, 0.0 }
 0x166   : > { %v922_v52 = vmax.f32 %v832_v47, 0.0 }
 0x167   : > { %v920_v54 = vmax.f32 %v824_v50, 0.0  ;;  %v1428_v29 = vpop.permute.xlu1 %1427 }
 0x168   : > { %v958_v55 = vpack.c.bf16 %v922_v52, %v921_v51  ;;  %v1423_v30 = vpop.permute.xlu0 %1422 }
 0x169   : > { %v957_v56 = vpack.c.bf16 %v920_v54, %v919_v53  ;;  %v2687_v57 = vpop.f32.mrb[56].mxu0 }
 0x16a   : > { %v845_v58 = vadd.f32 %v2687_v57, %v3042_v49  ;;  %v836_v59 = vpop.f32.mrb[57].mxu0 }
 0x16b   : > { %v837_v60 = vadd.f32 %v3042_v49, %v836_v59  ;;  %v2688_v61 = vpop.f32.mrb[58].mxu0  ;;  %2761 = vmatprep.mubr.bf16.mxu1 %v957_v56  ;;  %v1438_v31 = vpop.permute.xlu1 %1437 }
 0x16c   : > { %v848_v62 = vadd.f32 %v2688_v61, %v3042_v49  ;;  %v839_v63 = vpop.f32.mrb[59].mxu0  ;;  %2762 = vmatmul.mubr.bf16.gmra.mrb[52].mxu1 %v958_v55  ;;  %v925_v1 = vmax.f32 %v845_v58, 0.0 }
 0x16d   : > { %v840_v0 = vadd.f32 %v3042_v49, %v839_v63  ;;  %v923_v3 = vmax.f32 %v837_v60, 0.0 }
 0x16e   : > { %v926_v2 = vmax.f32 %v848_v62, 0.0 }
 0x16f   : > { %v924_v4 = vmax.f32 %v840_v0, 0.0  ;;  %v3108_v32 = vpop.permute.xlu1 %1447 }
 0x170   : > { %v960_v5 = vpack.c.bf16 %v926_v2, %v925_v1 }
 0x171   : > { %v959_v6 = vpack.c.bf16 %v924_v4, %v923_v3  ;;  %v2691_v7 = vpop.f32.mrb[60].mxu0 }
 0x172   : > { %v861_v8 = vadd.f32 %v2691_v7, %v3042_v49  ;;  %v852_v9 = vpop.f32.mrb[61].mxu0 }
 0x173   : > { %v853_v10 = vadd.f32 %v3042_v49, %v852_v9  ;;  %v2692_v11 = vpop.f32.mrb[62].mxu0  ;;  %2765 = vmatprep.mubr.bf16.mxu1 %v959_v6  ;;  %v1458_v34 = vpop.permute.xlu1 %1457 }
 0x174   : > { %v864_v12 = vadd.f32 %v2692_v11, %v3042_v49  ;;  %v855_v13 = vpop.f32.mrb[63].mxu0  ;;  %2766 = vmatmul.mubr.bf16.gmra.mrb[56].mxu1 %v960_v5  ;;  %v929_v15 = vmax.f32 %v861_v8, 0.0 }
 0x175   : > { %v856_v14 = vadd.f32 %v3042_v49, %v855_v13  ;;  %v927_v17 = vmax.f32 %v853_v10, 0.0  ;;  %v1433_v49 = vpop.permute.xlu0 %1432 }
 0x176   : > { %v930_v16 = vmax.f32 %v864_v12, 0.0 }
 0x177   : > { %v928_v18 = vmax.f32 %v856_v14, 0.0  ;;  %v3110_v36 = vpop.permute.xlu1 %1467 }
 0x178   : > { %v962_v19 = vpack.c.bf16 %v930_v16, %v929_v15 }
 0x179   : > { %v961_v20 = vpack.c.bf16 %v928_v18, %v927_v17  ;;  %v1443_v33 = vpop.permute.xlu0 %1442 }
 0x17b   : > { %2769 = vmatprep.mubr.bf16.mxu1 %v961_v20  ;;  %v3114_v38 = vpop.permute.xlu1 %1477 }
 0x17c   : > { %2770 = vmatmul.mubr.bf16.gmra.mrb[60].mxu1 %v962_v19 }
 0x17d   : > { %v1453_v35 = vpop.permute.xlu0 %1452 }
 0x17f   : > { %v3118_v40 = vpop.permute.xlu1 %1487 }
 0x181   : > { %v3112_v37 = vpop.permute.xlu0 %1462 }
 0x183   : > { %v3122_v43 = vpop.permute.xlu1 %1497 }
 0x185   : > { %v3116_v39 = vpop.permute.xlu0 %1472 }
 0x187   : > { %v3133_v55 = vpop.permute.xlu1 %1507 }
 0x189   : > { %v3120_v41 = vpop.permute.xlu0 %1482 }
 0x18b   : > { %v3139_v1 = vpop.permute.xlu1 %1517 }
 0x18d   : > { %v3124_v45 = vpop.permute.xlu0 %1492 }
 0x18f   : > { %v3145_v8 = vpop.permute.xlu1 %1527 }
 0x191   : > { %v3136_v56 = vpop.permute.xlu0 %1502 }
 0x193   : > { %v3151_v18 = vpop.permute.xlu1 %1537 }
 0x195   : > { %v3141_v3 = vpop.permute.xlu0 %1512 }
 0x199   : > { %v3147_v12 = vpop.permute.xlu0 %1522 }
 0x19d   : > { %v1533_v20 = vpop.permute.xlu0 %1532 }
 0x1d7   : > { %v2711_v42 = vpop.f32.mrb[0].mxu1 }
 0x1d8   : > { %v1061_v44 = vpop.f32.mrb[1].mxu1  ;;  %v1702_v47 = vmul.f32 %v2711_v42, %v1393_v21 }
 0x1d9   : > { %v2712_v46 = vpop.f32.mrb[2].mxu1  ;;  %v1700_v51 = vmul.f32 %v1383_v22, %v1061_v44 }
 0x1da   : > { %v1703_v48 = vmul.f32 %v2712_v46, %v1398_v23  ;;  %v1064_v50 = vpop.f32.mrb[3].mxu1 }
 0x1db   : > { %v1701_v52 = vmul.f32 %v1388_v24, %v1064_v50 }
 0x1dc   : > { %v2350_v53 = vpack.c.bf16 %v1703_v48, %v1702_v47 }
 0x1dd   : > { %v2345_v54 = vpack.c.bf16 %v1701_v52, %v1700_v51 }
 0x1de   : > { %2502 = vst [vmem:[%s3131_s19 + $0x8] sm:$0xff] %v2350_v53  }
 0x1df   : > { %2346 = vst [vmem:[%s3131_s19] sm:$0xff] %v2345_v54   ;;  %v2715_v57 = vpop.f32.mrb[4].mxu1 }
 0x1e0   : > { %v1077_v58 = vpop.f32.mrb[5].mxu1  ;;  %v1706_v60 = vmul.f32 %v2715_v57, %v1413_v28 }
 0x1e1   : > { %v2716_v59 = vpop.f32.mrb[6].mxu1  ;;  %v1704_v63 = vmul.f32 %v1403_v26, %v1077_v58 }
 0x1e2   : > { %v1707_v61 = vmul.f32 %v2716_v59, %v1418_v27  ;;  %v1080_v62 = vpop.f32.mrb[7].mxu1 }
 0x1e3   : > { %v1705_v0 = vmul.f32 %v1408_v25, %v1080_v62 }
 0x1e4   : > { %v2360_v2 = vpack.c.bf16 %v1707_v61, %v1706_v60 }
 0x1e5   : > { %v2355_v4 = vpack.c.bf16 %v1705_v0, %v1704_v63 }
 0x1e6   : > { %2504 = vst [vmem:[%s3131_s19 + $0x18] sm:$0xff] %v2360_v2  }
 0x1e7   : > { %2503 = vst [vmem:[%s3131_s19 + $0x10] sm:$0xff] %v2355_v4   ;;  %v2719_v5 = vpop.f32.mrb[8].mxu1 }
 0x1e8   : > { %v1093_v6 = vpop.f32.mrb[9].mxu1  ;;  %v1710_v9 = vmul.f32 %v2719_v5, %v1433_v49 }
 0x1e9   : > { %v2720_v7 = vpop.f32.mrb[10].mxu1  ;;  %v1708_v13 = vmul.f32 %v1423_v30, %v1093_v6  ;;  %v3157_v30 = vpop.permute.xlu0 %1542 }
 0x1ea   : > { %v1711_v10 = vmul.f32 %v2720_v7, %v1438_v31  ;;  %v1096_v11 = vpop.f32.mrb[11].mxu1 }
 0x1eb   : > { %v1709_v14 = vmul.f32 %v1428_v29, %v1096_v11  ;;  %v3154_v29 = vpop.permute.xlu1 %1547 }
 0x1ec   : > { %v2370_v15 = vpack.c.bf16 %v1711_v10, %v1710_v9 }
 0x1ed   : > { %v2365_v16 = vpack.c.bf16 %v1709_v14, %v1708_v13  ;;  %v1553_v48 = vpop.permute.xlu0 %1552 }
 0x1ee   : > { %2506 = vst [vmem:[%s3131_s19 + $0x28] sm:$0xff] %v2370_v15  }
 0x1ef   : > { %2505 = vst [vmem:[%s3131_s19 + $0x20] sm:$0xff] %v2365_v16   ;;  %v2723_v17 = vpop.f32.mrb[12].mxu1  ;;  %v1558_v46 = vpop.permute.xlu1 %1557 }
 0x1f0   : > { %v1109_v19 = vpop.f32.mrb[13].mxu1  ;;  %v1714_v22 = vmul.f32 %v2723_v17, %v1453_v35 }
 0x1f1   : > { %v2724_v21 = vpop.f32.mrb[14].mxu1  ;;  %v1712_v25 = vmul.f32 %v1443_v33, %v1109_v19  ;;  %v1563_v57 = vpop.permute.xlu0 %1562 }
 0x1f2   : > { %v1715_v23 = vmul.f32 %v2724_v21, %v1458_v34  ;;  %v1112_v24 = vpop.f32.mrb[15].mxu1 }
 0x1f3   : > { %v1713_v26 = vmul.f32 %v3108_v32, %v1112_v24  ;;  %v3166_v54 = vpop.permute.xlu1 %1567 }
 0x1f4   : > { %v2380_v27 = vpack.c.bf16 %v1715_v23, %v1714_v22 }
 0x1f5   : > { %v2375_v28 = vpack.c.bf16 %v1713_v26, %v1712_v25  ;;  %v1573_v0 = vpop.permute.xlu0 %1572 }
 0x1f6   : > { %2508 = vst [vmem:[%s3131_s19 + $0x38] sm:$0xff] %v2380_v27  }
 0x1f7   : > { %2507 = vst [vmem:[%s3131_s19 + $0x30] sm:$0xff] %v2375_v28   ;;  %v2727_v31 = vpop.f32.mrb[16].mxu1  ;;  %v1578_v62 = vpop.permute.xlu1 %1577 }
 0x1f8   : > { %v1125_v49 = vpop.f32.mrb[17].mxu1  ;;  %v1718_v35 = vmul.f32 %v2727_v31, %v3116_v39 }
 0x1f9   : > { %v2728_v42 = vpop.f32.mrb[18].mxu1  ;;  %v1716_v32 = vmul.f32 %v3112_v37, %v1125_v49  ;;  %v1583_v9 = vpop.permute.xlu0 %1582 }
 0x1fa   : > { %v1719_v34 = vmul.f32 %v2728_v42, %v3114_v38  ;;  %v1128_v33 = vpop.f32.mrb[19].mxu1 }
 0x1fb   : > { %v1717_v44 = vmul.f32 %v3110_v36, %v1128_v33  ;;  %v1588_v7 = vpop.permute.xlu1 %1587 }
 0x1fc   : > { %v2390_v47 = vpack.c.bf16 %v1719_v34, %v1718_v35 }
 0x1fd   : > { %v2385_v50 = vpack.c.bf16 %v1717_v44, %v1716_v32  ;;  %v1593_v17 = vpop.permute.xlu0 %1592 }
 0x1fe   : > { %2510 = vst [vmem:[%s3131_s19 + $0x48] sm:$0xff] %v2390_v47  }
 0x1ff   : > { %2509 = vst [vmem:[%s3131_s19 + $0x40] sm:$0xff] %v2385_v50   ;;  %v2731_v51 = vpop.f32.mrb[20].mxu1 }
 0x200   : > { %v1141_v52 = vpop.f32.mrb[21].mxu1  ;;  %v1722_v38 = vmul.f32 %v2731_v51, %v3124_v45 }
 0x201   : > { %v2732_v53 = vpop.f32.mrb[22].mxu1  ;;  %v1720_v36 = vmul.f32 %v3120_v41, %v1141_v52  ;;  %v1603_v26 = vpop.permute.xlu0 %1602 }
 0x202   : > { %v1723_v39 = vmul.f32 %v2732_v53, %v3122_v43  ;;  %v1144_v37 = vpop.f32.mrb[23].mxu1 }
 0x203   : > { %v1721_v58 = vmul.f32 %v3118_v40, %v1144_v37 }
 0x204   : > { %v2400_v59 = vpack.c.bf16 %v1723_v39, %v1722_v38 }
 0x205   : > { %v2395_v60 = vpack.c.bf16 %v1721_v58, %v1720_v36  ;;  %v1613_v35 = vpop.permute.xlu0 %1612 }
 0x206   : > { %2512 = vst [vmem:[%s3131_s19 + $0x58] sm:$0xff] %v2400_v59  }
 0x207   : > { %2511 = vst [vmem:[%s3131_s19 + $0x50] sm:$0xff] %v2395_v60   ;;  %v2735_v61 = vpop.f32.mrb[24].mxu1 }
 0x208   : > { %v1157_v63 = vpop.f32.mrb[25].mxu1  ;;  %v1726_v45 = vmul.f32 %v2735_v61, %v3141_v3 }
 0x209   : > { %v2736_v2 = vpop.f32.mrb[26].mxu1  ;;  %v1724_v41 = vmul.f32 %v3136_v56, %v1157_v63  ;;  %v1623_v50 = vpop.permute.xlu0 %1622 }
 0x20a   : > { %v1727_v43 = vmul.f32 %v2736_v2, %v3139_v1  ;;  %v1160_v4 = vpop.f32.mrb[27].mxu1 }
 0x20b   : > { %v1725_v40 = vmul.f32 %v3133_v55, %v1160_v4  ;;  %v1598_v55 = vpop.permute.xlu1 %1597 }
 0x20c   : > { %v2410_v5 = vpack.c.bf16 %v1727_v43, %v1726_v45 }
 0x20d   : > { %v2405_v6 = vpack.c.bf16 %v1725_v40, %v1724_v41  ;;  %v1633_v60 = vpop.permute.xlu0 %1632 }
 0x20e   : > { %2514 = vst [vmem:[%s3131_s19 + $0x68] sm:$0xff] %v2410_v5  }
 0x20f   : > { %2513 = vst [vmem:[%s3131_s19 + $0x60] sm:$0xff] %v2405_v6   ;;  %v2739_v10 = vpop.f32.mrb[28].mxu1  ;;  %v1608_v24 = vpop.permute.xlu1 %1607 }
 0x210   : > { %v1173_v11 = vpop.f32.mrb[29].mxu1  ;;  %v1730_v14 = vmul.f32 %v2739_v10, %v1533_v20 }
 0x211   : > { %v2740_v13 = vpop.f32.mrb[30].mxu1  ;;  %v1728_v15 = vmul.f32 %v3147_v12, %v1173_v11  ;;  %v1643_v4 = vpop.permute.xlu0 %1642 }
 0x212   : > { %v1731_v3 = vmul.f32 %v2740_v13, %v3151_v18  ;;  %v1176_v1 = vpop.f32.mrb[31].mxu1 }
 0x213   : > { %v1729_v56 = vmul.f32 %v3145_v8, %v1176_v1  ;;  %v1618_v49 = vpop.permute.xlu1 %1617 }
 0x214   : > { %v2420_v16 = vpack.c.bf16 %v1731_v3, %v1730_v14 }
 0x215   : > { %v2415_v19 = vpack.c.bf16 %v1729_v56, %v1728_v15  ;;  %v1653_v11 = vpop.permute.xlu0 %1652 }
 0x216   : > { %2516 = vst [vmem:[%s3131_s19 + $0x78] sm:$0xff] %v2420_v16  }
 0x217   : > { %2515 = vst [vmem:[%s3131_s19 + $0x70] sm:$0xff] %v2415_v19   ;;  %v2743_v21 = vpop.f32.mrb[32].mxu1 }
 0x218   : > { %v1189_v22 = vpop.f32.mrb[33].mxu1  ;;  %v1734_v20 = vmul.f32 %v2743_v21, %v1553_v48 }
 0x219   : > { %v2744_v23 = vpop.f32.mrb[34].mxu1  ;;  %v1732_v12 = vmul.f32 %v3157_v30, %v1189_v22  ;;  %v1663_v19 = vpop.permute.xlu0 %1662 }
 0x21a   : > { %v1735_v25 = vmul.f32 %v2744_v23, %v1558_v46  ;;  %v1192_v18 = vpop.f32.mrb[35].mxu1 }
 0x21b   : > { %v1733_v8 = vmul.f32 %v3154_v29, %v1192_v18  ;;  %v1628_v29 = vpop.permute.xlu1 %1627 }
 0x21c   : > { %v2430_v27 = vpack.c.bf16 %v1735_v25, %v1734_v20 }
 0x21d   : > { %v2425_v28 = vpack.c.bf16 %v1733_v8, %v1732_v12 }
 0x21e   : > { %2518 = vst [vmem:[%s3131_s19 + $0x88] sm:$0xff] %v2430_v27   ;;  %v1673_v27 = vpop.permute.xlu0 %1672 }
 0x21f   : > { %2517 = vst [vmem:[%s3131_s19 + $0x80] sm:$0xff] %v2425_v28   ;;  %v2747_v31 = vpop.f32.mrb[36].mxu1  ;;  %v1638_v59 = vpop.permute.xlu1 %1637 }
 0x220   : > { %v1205_v42 = vpop.f32.mrb[37].mxu1  ;;  %v1738_v33 = vmul.f32 %v2747_v31, %v1573_v0 }
 0x221   : > { %v2748_v34 = vpop.f32.mrb[38].mxu1  ;;  %v1736_v46 = vmul.f32 %v1563_v57, %v1205_v42 }
 0x222   : > { %v1739_v32 = vmul.f32 %v2748_v34, %v1578_v62  ;;  %v1208_v44 = vpop.f32.mrb[39].mxu1 }
 0x223   : > { %v1737_v47 = vmul.f32 %v3166_v54, %v1208_v44  ;;  %v1648_v0 = vpop.permute.xlu1 %1647  ;;  %v1683_v44 = vpop.permute.xlu0 %1682 }
 0x224   : > { %v2440_v30 = vpack.c.bf16 %v1739_v32, %v1738_v33 }
 0x225   : > { %v2435_v48 = vpack.c.bf16 %v1737_v47, %v1736_v46 }
 0x226   : > { %2520 = vst [vmem:[%s3131_s19 + $0x98] sm:$0xff] %v2440_v30  }
 0x227   : > { %2519 = vst [vmem:[%s3131_s19 + $0x90] sm:$0xff] %v2435_v48   ;;  %v2751_v51 = vpop.f32.mrb[40].mxu1 }
 0x228   : > { %v1221_v52 = vpop.f32.mrb[41].mxu1  ;;  %v1742_v38 = vmul.f32 %v2751_v51, %v1593_v17 }
 0x229   : > { %v2752_v53 = vpop.f32.mrb[42].mxu1  ;;  %v1740_v36 = vmul.f32 %v1583_v9, %v1221_v52  ;;  %v1658_v9 = vpop.permute.xlu1 %1657 }
 0x22a   : > { %v1743_v39 = vmul.f32 %v2752_v53, %v1598_v55  ;;  %v1224_v37 = vpop.f32.mrb[43].mxu1  ;;  %v1693_v52 = vpop.permute.xlu0 %1692 }
 0x22b   : > { %v1741_v58 = vmul.f32 %v1588_v7, %v1224_v37 }
 0x22c   : > { %v2450_v57 = vpack.c.bf16 %v1743_v39, %v1742_v38 }
 0x22d   : > { %v2445_v54 = vpack.c.bf16 %v1741_v58, %v1740_v36  ;;  %v1668_v17 = vpop.permute.xlu1 %1667 }
 0x22e   : > { %2522 = vst [vmem:[%s3131_s19 + $0xa8] sm:$0xff] %v2450_v57  }
 0x22f   : > { %2521 = vst [vmem:[%s3131_s19 + $0xa0] sm:$0xff] %v2445_v54   ;;  %v2755_v61 = vpop.f32.mrb[44].mxu1 }
 0x230   : > { %v1237_v62 = vpop.f32.mrb[45].mxu1  ;;  %v1746_v2 = vmul.f32 %v2755_v61, %v1613_v35 }
 0x231   : > { %v2756_v63 = vpop.f32.mrb[46].mxu1  ;;  %v1744_v41 = vmul.f32 %v1603_v26, %v1237_v62  ;;  %v1678_v12 = vpop.permute.xlu1 %1677 }
 0x232   : > { %v1747_v45 = vmul.f32 %v2756_v63, %v1618_v49  ;;  %v1240_v43 = vpop.f32.mrb[47].mxu1 }
 0x233   : > { %v1745_v40 = vmul.f32 %v1608_v24, %v1240_v43 }
 0x234   : > { %v2460_v5 = vpack.c.bf16 %v1747_v45, %v1746_v2 }
 0x235   : > { %v2455_v6 = vpack.c.bf16 %v1745_v40, %v1744_v41  ;;  %v1688_v35 = vpop.permute.xlu1 %1687 }
 0x236   : > { %2524 = vst [vmem:[%s3131_s19 + $0xb8] sm:$0xff] %v2460_v5  }
 0x237   : > { %2523 = vst [vmem:[%s3131_s19 + $0xb0] sm:$0xff] %v2455_v6   ;;  %v2759_v7 = vpop.f32.mrb[48].mxu1 }
 0x238   : > { %v1253_v10 = vpop.f32.mrb[49].mxu1  ;;  %v1750_v14 = vmul.f32 %v2759_v7, %v1633_v60 }
 0x239   : > { %v2760_v13 = vpop.f32.mrb[50].mxu1  ;;  %v1748_v15 = vmul.f32 %v1623_v50, %v1253_v10  ;;  %v1698_v50 = vpop.permute.xlu1 %1697 }
 0x23a   : > { %v1751_v3 = vmul.f32 %v2760_v13, %v1638_v59  ;;  %v1256_v1 = vpop.f32.mrb[51].mxu1 }
 0x23b   : > { %v1749_v56 = vmul.f32 %v1628_v29, %v1256_v1 }
 0x23c   : > { %v2470_v55 = vpack.c.bf16 %v1751_v3, %v1750_v14 }
 0x23d   : > { %v2465_v16 = vpack.c.bf16 %v1749_v56, %v1748_v15 }
 0x23e   : > { %2526 = vst [vmem:[%s3131_s19 + $0xc8] sm:$0xff] %v2470_v55  }
 0x23f   : > { %2525 = vst [vmem:[%s3131_s19 + $0xc0] sm:$0xff] %v2465_v16   ;;  %v2763_v21 = vpop.f32.mrb[52].mxu1 }
 0x240   : > { %v1269_v22 = vpop.f32.mrb[53].mxu1  ;;  %v1754_v24 = vmul.f32 %v2763_v21, %v1653_v11 }
 0x241   : > { %v2764_v23 = vpop.f32.mrb[54].mxu1  ;;  %v1752_v18 = vmul.f32 %v1643_v4, %v1269_v22 }
 0x242   : > { %v1755_v20 = vmul.f32 %v2764_v23, %v1658_v9  ;;  %v1272_v25 = vpop.f32.mrb[55].mxu1 }
 0x243   : > { %v1753_v26 = vmul.f32 %v1648_v0, %v1272_v25 }
 0x244   : > { %v2480_v8 = vpack.c.bf16 %v1755_v20, %v1754_v24 }
 0x245   : > { %v2475_v28 = vpack.c.bf16 %v1753_v26, %v1752_v18 }
 0x246   : > { %2528 = vst [vmem:[%s3131_s19 + $0xd8] sm:$0xff] %v2480_v8  }
 0x247   : > { %2527 = vst [vmem:[%s3131_s19 + $0xd0] sm:$0xff] %v2475_v28   ;;  %v2767_v31 = vpop.f32.mrb[56].mxu1 }
 0x248   : > { %v1285_v49 = vpop.f32.mrb[57].mxu1  ;;  %v1758_v34 = vmul.f32 %v2767_v31, %v1673_v27 }
 0x249   : > { %v2768_v42 = vpop.f32.mrb[58].mxu1  ;;  %v1756_v46 = vmul.f32 %v1663_v19, %v1285_v49 }
 0x24a   : > { %v1759_v33 = vmul.f32 %v2768_v42, %v1678_v12  ;;  %v1288_v32 = vpop.f32.mrb[59].mxu1 }
 0x24b   : > { %v1757_v47 = vmul.f32 %v1668_v17, %v1288_v32 }
 0x24c   : > { %v2490_v30 = vpack.c.bf16 %v1759_v33, %v1758_v34 }
 0x24d   : > { %v2485_v48 = vpack.c.bf16 %v1757_v47, %v1756_v46 }
 0x24e   : > { %2530 = vst [vmem:[%s3131_s19 + $0xe8] sm:$0xff] %v2490_v30  }
 0x24f   : > { %2529 = vst [vmem:[%s3131_s19 + $0xe0] sm:$0xff] %v2485_v48   ;;  %v2771_v29 = vpop.f32.mrb[60].mxu1 }
 0x250   : > { %v1301_v51 = vpop.f32.mrb[61].mxu1  ;;  %v1762_v38 = vmul.f32 %v2771_v29, %v1693_v52 }
 0x251   : > { %v2772_v53 = vpop.f32.mrb[62].mxu1  ;;  %v1760_v36 = vmul.f32 %v1683_v44, %v1301_v51 }
 0x252   : > { %v1763_v39 = vmul.f32 %v2772_v53, %v1698_v50  ;;  %v1304_v37 = vpop.f32.mrb[63].mxu1 }
 0x253   : > { %v1761_v58 = vmul.f32 %v1688_v35, %v1304_v37 }
 0x254   : > { %v2500_v59 = vpack.c.bf16 %v1763_v39, %v1762_v38 }
 0x255   : > { %v2495_v57 = vpack.c.bf16 %v1761_v58, %v1760_v36 }
 0x256   : > { %2532 = vst [vmem:[%s3131_s19 + $0xf8] sm:$0xff] %v2500_v59  }
 0x257   : > { %2531 = vst [vmem:[%s3131_s19 + $0xf0] sm:$0xff] %v2495_v57  }
 0x258 PF: > { %s15_s18 = sadd.s32 1, %s2838_s18  }
 0x259   : > { %p12_p4 = scmp.ge.s32.totalorder %s15_s18, 4  }
 0x25b   :  { %14 = sbr.rel (!%p12_p4) target bundleno = 1 (0x1), region = 73 }

// kernel: gcn_forward.5
= control target key start
LH: loop header
LB: loop body
LE: loop exit
PB: predicated region body
PF: predicated region fallthrough
CT: control target
= control target key end

     0   :  { %s2498_s15 = smov 0   ;;  %s2500_s16 = smov 0   ;;  %s2836_s0 = inlined_call_operand.vmem [shape: s8[1024,1024], index: 0, kind: input, shape index: {}]   ;;  %s2837_s1 = inlined_call_operand.vmem [shape: bf16[1024,128], index: 1, kind: input, shape index: {}]   ;;  %s2838_s2 = inlined_call_operand.vmem [shape: f32[1024,1], index: 2, kind: input, shape index: {}]   ;;  %s2839_s3 = inlined_call_operand.vmem [shape: f32[1,128], index: 3, kind: input, shape index: {}]   ;;  %s2840_s4 = inlined_call_operand.vmem [shape: f32[1024,128], index: 4, kind: output, shape index: {}]  }
   0x1   :  { %s2502_s17 = smov 0   ;;  %s2504_s18 = smov 0  }
   0x2   :  { %s2506_s19 = smov 0   ;;  %s2508_s20 = smov 0  }
   0x3   :  { %s2510_s21 = smov 0  }
   0x4 LB: > { %s23_s22 = sadd.s32 1, %s2461_s19  ;;  %s26_s23 = sadd.s32 1, %s2465_s20  ;;  %s2469_s21 = sphi %s2510_s21, %s14_s21   ;;  %s2465_s20 = sphi %s2508_s20, %s2846_s20   ;;  %s2461_s19 = sphi %s2506_s19, %s2845_s19   ;;  %s2457_s18 = sphi %s2504_s18, %s2844_s18   ;;  %s2453_s17 = sphi %s2502_s17, %s2843_s17   ;;  %s2449_s16 = sphi %s2500_s16, %s2842_s16   ;;  %s2445_s15 = sphi %s2498_s15, %s2841_s15  }
   0x5   : > { %p24_p0 = scmp.ge.s32.totalorder %s23_s22, 2  ;;  %p42_p1 = scmp.ne.s32.totalorder %s2449_s16, %s2445_s15 }
   0x6   : > { %p43_p2 = scmp.eq.s32.totalorder %s2469_s21, 0  ;;  %s35_s27 = sadd.s32 1, %s2449_s16 }
   0x7   : > { %s2848_s22 = smov (%p24_p0, %s23_s22), 0  ;;  %s2850_s23 = smov (!%p24_p0, %s26_s23), %s2465_s20 }
   0x8   : > { %p44_p3 = por %p43_p2, %p42_p1  ;;  %p28_p4 = scmp.ge.s32.totalorder %s2850_s23, 4 }
   0x9   : > { %s31_s24 = ssub.s32 %s2461_s19, %s2848_s22  ;;  %p1983_p6 = scmp.ge.s32.totalorder %s2469_s21, 8 }
   0xa   : > { %s2852_s23 = smov (%p28_p4, %s2850_s23), 0 }
   0xb   : > { %s30_s25 = ssub.s32 %s2465_s20, %s2852_s23  ;;  %170 = sbr.rel (%p1983_p6) target bundleno = 41 (0x29), region = 20 }
   0xc   : > { %s32_s26 = sor.u32 %s31_s24, %s30_s25 }
   0xd   : > { %p33_p5 = scmp.eq.s32.totalorder %s32_s26, 0 }
   0xf   : > { %s2549_s28 = scalar_select %p33_p5, %s2449_s16, %s35_s27  }
  0x12   : > { %173 = sbr.rel (!%p44_p3) target bundleno = 41 (0x29), region = 24  ;;  %s175_s29 = sand.u32 (%p44_p3), 1, %s2449_s16  }
  0x13   : > { %s1986_s30 = sshll.u32 (%p44_p3), %s2461_s19, 2  ;;  %s1984_s5 = sshll.u32 (%p44_p3), %s175_s29, 8 }
  0x14   : > { %s2098_s6 = sshll.u32 (%p44_p3), %s2465_s20, 8  ;;  %s2563_s12 = scalar_lea.vmem (%p44_p3), [#allocation3], %s1984_s5 }
  0x15   : > { %s181_s7 = sadd.s32 (%p44_p3), %s2098_s6, %s1986_s30 }
  0x16   : > { %s1988_s8 = sshll.u32 (%p44_p3), %s181_s7, 1 }
  0x17   : > { %s2558_s11 = scalar_lea.vmem (%p44_p3), %s2836_s0, %s1988_s8 }
  0x18   : > { %v273_v0 = vld [vmem:[%s2558_s11] sm:$0xff] (%p44_p3)  ;;  %v275_v1 = vld [vmem:[%s2558_s11 + $0x10] sm:$0xff] (%p44_p3) }
  0x19   : > { %v277_v2 = vld [vmem:[%s2558_s11 + $0x20] sm:$0xff]  ;;  %274 = vst [vmem:[%s2563_s12] sm:$0xff] %v273_v0  ;;  %276 = vst [vmem:[%s2563_s12 + $0x8] sm:$0xff] %v275_v1  ;;  %v279_v3 = vld [vmem:[%s2558_s11 + $0x30] sm:$0xff] }
  0x1a   : > { %278 = vst [vmem:[%s2563_s12 + $0x10] sm:$0xff] %v277_v2  ;;  %v281_v4 = vld [vmem:[%s2558_s11 + $0x40] sm:$0xff]  ;;  %v283_v5 = vld [vmem:[%s2558_s11 + $0x50] sm:$0xff]  ;;  %280 = vst [vmem:[%s2563_s12 + $0x18] sm:$0xff] %v279_v3 }
  0x1b   : > { %282 = vst [vmem:[%s2563_s12 + $0x20] sm:$0xff] %v281_v4  ;;  %284 = vst [vmem:[%s2563_s12 + $0x28] sm:$0xff] %v283_v5  ;;  %v285_v6 = vld [vmem:[%s2558_s11 + $0x60] sm:$0xff]  ;;  %v287_v7 = vld [vmem:[%s2558_s11 + $0x70] sm:$0xff] }
  0x1c   : > { %v289_v8 = vld [vmem:[%s2558_s11 + $0x80] sm:$0xff]  ;;  %286 = vst [vmem:[%s2563_s12 + $0x30] sm:$0xff] %v285_v6  ;;  %288 = vst [vmem:[%s2563_s12 + $0x38] sm:$0xff] %v287_v7  ;;  %v291_v9 = vld [vmem:[%s2558_s11 + $0x90] sm:$0xff] }
  0x1d   : > { %290 = vst [vmem:[%s2563_s12 + $0x40] sm:$0xff] %v289_v8  ;;  %v293_v10 = vld [vmem:[%s2558_s11 + $0xa0] sm:$0xff]  ;;  %v295_v11 = vld [vmem:[%s2558_s11 + $0xb0] sm:$0xff]  ;;  %292 = vst [vmem:[%s2563_s12 + $0x48] sm:$0xff] %v291_v9 }
  0x1e   : > { %294 = vst [vmem:[%s2563_s12 + $0x50] sm:$0xff] %v293_v10  ;;  %296 = vst [vmem:[%s2563_s12 + $0x58] sm:$0xff] %v295_v11  ;;  %v297_v12 = vld [vmem:[%s2558_s11 + $0xc0] sm:$0xff]  ;;  %v299_v13 = vld [vmem:[%s2558_s11 + $0xd0] sm:$0xff] }
  0x1f   : > { %v301_v14 = vld [vmem:[%s2558_s11 + $0xe0] sm:$0xff]  ;;  %298 = vst [vmem:[%s2563_s12 + $0x60] sm:$0xff] %v297_v12  ;;  %300 = vst [vmem:[%s2563_s12 + $0x68] sm:$0xff] %v299_v13  ;;  %v303_v15 = vld [vmem:[%s2558_s11 + $0xf0] sm:$0xff] }
  0x20   : > { %302 = vst [vmem:[%s2563_s12 + $0x70] sm:$0xff] %v301_v14  ;;  %v305_v16 = vld [vmem:[%s2558_s11 + $0x100] sm:$0xff]  ;;  %v307_v17 = vld [vmem:[%s2558_s11 + $0x110] sm:$0xff]  ;;  %304 = vst [vmem:[%s2563_s12 + $0x78] sm:$0xff] %v303_v15 }
  0x21   : > { %306 = vst [vmem:[%s2563_s12 + $0x80] sm:$0xff] %v305_v16  ;;  %308 = vst [vmem:[%s2563_s12 + $0x88] sm:$0xff] %v307_v17  ;;  %v309_v18 = vld [vmem:[%s2558_s11 + $0x120] sm:$0xff]  ;;  %v311_v19 = vld [vmem:[%s2558_s11 + $0x130] sm:$0xff] }
  0x22   : > { %v313_v20 = vld [vmem:[%s2558_s11 + $0x140] sm:$0xff]  ;;  %310 = vst [vmem:[%s2563_s12 + $0x90] sm:$0xff] %v309_v18  ;;  %312 = vst [vmem:[%s2563_s12 + $0x98] sm:$0xff] %v311_v19  ;;  %v315_v21 = vld [vmem:[%s2558_s11 + $0x150] sm:$0xff] }
  0x23   : > { %314 = vst [vmem:[%s2563_s12 + $0xa0] sm:$0xff] %v313_v20  ;;  %v317_v22 = vld [vmem:[%s2558_s11 + $0x160] sm:$0xff]  ;;  %v319_v23 = vld [vmem:[%s2558_s11 + $0x170] sm:$0xff]  ;;  %316 = vst [vmem:[%s2563_s12 + $0xa8] sm:$0xff] %v315_v21 }
  0x24   : > { %318 = vst [vmem:[%s2563_s12 + $0xb0] sm:$0xff] %v317_v22  ;;  %320 = vst [vmem:[%s2563_s12 + $0xb8] sm:$0xff] %v319_v23  ;;  %v321_v24 = vld [vmem:[%s2558_s11 + $0x180] sm:$0xff]  ;;  %v323_v25 = vld [vmem:[%s2558_s11 + $0x190] sm:$0xff] }
  0x25   : > { %v325_v26 = vld [vmem:[%s2558_s11 + $0x1a0] sm:$0xff]  ;;  %322 = vst [vmem:[%s2563_s12 + $0xc0] sm:$0xff] %v321_v24  ;;  %324 = vst [vmem:[%s2563_s12 + $0xc8] sm:$0xff] %v323_v25  ;;  %v327_v27 = vld [vmem:[%s2558_s11 + $0x1b0] sm:$0xff] }
  0x26   : > { %326 = vst [vmem:[%s2563_s12 + $0xd0] sm:$0xff] %v325_v26  ;;  %v329_v28 = vld [vmem:[%s2558_s11 + $0x1c0] sm:$0xff]  ;;  %v331_v29 = vld [vmem:[%s2558_s11 + $0x1d0] sm:$0xff]  ;;  %328 = vst [vmem:[%s2563_s12 + $0xd8] sm:$0xff] %v327_v27 }
  0x27   : > { %330 = vst [vmem:[%s2563_s12 + $0xe0] sm:$0xff] %v329_v28  ;;  %332 = vst [vmem:[%s2563_s12 + $0xe8] sm:$0xff] %v331_v29  ;;  %v333_v30 = vld [vmem:[%s2558_s11 + $0x1e0] sm:$0xff]  ;;  %v335_v31 = vld [vmem:[%s2558_s11 + $0x1f0] sm:$0xff] }
  0x28   : > { %334 = vst [vmem:[%s2563_s12 + $0xf0] sm:$0xff] %v333_v30  ;;  %336 = vst [vmem:[%s2563_s12 + $0xf8] sm:$0xff] %v335_v31 }
  0x29 PF: > { %p1989_p7 = scmp.ge.s32.totalorder %s2469_s21, 1  ;;  %p359_p8 = scmp.lt.s32.totalorder %s2469_s21, 9 }
  0x2b   : > { %p360_p9 = pnand %p1989_p7, %p359_p8 }
  0x2c   : > { %s366_s13 = sand.u32 (!%p360_p9), 1, %s2445_s15   ;;  %s1991_s14 = sshll.u32 (!%p360_p9), %s2453_s17, 6 }
  0x2d   : > { %363 = sbr.rel (%p360_p9) target bundleno = 612 (0x264), region = 70  ;;  %s1990_s24 = sshll.u32 (!%p360_p9), %s366_s13, 8 }
  0x2e   : > { %p404_p10 = scmp.lt.s32.totalorder (!%p360_p9), %s1991_s14, 127  ;;  %s1993_s25 = sshll.u32 (!%p360_p9), %s2457_s18, 5 }
  0x2f   : > { %p410_p11 = scmp.lt.s32.totalorder (!%p360_p9), %s1993_s25, 127  ;;  %s2646_s18 = scalar_lea.vmem (!%p360_p9), [#allocation3], %s1990_s24 }
  0x30   : > { %p1997_p12 = scmp.ne.s32.totalorder (!%p360_p9), %s2453_s17, 0 }
  0x34   : > { %s2854_s14 = smov (!%p404_p10, %s1991_s14), 127  ;;  %s2856_s25 = smov (!%p410_p11, %s1993_s25), 127 }
  0x35   : > { %s1992_s26 = sshll.u32 %s2854_s14, 2  ;;  %s1994_s5 = sshll.u32 %s2856_s25, 3  ;;  %v2471_v32 = vmov (!%p1997_p12), 0.0  }
  0x36   : > { %s2634_s30 = scalar_lea.vmem %s2837_s1, %s1992_s26  ;;  %s2639_s8 = scalar_lea.vmem %s2838_s2, %s1994_s5  ;;  %426 = vst [vmem:[#allocation2] sm:$0xff] (!%p1997_p12), %v2471_v32  ;;  %427 = vst [vmem:[#allocation2 + $0x8] sm:$0xff] (!%p1997_p12), %v2471_v32 }
  0x37   : > { %s2644_s10 = scalar_lea.vmem %s2840_s4, %s1994_s5  ;;  %425 = sbr.rel (%p1997_p12) target bundleno = 70 (0x46), region = 78  ;;  %428 = vst [vmem:[#allocation2 + $0x10] sm:$0xff] (!%p1997_p12), %v2471_v32  ;;  %429 = vst [vmem:[#allocation2 + $0x18] sm:$0xff] (!%p1997_p12), %v2471_v32 }
  0x38   : > { %430 = vst [vmem:[#allocation2 + $0x20] sm:$0xff] (!%p1997_p12), %v2471_v32  ;;  %431 = vst [vmem:[#allocation2 + $0x28] sm:$0xff] (!%p1997_p12), %v2471_v32 }
  0x39   : > { %432 = vst [vmem:[#allocation2 + $0x30] sm:$0xff] (!%p1997_p12), %v2471_v32  ;;  %433 = vst [vmem:[#allocation2 + $0x38] sm:$0xff] (!%p1997_p12), %v2471_v32 }
  0x3a   : > { %434 = vst [vmem:[#allocation2 + $0x40] sm:$0xff] (!%p1997_p12), %v2471_v32  ;;  %435 = vst [vmem:[#allocation2 + $0x48] sm:$0xff] (!%p1997_p12), %v2471_v32 }
  0x3b   : > { %436 = vst [vmem:[#allocation2 + $0x50] sm:$0xff] (!%p1997_p12), %v2471_v32  ;;  %437 = vst [vmem:[#allocation2 + $0x58] sm:$0xff] (!%p1997_p12), %v2471_v32 }
  0x3c   : > { %438 = vst [vmem:[#allocation2 + $0x60] sm:$0xff] (!%p1997_p12), %v2471_v32  ;;  %439 = vst [vmem:[#allocation2 + $0x68] sm:$0xff] (!%p1997_p12), %v2471_v32 }
  0x3d   : > { %440 = vst [vmem:[#allocation2 + $0x70] sm:$0xff] (!%p1997_p12), %v2471_v32  ;;  %441 = vst [vmem:[#allocation2 + $0x78] sm:$0xff] (!%p1997_p12), %v2471_v32 }
  0x3e   : > { %442 = vst [vmem:[#allocation2 + $0x80] sm:$0xff] %v2471_v32  ;;  %443 = vst [vmem:[#allocation2 + $0x88] sm:$0xff] %v2471_v32 }
  0x3f   : > { %444 = vst [vmem:[#allocation2 + $0x90] sm:$0xff] %v2471_v32  ;;  %445 = vst [vmem:[#allocation2 + $0x98] sm:$0xff] %v2471_v32 }
  0x40   : > { %446 = vst [vmem:[#allocation2 + $0xa0] sm:$0xff] %v2471_v32  ;;  %447 = vst [vmem:[#allocation2 + $0xa8] sm:$0xff] %v2471_v32 }
  0x41   : > { %448 = vst [vmem:[#allocation2 + $0xb0] sm:$0xff] %v2471_v32  ;;  %449 = vst [vmem:[#allocation2 + $0xb8] sm:$0xff] %v2471_v32 }
  0x42   : > { %450 = vst [vmem:[#allocation2 + $0xc0] sm:$0xff] %v2471_v32  ;;  %451 = vst [vmem:[#allocation2 + $0xc8] sm:$0xff] %v2471_v32 }
  0x43   : > { %452 = vst [vmem:[#allocation2 + $0xd0] sm:$0xff] %v2471_v32  ;;  %453 = vst [vmem:[#allocation2 + $0xd8] sm:$0xff] %v2471_v32 }
  0x44   : > { %454 = vst [vmem:[#allocation2 + $0xe0] sm:$0xff] %v2471_v32  ;;  %455 = vst [vmem:[#allocation2 + $0xe8] sm:$0xff] %v2471_v32 }
  0x45   : > { %456 = vst [vmem:[#allocation2 + $0xf0] sm:$0xff] %v2471_v32  ;;  %457 = vst [vmem:[#allocation2 + $0xf8] sm:$0xff] %v2471_v32 }
  0x46 PF: > { %v2381_v33 = vld [vmem:[%s2634_s30 + $0x40] sm:$0xff]   ;;  %v2385_v37 = vld [vmem:[%s2634_s30 + $0x48] sm:$0xff]   ;;  %v2389_v41 = vld [vmem:[%s2634_s30 + $0x50] sm:$0xff]   ;;  %p2094_p13 = scmp.ne.s32.totalorder %s2453_s17, 1 }
  0x47   : > { %v2382_v34 = vld [vmem:[%s2634_s30 + $0xc0] sm:$0xff]   ;;  %2099 = vmatprep.subr.bf16.mxu0 %v2381_v33  ;;  %v2386_v38 = vld [vmem:[%s2634_s30 + $0xc8] sm:$0xff]   ;;  %v2390_v42 = vld [vmem:[%s2634_s30 + $0xd0] sm:$0xff]  }
  0x48   : > { %v2383_v35 = vld [vmem:[%s2634_s30] sm:$0xff]   ;;  %2211 = vmatprep.subr.bf16.mxu1 %v2382_v34  ;;  %v2387_v39 = vld [vmem:[%s2634_s30 + $0x8] sm:$0xff]   ;;  %v2391_v43 = vld [vmem:[%s2634_s30 + $0x10] sm:$0xff]  }
  0x49   : > { %v2384_v36 = vld [vmem:[%s2634_s30 + $0x80] sm:$0xff]   ;;  %2100 = vmatpush3.bf16.msra.mxu0 %v2383_v35  ;;  %v2388_v40 = vld [vmem:[%s2634_s30 + $0x88] sm:$0xff]   ;;  %v2392_v44 = vld [vmem:[%s2634_s30 + $0x90] sm:$0xff]  }
  0x4a   : > { %2212 = vmatpush3.bf16.msra.mxu1 %v2384_v36  ;;  %2101 = vmatprep.subr.bf16.mxu0 %v2385_v37  ;;  %v2393_v45 = vld [vmem:[%s2634_s30 + $0x58] sm:$0xff]   ;;  %v2397_v49 = vld [vmem:[%s2634_s30 + $0x60] sm:$0xff]   ;;  %v2401_v53 = vld [vmem:[%s2634_s30 + $0x68] sm:$0xff]  }
  0x4b   : > { %2213 = vmatprep.subr.bf16.mxu1 %v2386_v38  ;;  %v2394_v46 = vld [vmem:[%s2634_s30 + $0xd8] sm:$0xff]   ;;  %v2398_v50 = vld [vmem:[%s2634_s30 + $0xe0] sm:$0xff]   ;;  %v2402_v54 = vld [vmem:[%s2634_s30 + $0xe8] sm:$0xff]  }
  0x4c   : > { %v2395_v47 = vld [vmem:[%s2634_s30 + $0x18] sm:$0xff]   ;;  %v2399_v51 = vld [vmem:[%s2634_s30 + $0x20] sm:$0xff]   ;;  %v2403_v55 = vld [vmem:[%s2634_s30 + $0x28] sm:$0xff]  }
  0x4d   : > { %2102 = vmatpush3.bf16.msra.mxu0 %v2387_v39  ;;  %v2396_v48 = vld [vmem:[%s2634_s30 + $0x98] sm:$0xff]   ;;  %v2400_v52 = vld [vmem:[%s2634_s30 + $0xa0] sm:$0xff]   ;;  %v2404_v56 = vld [vmem:[%s2634_s30 + $0xa8] sm:$0xff]  }
  0x4e   : > { %2214 = vmatpush3.bf16.msra.mxu1 %v2388_v40  ;;  %2103 = vmatprep.subr.bf16.mxu0 %v2389_v41  ;;  %v2405_v57 = vld [vmem:[%s2634_s30 + $0x70] sm:$0xff]   ;;  %v2409_v61 = vld [vmem:[%s2634_s30 + $0x78] sm:$0xff]   ;;  %v458_v1 = vld [vmem:[%s2646_s18] sm:$0xff] }
  0x4f   : > { %2215 = vmatprep.subr.bf16.mxu1 %v2390_v42  ;;  %v2406_v58 = vld [vmem:[%s2634_s30 + $0xf0] sm:$0xff]   ;;  %v2410_v62 = vld [vmem:[%s2634_s30 + $0xf8] sm:$0xff]   ;;  %v459_v2 = vld [vmem:[%s2646_s18 + $0x8] sm:$0xff]  ;;  %v490_v4 = vunpack.c.l.s8.bf16 %v458_v1  ;;  %v491_v6 = vunpack.c.h.s8.bf16 %v458_v1 }
  0x50   : > { %v2407_v59 = vld [vmem:[%s2634_s30 + $0x30] sm:$0xff]   ;;  %v2411_v63 = vld [vmem:[%s2634_s30 + $0x38] sm:$0xff]   ;;  %v492_v5 = vunpack.c.l.s8.bf16 %v459_v2  ;;  %v493_v7 = vunpack.c.h.s8.bf16 %v459_v2  ;;  %v462_v19 = vld [vmem:[%s2646_s18 + $0x20] sm:$0xff] }
  0x51   : > { %2104 = vmatpush3.bf16.msra.mxu0 %v2391_v43  ;;  %v2408_v60 = vld [vmem:[%s2634_s30 + $0xb0] sm:$0xff]   ;;  %v2412_v0 = vld [vmem:[%s2634_s30 + $0xb8] sm:$0xff]   ;;  %v463_v20 = vld [vmem:[%s2646_s18 + $0x28] sm:$0xff]  ;;  %v498_v21 = vunpack.c.l.s8.bf16 %v462_v19  ;;  %v499_v23 = vunpack.c.h.s8.bf16 %v462_v19 }
  0x52   : > { %2216 = vmatpush3.bf16.msra.mxu1 %v2392_v44  ;;  %2105 = vmatprep.subr.bf16.mxu0 %v2393_v45  ;;  %v460_v3 = vld [vmem:[%s2646_s18 + $0x10] sm:$0xff]  ;;  %v461_v8 = vld [vmem:[%s2646_s18 + $0x18] sm:$0xff]  ;;  %v1999_v13 = vcombine.high %v490_v4, %v492_v5  ;;  %v2001_v14 = vcombine.high %v491_v6, %v493_v7  ;;  %v1998_v15 = vcombine.low %v490_v4, %v492_v5  ;;  %v500_v22 = vunpack.c.l.s8.bf16 %v463_v20  ;;  %v466_v39 = vld [vmem:[%s2646_s18 + $0x40] sm:$0xff] }
  0x53   : > { %2217 = vmatprep.subr.bf16.mxu1 %v2394_v46  ;;  %v494_v9 = vunpack.c.l.s8.bf16 %v460_v3  ;;  %v496_v10 = vunpack.c.l.s8.bf16 %v461_v8  ;;  %v495_v11 = vunpack.c.h.s8.bf16 %v460_v3  ;;  %v497_v12 = vunpack.c.h.s8.bf16 %v461_v8  ;;  %v464_v29 = vld [vmem:[%s2646_s18 + $0x30] sm:$0xff]  ;;  %v465_v30 = vld [vmem:[%s2646_s18 + $0x38] sm:$0xff]  ;;  %v467_v40 = vld [vmem:[%s2646_s18 + $0x48] sm:$0xff] }
  0x54   : > { %v2000_v16 = vcombine.low %v491_v6, %v493_v7  ;;  %1194 = vmatprep.mubr.bf16.mxu0 %v1999_v13  ;;  %1355 = vmatprep.mubr.bf16.mxu1 %v2001_v14  ;;  %v501_v24 = vunpack.c.h.s8.bf16 %v463_v20  ;;  %v2007_v27 = vcombine.high %v498_v21, %v500_v22  ;;  %v502_v31 = vunpack.c.l.s8.bf16 %v464_v29  ;;  %v472_v5 = vld [vmem:[%s2646_s18 + $0x70] sm:$0xff]  ;;  %v473_v6 = vld [vmem:[%s2646_s18 + $0x78] sm:$0xff] }
  0x55   : > { %2106 = vmatpush3.bf16.msra.mxu0 %v2395_v47  ;;  %v2003_v17 = vcombine.high %v494_v9, %v496_v10  ;;  %v2005_v18 = vcombine.high %v495_v11, %v497_v12  ;;  %v2002_v25 = vcombine.low %v494_v9, %v496_v10  ;;  %v2004_v26 = vcombine.low %v495_v11, %v497_v12 }
  0x56   : > { %2218 = vmatpush3.bf16.msra.mxu1 %v2396_v48  ;;  %2107 = vmatprep.subr.bf16.mxu0 %v2397_v49  ;;  %v2009_v28 = vcombine.high %v499_v23, %v501_v24  ;;  %v504_v32 = vunpack.c.l.s8.bf16 %v465_v30  ;;  %v503_v33 = vunpack.c.h.s8.bf16 %v464_v29  ;;  %v505_v34 = vunpack.c.h.s8.bf16 %v465_v30  ;;  %v468_v49 = vld [vmem:[%s2646_s18 + $0x50] sm:$0xff] }
  0x57   : > { %2219 = vmatprep.subr.bf16.mxu1 %v2398_v50  ;;  %v2006_v35 = vcombine.low %v498_v21, %v500_v22  ;;  %v2008_v36 = vcombine.low %v499_v23, %v501_v24  ;;  %v506_v41 = vunpack.c.l.s8.bf16 %v466_v39  ;;  %v508_v42 = vunpack.c.l.s8.bf16 %v467_v40  ;;  %v469_v50 = vld [vmem:[%s2646_s18 + $0x58] sm:$0xff] }
  0x58   : > { %v2011_v37 = vcombine.high %v502_v31, %v504_v32  ;;  %v2013_v38 = vcombine.high %v503_v33, %v505_v34  ;;  %v507_v43 = vunpack.c.h.s8.bf16 %v466_v39  ;;  %v509_v44 = vunpack.c.h.s8.bf16 %v467_v40 }
  0x59   : > { %2108 = vmatpush3.bf16.msra.mxu0 %v2399_v51  ;;  %v2010_v45 = vcombine.low %v502_v31, %v504_v32  ;;  %v2012_v46 = vcombine.low %v503_v33, %v505_v34  ;;  %v2015_v47 = vcombine.high %v506_v41, %v508_v42  ;;  %v510_v51 = vunpack.c.l.s8.bf16 %v468_v49 }
  0x5a   : > { %2220 = vmatpush3.bf16.msra.mxu1 %v2400_v52  ;;  %2109 = vmatprep.subr.bf16.mxu0 %v2401_v53  ;;  %v2017_v48 = vcombine.high %v507_v43, %v509_v44  ;;  %v512_v52 = vunpack.c.l.s8.bf16 %v469_v50  ;;  %v511_v53 = vunpack.c.h.s8.bf16 %v468_v49  ;;  %v518_v7 = vunpack.c.l.s8.bf16 %v472_v5 }
  0x5b   : > { %2221 = vmatprep.subr.bf16.mxu1 %v2402_v54  ;;  %v513_v54 = vunpack.c.h.s8.bf16 %v469_v50  ;;  %v520_v8 = vunpack.c.l.s8.bf16 %v473_v6  ;;  %v519_v9 = vunpack.c.h.s8.bf16 %v472_v5  ;;  %v521_v10 = vunpack.c.h.s8.bf16 %v473_v6 }
  0x5c   : > { %v2018_v1 = vcombine.low %v510_v51, %v512_v52 }
  0x5d   : > { %2110 = vmatpush3.bf16.msra.mxu0 %v2403_v55  ;;  %v2014_v55 = vcombine.low %v506_v41, %v508_v42  ;;  %v2020_v2 = vcombine.low %v511_v53, %v513_v54  ;;  %v2027_v13 = vcombine.high %v518_v7, %v520_v8  ;;  %v2029_v14 = vcombine.high %v519_v9, %v521_v10 }
  0x5e   : > { %2222 = vmatpush3.bf16.msra.mxu1 %v2404_v56  ;;  %2111 = vmatprep.subr.bf16.mxu0 %v2405_v57  ;;  %v2016_v56 = vcombine.low %v507_v43, %v509_v44  ;;  %v2019_v57 = vcombine.high %v510_v51, %v512_v52  ;;  %v2026_v21 = vcombine.low %v518_v7, %v520_v8 }
  0x5f   : > { %2223 = vmatprep.subr.bf16.mxu1 %v2406_v58  ;;  %v2021_v58 = vcombine.high %v511_v53, %v513_v54  ;;  %v2028_v22 = vcombine.low %v519_v9, %v521_v10 }
  0x61   : > { %2112 = vmatpush3.bf16.msra.mxu0 %v2407_v59  ;;  %v470_v59 = vld [vmem:[%s2646_s18 + $0x60] sm:$0xff] }
  0x62   : > { %2224 = vmatpush3.bf16.msra.mxu1 %v2408_v60  ;;  %2113 = vmatprep.subr.bf16.mxu0 %v2409_v61  ;;  %v471_v60 = vld [vmem:[%s2646_s18 + $0x68] sm:$0xff]  ;;  %v514_v61 = vunpack.c.l.s8.bf16 %v470_v59 }
  0x63   : > { %2225 = vmatprep.subr.bf16.mxu1 %v2410_v62  ;;  %v516_v62 = vunpack.c.l.s8.bf16 %v471_v60 }
  0x65   : > { %2114 = vmatpush3.bf16.msra.mxu0 %v2411_v63  ;;  %v515_v63 = vunpack.c.h.s8.bf16 %v470_v59  ;;  %v2023_v3 = vcombine.high %v514_v61, %v516_v62  ;;  %v2022_v11 = vcombine.low %v514_v61, %v516_v62 }
  0x66   : > { %2226 = vmatpush3.bf16.msra.mxu1 %v2412_v0  ;;  %v517_v0 = vunpack.c.h.s8.bf16 %v471_v60 }
  0x68   : > { %1195 = vmatmul.mubr.bf16.vlgmr.msra.gmra.mrb[0].mxu0 %v1998_v15  ;;  %v2025_v4 = vcombine.high %v515_v63, %v517_v0  ;;  %v2024_v12 = vcombine.low %v515_v63, %v517_v0  ;;  %v474_v15 = vld [vmem:[%s2646_s18 + $0x80] sm:$0xff] }
  0x69   : > { %1356 = vmatmul.mubr.bf16.vlgmr.msra.gmra.mrb[0].mxu1 %v2000_v16  ;;  %1202 = vmatprep.mubr.bf16.mxu0 %v2003_v17  ;;  %v475_v16 = vld [vmem:[%s2646_s18 + $0x88] sm:$0xff]  ;;  %v522_v17 = vunpack.c.l.s8.bf16 %v474_v15  ;;  %v523_v19 = vunpack.c.h.s8.bf16 %v474_v15 }
  0x6a   : > { %1363 = vmatprep.mubr.bf16.mxu1 %v2005_v18  ;;  %v524_v18 = vunpack.c.l.s8.bf16 %v475_v16  ;;  %v525_v20 = vunpack.c.h.s8.bf16 %v475_v16 }
  0x6c   : > { %v2031_v23 = vcombine.high %v522_v17, %v524_v18  ;;  %v2033_v24 = vcombine.high %v523_v19, %v525_v20  ;;  %v2030_v31 = vcombine.low %v522_v17, %v524_v18  ;;  %v2032_v32 = vcombine.low %v523_v19, %v525_v20 }
  0x70   : > { %1203 = vmatmul.mubr.bf16.gmra.mrb[4].mxu0 %v2002_v25  ;;  %v476_v25 = vld [vmem:[%s2646_s18 + $0x90] sm:$0xff] }
  0x71   : > { %1364 = vmatmul.mubr.bf16.gmra.mrb[4].mxu1 %v2004_v26  ;;  %1210 = vmatprep.mubr.bf16.mxu0 %v2007_v27  ;;  %v477_v26 = vld [vmem:[%s2646_s18 + $0x98] sm:$0xff]  ;;  %v526_v27 = vunpack.c.l.s8.bf16 %v476_v25  ;;  %v527_v29 = vunpack.c.h.s8.bf16 %v476_v25 }
  0x72   : > { %1371 = vmatprep.mubr.bf16.mxu1 %v2009_v28  ;;  %v528_v28 = vunpack.c.l.s8.bf16 %v477_v26  ;;  %v529_v30 = vunpack.c.h.s8.bf16 %v477_v26 }
  0x74   : > { %v2035_v33 = vcombine.high %v526_v27, %v528_v28  ;;  %v2037_v34 = vcombine.high %v527_v29, %v529_v30  ;;  %v2034_v41 = vcombine.low %v526_v27, %v528_v28  ;;  %v2036_v42 = vcombine.low %v527_v29, %v529_v30 }
  0x78   : > { %1211 = vmatmul.mubr.bf16.gmra.mrb[8].mxu0 %v2006_v35  ;;  %v478_v35 = vld [vmem:[%s2646_s18 + $0xa0] sm:$0xff] }
  0x79   : > { %1372 = vmatmul.mubr.bf16.gmra.mrb[8].mxu1 %v2008_v36  ;;  %1218 = vmatprep.mubr.bf16.mxu0 %v2011_v37  ;;  %v479_v36 = vld [vmem:[%s2646_s18 + $0xa8] sm:$0xff]  ;;  %v530_v37 = vunpack.c.l.s8.bf16 %v478_v35  ;;  %v531_v39 = vunpack.c.h.s8.bf16 %v478_v35 }
  0x7a   : > { %1379 = vmatprep.mubr.bf16.mxu1 %v2013_v38  ;;  %v532_v38 = vunpack.c.l.s8.bf16 %v479_v36  ;;  %v533_v40 = vunpack.c.h.s8.bf16 %v479_v36 }
  0x7c   : > { %v2039_v43 = vcombine.high %v530_v37, %v532_v38  ;;  %v2041_v44 = vcombine.high %v531_v39, %v533_v40  ;;  %v2038_v51 = vcombine.low %v530_v37, %v532_v38  ;;  %v2040_v52 = vcombine.low %v531_v39, %v533_v40 }
  0x80   : > { %1219 = vmatmul.mubr.bf16.gmra.mrb[12].mxu0 %v2010_v45  ;;  %v480_v45 = vld [vmem:[%s2646_s18 + $0xb0] sm:$0xff] }
  0x81   : > { %1380 = vmatmul.mubr.bf16.gmra.mrb[12].mxu1 %v2012_v46  ;;  %1226 = vmatprep.mubr.bf16.mxu0 %v2015_v47  ;;  %v481_v46 = vld [vmem:[%s2646_s18 + $0xb8] sm:$0xff]  ;;  %v534_v47 = vunpack.c.l.s8.bf16 %v480_v45  ;;  %v535_v49 = vunpack.c.h.s8.bf16 %v480_v45 }
  0x82   : > { %1387 = vmatprep.mubr.bf16.mxu1 %v2017_v48  ;;  %v536_v48 = vunpack.c.l.s8.bf16 %v481_v46  ;;  %v537_v50 = vunpack.c.h.s8.bf16 %v481_v46 }
  0x84   : > { %v2043_v53 = vcombine.high %v534_v47, %v536_v48  ;;  %v2045_v54 = vcombine.high %v535_v49, %v537_v50  ;;  %v2042_v61 = vcombine.low %v534_v47, %v536_v48  ;;  %v2044_v62 = vcombine.low %v535_v49, %v537_v50  ;;  %v555_v47 = vld [vmem:[#allocation2 + $0x8] sm:$0xff] }
  0x88   : > { %1227 = vmatmul.mubr.bf16.gmra.mrb[16].mxu0 %v2014_v55  ;;  %v482_v55 = vld [vmem:[%s2646_s18 + $0xc0] sm:$0xff] }
  0x89   : > { %1388 = vmatmul.mubr.bf16.gmra.mrb[16].mxu1 %v2016_v56  ;;  %1234 = vmatprep.mubr.bf16.mxu0 %v2019_v57  ;;  %v483_v56 = vld [vmem:[%s2646_s18 + $0xc8] sm:$0xff]  ;;  %v538_v57 = vunpack.c.l.s8.bf16 %v482_v55  ;;  %v539_v59 = vunpack.c.h.s8.bf16 %v482_v55 }
  0x8a   : > { %1395 = vmatprep.mubr.bf16.mxu1 %v2021_v58  ;;  %v540_v58 = vunpack.c.l.s8.bf16 %v483_v56  ;;  %v541_v60 = vunpack.c.h.s8.bf16 %v483_v56 }
  0x8c   : > { %v2047_v63 = vcombine.high %v538_v57, %v540_v58  ;;  %v2049_v0 = vcombine.high %v539_v59, %v541_v60  ;;  %v2046_v7 = vcombine.low %v538_v57, %v540_v58  ;;  %v2048_v8 = vcombine.low %v539_v59, %v541_v60  ;;  %v556_v59 = vld [vmem:[#allocation2 + $0x10] sm:$0xff] }
  0x90   : > { %1235 = vmatmul.mubr.bf16.gmra.mrb[20].mxu0 %v2018_v1  ;;  %v484_v1 = vld [vmem:[%s2646_s18 + $0xd0] sm:$0xff] }
  0x91   : > { %1396 = vmatmul.mubr.bf16.gmra.mrb[20].mxu1 %v2020_v2  ;;  %1242 = vmatprep.mubr.bf16.mxu0 %v2023_v3  ;;  %v485_v2 = vld [vmem:[%s2646_s18 + $0xd8] sm:$0xff]  ;;  %v542_v3 = vunpack.c.l.s8.bf16 %v484_v1  ;;  %v543_v5 = vunpack.c.h.s8.bf16 %v484_v1 }
  0x92   : > { %1403 = vmatprep.mubr.bf16.mxu1 %v2025_v4  ;;  %v544_v4 = vunpack.c.l.s8.bf16 %v485_v2  ;;  %v545_v6 = vunpack.c.h.s8.bf16 %v485_v2  ;;  %v557_v1 = vld [vmem:[#allocation2 + $0x18] sm:$0xff] }
  0x94   : > { %v2051_v9 = vcombine.high %v542_v3, %v544_v4  ;;  %v2053_v10 = vcombine.high %v543_v5, %v545_v6  ;;  %v2050_v17 = vcombine.low %v542_v3, %v544_v4  ;;  %v2052_v18 = vcombine.low %v543_v5, %v545_v6 }
  0x98   : > { %1243 = vmatmul.mubr.bf16.gmra.mrb[24].mxu0 %v2022_v11  ;;  %v486_v11 = vld [vmem:[%s2646_s18 + $0xe0] sm:$0xff] }
  0x99   : > { %1404 = vmatmul.mubr.bf16.gmra.mrb[24].mxu1 %v2024_v12  ;;  %1250 = vmatprep.mubr.bf16.mxu0 %v2027_v13  ;;  %v487_v12 = vld [vmem:[%s2646_s18 + $0xe8] sm:$0xff]  ;;  %v546_v13 = vunpack.c.l.s8.bf16 %v486_v11  ;;  %v547_v15 = vunpack.c.h.s8.bf16 %v486_v11 }
  0x9a   : > { %1411 = vmatprep.mubr.bf16.mxu1 %v2029_v14  ;;  %v548_v14 = vunpack.c.l.s8.bf16 %v487_v12  ;;  %v549_v16 = vunpack.c.h.s8.bf16 %v487_v12 }
  0x9c   : > { %v2055_v19 = vcombine.high %v546_v13, %v548_v14  ;;  %v2057_v20 = vcombine.high %v547_v15, %v549_v16  ;;  %v2054_v27 = vcombine.low %v546_v13, %v548_v14  ;;  %v2056_v28 = vcombine.low %v547_v15, %v549_v16  ;;  %v558_v13 = vld [vmem:[#allocation2 + $0x20] sm:$0xff] }
  0xa0   : > { %1251 = vmatmul.mubr.bf16.gmra.mrb[28].mxu0 %v2026_v21  ;;  %v488_v21 = vld [vmem:[%s2646_s18 + $0xf0] sm:$0xff] }
  0xa1   : > { %1412 = vmatmul.mubr.bf16.gmra.mrb[28].mxu1 %v2028_v22  ;;  %1258 = vmatprep.mubr.bf16.mxu0 %v2031_v23  ;;  %v489_v22 = vld [vmem:[%s2646_s18 + $0xf8] sm:$0xff]  ;;  %v550_v23 = vunpack.c.l.s8.bf16 %v488_v21  ;;  %v551_v25 = vunpack.c.h.s8.bf16 %v488_v21 }
  0xa2   : > { %1419 = vmatprep.mubr.bf16.mxu1 %v2033_v24  ;;  %v552_v24 = vunpack.c.l.s8.bf16 %v489_v22  ;;  %v553_v26 = vunpack.c.h.s8.bf16 %v489_v22 }
  0xa4   : > { %v2059_v29 = vcombine.high %v550_v23, %v552_v24  ;;  %v2061_v30 = vcombine.high %v551_v25, %v553_v26 }
  0xa8   : > { %1259 = vmatmul.mubr.bf16.gmra.mrb[32].mxu0 %v2030_v31  ;;  %v2058_v31 = vcombine.low %v550_v23, %v552_v24 }
  0xa9   : > { %1420 = vmatmul.mubr.bf16.gmra.mrb[32].mxu1 %v2032_v32  ;;  %1266 = vmatprep.mubr.bf16.mxu0 %v2035_v33  ;;  %v2060_v32 = vcombine.low %v551_v25, %v553_v26 }
  0xaa   : > { %1427 = vmatprep.mubr.bf16.mxu1 %v2037_v34 }
  0xb0   : > { %1267 = vmatmul.mubr.bf16.gmra.mrb[36].mxu0 %v2034_v41  ;;  %v554_v41 = vld [vmem:[#allocation2] sm:$0xff] }
  0xb1   : > { %1428 = vmatmul.mubr.bf16.gmra.mrb[36].mxu1 %v2036_v42  ;;  %1274 = vmatprep.mubr.bf16.mxu0 %v2039_v43 }
  0xb2   : > { %1435 = vmatprep.mubr.bf16.mxu1 %v2041_v44 }
  0xb8   : > { %1275 = vmatmul.mubr.bf16.gmra.mrb[40].mxu0 %v2038_v51 }
  0xb9   : > { %1436 = vmatmul.mubr.bf16.gmra.mrb[40].mxu1 %v2040_v52  ;;  %1282 = vmatprep.mubr.bf16.mxu0 %v2043_v53 }
  0xba   : > { %1443 = vmatprep.mubr.bf16.mxu1 %v2045_v54 }
  0xc0   : > { %1283 = vmatmul.mubr.bf16.gmra.mrb[44].mxu0 %v2042_v61 }
  0xc1   : > { %1444 = vmatmul.mubr.bf16.gmra.mrb[44].mxu1 %v2044_v62  ;;  %1290 = vmatprep.mubr.bf16.mxu0 %v2047_v63 }
  0xc2   : > { %1451 = vmatprep.mubr.bf16.mxu1 %v2049_v0 }
  0xc8   : > { %1291 = vmatmul.mubr.bf16.gmra.mrb[48].mxu0 %v2046_v7 }
  0xc9   : > { %1452 = vmatmul.mubr.bf16.gmra.mrb[48].mxu1 %v2048_v8  ;;  %1298 = vmatprep.mubr.bf16.mxu0 %v2051_v9 }
  0xca   : > { %1459 = vmatprep.mubr.bf16.mxu1 %v2053_v10 }
  0xd0   : > { %1299 = vmatmul.mubr.bf16.gmra.mrb[52].mxu0 %v2050_v17 }
  0xd1   : > { %1460 = vmatmul.mubr.bf16.gmra.mrb[52].mxu1 %v2052_v18  ;;  %1306 = vmatprep.mubr.bf16.mxu0 %v2055_v19  ;;  %v559_v19 = vld [vmem:[#allocation2 + $0x28] sm:$0xff] }
  0xd2   : > { %1467 = vmatprep.mubr.bf16.mxu1 %v2057_v20 }
  0xd8   : > { %1307 = vmatmul.mubr.bf16.gmra.mrb[56].mxu0 %v2054_v27 }
  0xd9   : > { %1468 = vmatmul.mubr.bf16.gmra.mrb[56].mxu1 %v2056_v28  ;;  %1314 = vmatprep.mubr.bf16.mxu0 %v2059_v29 }
  0xda   : > { %1475 = vmatprep.mubr.bf16.mxu1 %v2061_v30 }
  0xe0   : > { %1315 = vmatmul.mubr.bf16.gmra.mrb[60].mxu0 %v2058_v31  ;;  %v560_v31 = vld [vmem:[#allocation2 + $0x30] sm:$0xff] }
  0xe1   : > { %1476 = vmatmul.mubr.bf16.gmra.mrb[60].mxu1 %v2060_v32 }
 0x13b   : > { %v2115_v33 = vpop.f32.mrb[0].mxu0 }
 0x13c   : > { %v2227_v34 = vpop.f32.mrb[0].mxu1  ;;  %v2116_v35 = vpop.f32.mrb[1].mxu0 }
 0x13d   : > { %v2228_v36 = vpop.f32.mrb[1].mxu1  ;;  %v2117_v37 = vadd.f32 %v2116_v35, %v2115_v33  ;;  %v2118_v39 = vpop.f32.mrb[2].mxu0 }
 0x13e   : > { %v2229_v38 = vadd.f32 %v2228_v36, %v2227_v34  ;;  %v2230_v40 = vpop.f32.mrb[2].mxu1  ;;  %v2119_v42 = vpop.f32.mrb[3].mxu0 }
 0x13f   : > { %v2231_v43 = vpop.f32.mrb[3].mxu1  ;;  %v2120_v45 = vadd.f32 %v2119_v42, %v2118_v39 }
 0x140   : > { %v1358_v44 = vadd.f32 %v2229_v38, %v2117_v37  ;;  %v2232_v46 = vadd.f32 %v2231_v43, %v2230_v40  ;;  %v561_v37 = vld [vmem:[#allocation2 + $0x38] sm:$0xff] }
 0x142   : > { %v1484_v48 = vadd.f32 %v1358_v44, %v554_v41  ;;  %v1361_v49 = vadd.f32 %v2232_v46, %v2120_v45 }
 0x143   : > { %v2121_v51 = vpop.f32.mrb[4].mxu0 }
 0x144   : > { %1516 = vst [vmem:[#allocation2] sm:$0xff] %v1484_v48  ;;  %v1485_v50 = vadd.f32 %v1361_v49, %v555_v47  ;;  %v2233_v52 = vpop.f32.mrb[4].mxu1  ;;  %v2122_v53 = vpop.f32.mrb[5].mxu0  ;;  %v562_v49 = vld [vmem:[#allocation2 + $0x40] sm:$0xff] }
 0x145   : > { %v2234_v54 = vpop.f32.mrb[5].mxu1  ;;  %v2123_v55 = vadd.f32 %v2122_v53, %v2121_v51  ;;  %v2124_v57 = vpop.f32.mrb[6].mxu0 }
 0x146   : > { %1517 = vst [vmem:[#allocation2 + $0x8] sm:$0xff] %v1485_v50  ;;  %v2235_v56 = vadd.f32 %v2234_v54, %v2233_v52  ;;  %v2236_v58 = vpop.f32.mrb[6].mxu1  ;;  %v2125_v60 = vpop.f32.mrb[7].mxu0 }
 0x147   : > { %v2237_v61 = vpop.f32.mrb[7].mxu1  ;;  %v2126_v63 = vadd.f32 %v2125_v60, %v2124_v57 }
 0x148   : > { %v1366_v62 = vadd.f32 %v2235_v56, %v2123_v55  ;;  %v2238_v0 = vadd.f32 %v2237_v61, %v2236_v58  ;;  %v563_v55 = vld [vmem:[#allocation2 + $0x48] sm:$0xff] }
 0x14a   : > { %v1486_v2 = vadd.f32 %v1366_v62, %v556_v59  ;;  %v1369_v3 = vadd.f32 %v2238_v0, %v2126_v63 }
 0x14b   : > { %v2127_v5 = vpop.f32.mrb[8].mxu0 }
 0x14c   : > { %1518 = vst [vmem:[#allocation2 + $0x10] sm:$0xff] %v1486_v2  ;;  %v1487_v4 = vadd.f32 %v1369_v3, %v557_v1  ;;  %v2239_v6 = vpop.f32.mrb[8].mxu1  ;;  %v2128_v7 = vpop.f32.mrb[9].mxu0  ;;  %v564_v3 = vld [vmem:[#allocation2 + $0x50] sm:$0xff] }
 0x14d   : > { %v2240_v8 = vpop.f32.mrb[9].mxu1  ;;  %v2129_v9 = vadd.f32 %v2128_v7, %v2127_v5  ;;  %v2130_v11 = vpop.f32.mrb[10].mxu0 }
 0x14e   : > { %1519 = vst [vmem:[#allocation2 + $0x18] sm:$0xff] %v1487_v4  ;;  %v2241_v10 = vadd.f32 %v2240_v8, %v2239_v6  ;;  %v2242_v12 = vpop.f32.mrb[10].mxu1  ;;  %v2131_v14 = vpop.f32.mrb[11].mxu0 }
 0x14f   : > { %v2243_v15 = vpop.f32.mrb[11].mxu1  ;;  %v2132_v17 = vadd.f32 %v2131_v14, %v2130_v11 }
 0x150   : > { %v1374_v16 = vadd.f32 %v2241_v10, %v2129_v9  ;;  %v2244_v18 = vadd.f32 %v2243_v15, %v2242_v12  ;;  %v565_v9 = vld [vmem:[#allocation2 + $0x58] sm:$0xff] }
 0x152   : > { %v1488_v20 = vadd.f32 %v1374_v16, %v558_v13  ;;  %v1377_v21 = vadd.f32 %v2244_v18, %v2132_v17 }
 0x153   : > { %v2133_v23 = vpop.f32.mrb[12].mxu0 }
 0x154   : > { %1520 = vst [vmem:[#allocation2 + $0x20] sm:$0xff] %v1488_v20  ;;  %v1489_v22 = vadd.f32 %v1377_v21, %v559_v19  ;;  %v2245_v24 = vpop.f32.mrb[12].mxu1  ;;  %v2134_v25 = vpop.f32.mrb[13].mxu0  ;;  %v566_v21 = vld [vmem:[#allocation2 + $0x60] sm:$0xff] }
 0x155   : > { %v2246_v26 = vpop.f32.mrb[13].mxu1  ;;  %v2135_v27 = vadd.f32 %v2134_v25, %v2133_v23  ;;  %v2136_v29 = vpop.f32.mrb[14].mxu0 }
 0x156   : > { %1521 = vst [vmem:[#allocation2 + $0x28] sm:$0xff] %v1489_v22  ;;  %v2247_v28 = vadd.f32 %v2246_v26, %v2245_v24  ;;  %v2248_v30 = vpop.f32.mrb[14].mxu1  ;;  %v2137_v32 = vpop.f32.mrb[15].mxu0 }
 0x157   : > { %v2249_v33 = vpop.f32.mrb[15].mxu1  ;;  %v2138_v35 = vadd.f32 %v2137_v32, %v2136_v29 }
 0x158   : > { %v1382_v34 = vadd.f32 %v2247_v28, %v2135_v27  ;;  %v2250_v36 = vadd.f32 %v2249_v33, %v2248_v30  ;;  %v567_v27 = vld [vmem:[#allocation2 + $0x68] sm:$0xff] }
 0x15a   : > { %v1490_v38 = vadd.f32 %v1382_v34, %v560_v31  ;;  %v1385_v39 = vadd.f32 %v2250_v36, %v2138_v35 }
 0x15b   : > { %v2139_v41 = vpop.f32.mrb[16].mxu0 }
 0x15c   : > { %1522 = vst [vmem:[#allocation2 + $0x30] sm:$0xff] %v1490_v38  ;;  %v1491_v40 = vadd.f32 %v1385_v39, %v561_v37  ;;  %v2251_v42 = vpop.f32.mrb[16].mxu1  ;;  %v2140_v43 = vpop.f32.mrb[17].mxu0  ;;  %v568_v39 = vld [vmem:[#allocation2 + $0x70] sm:$0xff] }
 0x15d   : > { %v2252_v44 = vpop.f32.mrb[17].mxu1  ;;  %v2141_v45 = vadd.f32 %v2140_v43, %v2139_v41  ;;  %v2142_v47 = vpop.f32.mrb[18].mxu0 }
 0x15e   : > { %1523 = vst [vmem:[#allocation2 + $0x38] sm:$0xff] %v1491_v40  ;;  %v2253_v46 = vadd.f32 %v2252_v44, %v2251_v42  ;;  %v2254_v48 = vpop.f32.mrb[18].mxu1  ;;  %v2143_v50 = vpop.f32.mrb[19].mxu0 }
 0x15f   : > { %v2255_v51 = vpop.f32.mrb[19].mxu1  ;;  %v2144_v53 = vadd.f32 %v2143_v50, %v2142_v47 }
 0x160   : > { %v1390_v52 = vadd.f32 %v2253_v46, %v2141_v45  ;;  %v2256_v54 = vadd.f32 %v2255_v51, %v2254_v48  ;;  %v569_v45 = vld [vmem:[#allocation2 + $0x78] sm:$0xff] }
 0x162   : > { %v1492_v56 = vadd.f32 %v1390_v52, %v562_v49  ;;  %v1393_v57 = vadd.f32 %v2256_v54, %v2144_v53 }
 0x163   : > { %v2145_v59 = vpop.f32.mrb[20].mxu0 }
 0x164   : > { %1524 = vst [vmem:[#allocation2 + $0x40] sm:$0xff] %v1492_v56  ;;  %v1493_v58 = vadd.f32 %v1393_v57, %v563_v55  ;;  %v2257_v60 = vpop.f32.mrb[20].mxu1  ;;  %v2146_v61 = vpop.f32.mrb[21].mxu0  ;;  %v570_v57 = vld [vmem:[#allocation2 + $0x80] sm:$0xff] }
 0x165   : > { %v2258_v62 = vpop.f32.mrb[21].mxu1  ;;  %v2147_v63 = vadd.f32 %v2146_v61, %v2145_v59  ;;  %v2148_v1 = vpop.f32.mrb[22].mxu0 }
 0x166   : > { %1525 = vst [vmem:[#allocation2 + $0x48] sm:$0xff] %v1493_v58  ;;  %v2259_v0 = vadd.f32 %v2258_v62, %v2257_v60  ;;  %v2260_v2 = vpop.f32.mrb[22].mxu1  ;;  %v2149_v4 = vpop.f32.mrb[23].mxu0 }
 0x167   : > { %v2261_v5 = vpop.f32.mrb[23].mxu1  ;;  %v2150_v7 = vadd.f32 %v2149_v4, %v2148_v1 }
 0x168   : > { %v1398_v6 = vadd.f32 %v2259_v0, %v2147_v63  ;;  %v2262_v8 = vadd.f32 %v2261_v5, %v2260_v2  ;;  %v571_v63 = vld [vmem:[#allocation2 + $0x88] sm:$0xff] }
 0x16a   : > { %v1494_v10 = vadd.f32 %v1398_v6, %v564_v3  ;;  %v1401_v11 = vadd.f32 %v2262_v8, %v2150_v7 }
 0x16b   : > { %v2151_v13 = vpop.f32.mrb[24].mxu0 }
 0x16c   : > { %1526 = vst [vmem:[#allocation2 + $0x50] sm:$0xff] %v1494_v10  ;;  %v1495_v12 = vadd.f32 %v1401_v11, %v565_v9  ;;  %v2263_v14 = vpop.f32.mrb[24].mxu1  ;;  %v2152_v15 = vpop.f32.mrb[25].mxu0  ;;  %v572_v11 = vld [vmem:[#allocation2 + $0x90] sm:$0xff] }
 0x16d   : > { %v2264_v16 = vpop.f32.mrb[25].mxu1  ;;  %v2153_v17 = vadd.f32 %v2152_v15, %v2151_v13  ;;  %v2154_v19 = vpop.f32.mrb[26].mxu0 }
 0x16e   : > { %1527 = vst [vmem:[#allocation2 + $0x58] sm:$0xff] %v1495_v12  ;;  %v2265_v18 = vadd.f32 %v2264_v16, %v2263_v14  ;;  %v2266_v20 = vpop.f32.mrb[26].mxu1  ;;  %v2155_v22 = vpop.f32.mrb[27].mxu0 }
 0x16f   : > { %v2267_v23 = vpop.f32.mrb[27].mxu1  ;;  %v2156_v25 = vadd.f32 %v2155_v22, %v2154_v19 }
 0x170   : > { %v1406_v24 = vadd.f32 %v2265_v18, %v2153_v17  ;;  %v2268_v26 = vadd.f32 %v2267_v23, %v2266_v20  ;;  %v573_v17 = vld [vmem:[#allocation2 + $0x98] sm:$0xff] }
 0x172   : > { %v1496_v28 = vadd.f32 %v1406_v24, %v566_v21  ;;  %v1409_v29 = vadd.f32 %v2268_v26, %v2156_v25 }
 0x173   : > { %v2157_v31 = vpop.f32.mrb[28].mxu0 }
 0x174   : > { %1528 = vst [vmem:[#allocation2 + $0x60] sm:$0xff] %v1496_v28  ;;  %v1497_v30 = vadd.f32 %v1409_v29, %v567_v27  ;;  %v2269_v32 = vpop.f32.mrb[28].mxu1  ;;  %v2158_v33 = vpop.f32.mrb[29].mxu0  ;;  %v574_v29 = vld [vmem:[#allocation2 + $0xa0] sm:$0xff] }
 0x175   : > { %v2270_v34 = vpop.f32.mrb[29].mxu1  ;;  %v2159_v35 = vadd.f32 %v2158_v33, %v2157_v31  ;;  %v2160_v37 = vpop.f32.mrb[30].mxu0 }
 0x176   : > { %1529 = vst [vmem:[#allocation2 + $0x68] sm:$0xff] %v1497_v30  ;;  %v2271_v36 = vadd.f32 %v2270_v34, %v2269_v32  ;;  %v2272_v38 = vpop.f32.mrb[30].mxu1  ;;  %v2161_v40 = vpop.f32.mrb[31].mxu0 }
 0x177   : > { %v2273_v41 = vpop.f32.mrb[31].mxu1  ;;  %v2162_v43 = vadd.f32 %v2161_v40, %v2160_v37 }
 0x178   : > { %v1414_v42 = vadd.f32 %v2271_v36, %v2159_v35  ;;  %v2274_v44 = vadd.f32 %v2273_v41, %v2272_v38  ;;  %v575_v35 = vld [vmem:[#allocation2 + $0xa8] sm:$0xff] }
 0x17a   : > { %v1498_v46 = vadd.f32 %v1414_v42, %v568_v39  ;;  %v1417_v47 = vadd.f32 %v2274_v44, %v2162_v43 }
 0x17b   : > { %v2163_v49 = vpop.f32.mrb[32].mxu0 }
 0x17c   : > { %1530 = vst [vmem:[#allocation2 + $0x70] sm:$0xff] %v1498_v46  ;;  %v1499_v48 = vadd.f32 %v1417_v47, %v569_v45  ;;  %v2275_v50 = vpop.f32.mrb[32].mxu1  ;;  %v2164_v51 = vpop.f32.mrb[33].mxu0  ;;  %v576_v47 = vld [vmem:[#allocation2 + $0xb0] sm:$0xff] }
 0x17d   : > { %v2276_v52 = vpop.f32.mrb[33].mxu1  ;;  %v2165_v53 = vadd.f32 %v2164_v51, %v2163_v49  ;;  %v2166_v55 = vpop.f32.mrb[34].mxu0 }
 0x17e   : > { %1531 = vst [vmem:[#allocation2 + $0x78] sm:$0xff] %v1499_v48  ;;  %v2277_v54 = vadd.f32 %v2276_v52, %v2275_v50  ;;  %v2278_v56 = vpop.f32.mrb[34].mxu1  ;;  %v2167_v58 = vpop.f32.mrb[35].mxu0 }
 0x17f   : > { %v2279_v59 = vpop.f32.mrb[35].mxu1  ;;  %v2168_v61 = vadd.f32 %v2167_v58, %v2166_v55 }
 0x180   : > { %v1422_v60 = vadd.f32 %v2277_v54, %v2165_v53  ;;  %v2280_v62 = vadd.f32 %v2279_v59, %v2278_v56  ;;  %v577_v53 = vld [vmem:[#allocation2 + $0xb8] sm:$0xff] }
 0x182   : > { %v1500_v0 = vadd.f32 %v1422_v60, %v570_v57  ;;  %v1425_v1 = vadd.f32 %v2280_v62, %v2168_v61 }
 0x183   : > { %v2169_v3 = vpop.f32.mrb[36].mxu0 }
 0x184   : > { %1532 = vst [vmem:[#allocation2 + $0x80] sm:$0xff] %v1500_v0  ;;  %v1501_v2 = vadd.f32 %v1425_v1, %v571_v63  ;;  %v2281_v4 = vpop.f32.mrb[36].mxu1  ;;  %v2170_v5 = vpop.f32.mrb[37].mxu0  ;;  %v578_v1 = vld [vmem:[#allocation2 + $0xc0] sm:$0xff] }
 0x185   : > { %v2282_v6 = vpop.f32.mrb[37].mxu1  ;;  %v2171_v7 = vadd.f32 %v2170_v5, %v2169_v3  ;;  %v2172_v9 = vpop.f32.mrb[38].mxu0 }
 0x186   : > { %1533 = vst [vmem:[#allocation2 + $0x88] sm:$0xff] %v1501_v2  ;;  %v2283_v8 = vadd.f32 %v2282_v6, %v2281_v4  ;;  %v2284_v10 = vpop.f32.mrb[38].mxu1  ;;  %v2173_v12 = vpop.f32.mrb[39].mxu0 }
 0x187   : > { %v2285_v13 = vpop.f32.mrb[39].mxu1  ;;  %v2174_v15 = vadd.f32 %v2173_v12, %v2172_v9 }
 0x188   : > { %v1430_v14 = vadd.f32 %v2283_v8, %v2171_v7  ;;  %v2286_v16 = vadd.f32 %v2285_v13, %v2284_v10  ;;  %v579_v7 = vld [vmem:[#allocation2 + $0xc8] sm:$0xff] }
 0x18a   : > { %v1502_v18 = vadd.f32 %v1430_v14, %v572_v11  ;;  %v1433_v19 = vadd.f32 %v2286_v16, %v2174_v15 }
 0x18b   : > { %v2175_v21 = vpop.f32.mrb[40].mxu0 }
 0x18c   : > { %1534 = vst [vmem:[#allocation2 + $0x90] sm:$0xff] %v1502_v18  ;;  %v1503_v20 = vadd.f32 %v1433_v19, %v573_v17  ;;  %v2287_v22 = vpop.f32.mrb[40].mxu1  ;;  %v2176_v23 = vpop.f32.mrb[41].mxu0  ;;  %v580_v19 = vld [vmem:[#allocation2 + $0xd0] sm:$0xff] }
 0x18d   : > { %v2288_v24 = vpop.f32.mrb[41].mxu1  ;;  %v2177_v25 = vadd.f32 %v2176_v23, %v2175_v21  ;;  %v2178_v27 = vpop.f32.mrb[42].mxu0 }
 0x18e   : > { %1535 = vst [vmem:[#allocation2 + $0x98] sm:$0xff] %v1503_v20  ;;  %v2289_v26 = vadd.f32 %v2288_v24, %v2287_v22  ;;  %v2290_v28 = vpop.f32.mrb[42].mxu1  ;;  %v2179_v30 = vpop.f32.mrb[43].mxu0 }
 0x18f   : > { %v2291_v31 = vpop.f32.mrb[43].mxu1  ;;  %v2180_v33 = vadd.f32 %v2179_v30, %v2178_v27 }
 0x190   : > { %v1438_v32 = vadd.f32 %v2289_v26, %v2177_v25  ;;  %v2292_v34 = vadd.f32 %v2291_v31, %v2290_v28  ;;  %v581_v25 = vld [vmem:[#allocation2 + $0xd8] sm:$0xff] }
 0x192   : > { %v1504_v36 = vadd.f32 %v1438_v32, %v574_v29  ;;  %v1441_v37 = vadd.f32 %v2292_v34, %v2180_v33 }
 0x193   : > { %v2181_v39 = vpop.f32.mrb[44].mxu0 }
 0x194   : > { %1536 = vst [vmem:[#allocation2 + $0xa0] sm:$0xff] %v1504_v36  ;;  %v1505_v38 = vadd.f32 %v1441_v37, %v575_v35  ;;  %v2293_v40 = vpop.f32.mrb[44].mxu1  ;;  %v2182_v41 = vpop.f32.mrb[45].mxu0  ;;  %v582_v37 = vld [vmem:[#allocation2 + $0xe0] sm:$0xff] }
 0x195   : > { %v2294_v42 = vpop.f32.mrb[45].mxu1  ;;  %v2183_v43 = vadd.f32 %v2182_v41, %v2181_v39  ;;  %v2184_v45 = vpop.f32.mrb[46].mxu0 }
 0x196   : > { %1537 = vst [vmem:[#allocation2 + $0xa8] sm:$0xff] %v1505_v38  ;;  %v2295_v44 = vadd.f32 %v2294_v42, %v2293_v40  ;;  %v2296_v46 = vpop.f32.mrb[46].mxu1  ;;  %v2185_v48 = vpop.f32.mrb[47].mxu0 }
 0x197   : > { %v2297_v49 = vpop.f32.mrb[47].mxu1  ;;  %v2186_v51 = vadd.f32 %v2185_v48, %v2184_v45 }
 0x198   : > { %v1446_v50 = vadd.f32 %v2295_v44, %v2183_v43  ;;  %v2298_v52 = vadd.f32 %v2297_v49, %v2296_v46  ;;  %v583_v43 = vld [vmem:[#allocation2 + $0xe8] sm:$0xff] }
 0x19a   : > { %v1506_v54 = vadd.f32 %v1446_v50, %v576_v47  ;;  %v1449_v55 = vadd.f32 %v2298_v52, %v2186_v51 }
 0x19b   : > { %v2187_v57 = vpop.f32.mrb[48].mxu0 }
 0x19c   : > { %1538 = vst [vmem:[#allocation2 + $0xb0] sm:$0xff] %v1506_v54  ;;  %v1507_v56 = vadd.f32 %v1449_v55, %v577_v53  ;;  %v2299_v58 = vpop.f32.mrb[48].mxu1  ;;  %v2188_v59 = vpop.f32.mrb[49].mxu0  ;;  %v584_v55 = vld [vmem:[#allocation2 + $0xf0] sm:$0xff] }
 0x19d   : > { %v2300_v60 = vpop.f32.mrb[49].mxu1  ;;  %v2189_v61 = vadd.f32 %v2188_v59, %v2187_v57  ;;  %v2190_v63 = vpop.f32.mrb[50].mxu0 }
 0x19e   : > { %1539 = vst [vmem:[#allocation2 + $0xb8] sm:$0xff] %v1507_v56  ;;  %v2301_v62 = vadd.f32 %v2300_v60, %v2299_v58  ;;  %v2302_v0 = vpop.f32.mrb[50].mxu1  ;;  %v2191_v2 = vpop.f32.mrb[51].mxu0 }
 0x19f   : > { %v2303_v3 = vpop.f32.mrb[51].mxu1  ;;  %v2192_v5 = vadd.f32 %v2191_v2, %v2190_v63  ;;  %v1552_v2 = vld [vmem:[%s2639_s8] sm:$0xff] (!%p2094_p13) }
 0x1a0   : > { %v1454_v4 = vadd.f32 %v2301_v62, %v2189_v61  ;;  %v2304_v6 = vadd.f32 %v2303_v3, %v2302_v0  ;;  %v585_v61 = vld [vmem:[#allocation2 + $0xf8] sm:$0xff]  ;;  %v2472_v3 = vmov (!%p2094_p13), 0  }
 0x1a1   : > { %2414 = vset.pattern.permute.xlu1 (!%p2094_p13), %v2472_v3  ;;  %2413 = vset.pattern.permute.xlu0 (!%p2094_p13), %v2472_v3 }
 0x1a2   : > { %v1508_v8 = vadd.f32 %v1454_v4, %v578_v1  ;;  %v1457_v9 = vadd.f32 %v2304_v6, %v2192_v5  ;;  %v1554_v1 = vld [vmem:[%s2639_s8 + $0x10] sm:$0xff] (!%p2094_p13)  ;;  %1618 = vperm.xlu0 (!%p2094_p13), %2413, %v1552_v2   ;;  %v1555_v4 = vld [vmem:[%s2639_s8 + $0x18] sm:$0xff] (!%p2094_p13)  ;;  %v1553_v5 = vld [vmem:[%s2639_s8 + $0x8] sm:$0xff] (!%p2094_p13) }
 0x1a3   : > { %v2193_v11 = vpop.f32.mrb[52].mxu0  ;;  %1628 = vperm.xlu1 (!%p2094_p13), %2414, %v1554_v1   ;;  %v1557_v6 = vld [vmem:[%s2639_s8 + $0x28] sm:$0xff] (!%p2094_p13)  ;;  %v1592_v2 = vld [vmem:[#allocation2 + $0x40] sm:$0xff] (!%p2094_p13) }
 0x1a4   : > { %1540 = vst [vmem:[#allocation2 + $0xc0] sm:$0xff] %v1508_v8  ;;  %v1509_v10 = vadd.f32 %v1457_v9, %v579_v7  ;;  %v2305_v12 = vpop.f32.mrb[52].mxu1  ;;  %v2194_v13 = vpop.f32.mrb[53].mxu0  ;;  %v1556_v7 = vld [vmem:[%s2639_s8 + $0x20] sm:$0xff] (!%p2094_p13)  ;;  %v1559_v8 = vld [vmem:[%s2639_s8 + $0x38] sm:$0xff] (!%p2094_p13)  ;;  %v1558_v9 = vld [vmem:[%s2639_s8 + $0x30] sm:$0xff] (!%p2094_p13) }
 0x1a5   : > { %v2306_v14 = vpop.f32.mrb[53].mxu1  ;;  %v2195_v15 = vadd.f32 %v2194_v13, %v2193_v11  ;;  %v2196_v17 = vpop.f32.mrb[54].mxu0  ;;  %v1560_v11 = vld [vmem:[%s2639_s8 + $0x40] sm:$0xff] (!%p2094_p13)  ;;  %v1562_v13 = vld [vmem:[%s2639_s8 + $0x50] sm:$0xff] (!%p2094_p13)  ;;  %v1593_v1 = vld [vmem:[#allocation2 + $0x48] sm:$0xff] (!%p2094_p13) }
 0x1a6   : > { %1541 = vst [vmem:[#allocation2 + $0xc8] sm:$0xff] %v1509_v10  ;;  %v2307_v16 = vadd.f32 %v2306_v14, %v2305_v12  ;;  %v2308_v18 = vpop.f32.mrb[54].mxu1  ;;  %v2197_v20 = vpop.f32.mrb[55].mxu0  ;;  %1623 = vperm.xlu0 (!%p2094_p13), %2413, %v1553_v5   ;;  %v1561_v10 = vld [vmem:[%s2639_s8 + $0x48] sm:$0xff] (!%p2094_p13)  ;;  %v1563_v12 = vld [vmem:[%s2639_s8 + $0x58] sm:$0xff] (!%p2094_p13) }
 0x1a7   : > { %v2309_v21 = vpop.f32.mrb[55].mxu1  ;;  %v2198_v23 = vadd.f32 %v2197_v20, %v2196_v17  ;;  %1633 = vperm.xlu1 (!%p2094_p13), %2414, %v1555_v4   ;;  %v1565_v14 = vld [vmem:[%s2639_s8 + $0x68] sm:$0xff] (!%p2094_p13)  ;;  %v1566_v17 = vld [vmem:[%s2639_s8 + $0x70] sm:$0xff] (!%p2094_p13)  ;;  %v1571_v20 = vld [vmem:[%s2639_s8 + $0x98] sm:$0xff] (!%p2094_p13) }
 0x1a8   : > { %v1462_v22 = vadd.f32 %v2307_v16, %v2195_v15  ;;  %v2310_v24 = vadd.f32 %v2309_v21, %v2308_v18  ;;  %v1564_v15 = vld [vmem:[%s2639_s8 + $0x60] sm:$0xff] (!%p2094_p13)  ;;  %v1567_v16 = vld [vmem:[%s2639_s8 + $0x78] sm:$0xff] (!%p2094_p13)  ;;  %v1569_v18 = vld [vmem:[%s2639_s8 + $0x88] sm:$0xff] (!%p2094_p13) }
 0x1a9   : > { %v1570_v21 = vld [vmem:[%s2639_s8 + $0x90] sm:$0xff] (!%p2094_p13) }
 0x1aa   : > { %v1510_v26 = vadd.f32 %v1462_v22, %v580_v19  ;;  %v1465_v27 = vadd.f32 %v2310_v24, %v2198_v23  ;;  %1638 = vperm.xlu0 (!%p2094_p13), %2413, %v1556_v7   ;;  %v1568_v19 = vld [vmem:[%s2639_s8 + $0x80] sm:$0xff] (!%p2094_p13)  ;;  %v1573_v22 = vld [vmem:[%s2639_s8 + $0xa8] sm:$0xff] (!%p2094_p13)  ;;  %v1575_v24 = vld [vmem:[%s2639_s8 + $0xb8] sm:$0xff] (!%p2094_p13) }
 0x1ab   : > { %v2199_v29 = vpop.f32.mrb[56].mxu0  ;;  %1643 = vperm.xlu1 (!%p2094_p13), %2414, %v1557_v6   ;;  %v1572_v23 = vld [vmem:[%s2639_s8 + $0xa0] sm:$0xff] (!%p2094_p13) }
 0x1ac   : > { %1542 = vst [vmem:[#allocation2 + $0xd0] sm:$0xff] %v1510_v26  ;;  %v1511_v28 = vadd.f32 %v1465_v27, %v581_v25  ;;  %v2311_v30 = vpop.f32.mrb[56].mxu1  ;;  %v2200_v31 = vpop.f32.mrb[57].mxu0  ;;  %v1574_v25 = vld [vmem:[%s2639_s8 + $0xb0] sm:$0xff] (!%p2094_p13)  ;;  %v1577_v26 = vld [vmem:[%s2639_s8 + $0xc8] sm:$0xff] (!%p2094_p13)  ;;  %v1576_v27 = vld [vmem:[%s2639_s8 + $0xc0] sm:$0xff] (!%p2094_p13) }
 0x1ad   : > { %v2312_v32 = vpop.f32.mrb[57].mxu1  ;;  %v2201_v33 = vadd.f32 %v2200_v31, %v2199_v29  ;;  %v2202_v35 = vpop.f32.mrb[58].mxu0  ;;  %v1578_v29 = vld [vmem:[%s2639_s8 + $0xd0] sm:$0xff] (!%p2094_p13)  ;;  %v1580_v31 = vld [vmem:[%s2639_s8 + $0xe0] sm:$0xff] (!%p2094_p13) }
 0x1ae   : > { %1543 = vst [vmem:[#allocation2 + $0xd8] sm:$0xff] %v1511_v28  ;;  %v2313_v34 = vadd.f32 %v2312_v32, %v2311_v30  ;;  %v2314_v36 = vpop.f32.mrb[58].mxu1  ;;  %v2203_v38 = vpop.f32.mrb[59].mxu0  ;;  %1648 = vperm.xlu0 (!%p2094_p13), %2413, %v1558_v9   ;;  %v1579_v28 = vld [vmem:[%s2639_s8 + $0xd8] sm:$0xff] (!%p2094_p13)  ;;  %v1581_v30 = vld [vmem:[%s2639_s8 + $0xe8] sm:$0xff] (!%p2094_p13) }
 0x1af   : > { %v2315_v39 = vpop.f32.mrb[59].mxu1  ;;  %v2204_v41 = vadd.f32 %v2203_v38, %v2202_v35  ;;  %1653 = vperm.xlu1 (!%p2094_p13), %2414, %v1559_v8   ;;  %v1583_v32 = vld [vmem:[%s2639_s8 + $0xf8] sm:$0xff] (!%p2094_p13)  ;;  %v1584_v35 = vld [vmem:[#allocation2] sm:$0xff] (!%p2094_p13) }
 0x1b0   : > { %v1470_v40 = vadd.f32 %v2313_v34, %v2201_v33  ;;  %v2316_v42 = vadd.f32 %v2315_v39, %v2314_v36  ;;  %v1582_v33 = vld [vmem:[%s2639_s8 + $0xf0] sm:$0xff] (!%p2094_p13)  ;;  %v2749_v36 = vld [vmem:[%s2839_s3] ss:$0 sm:$0xff] (!%p2094_p13)  ;;  %v1595_v9 = vld [vmem:[#allocation2 + $0x58] sm:$0xff] (!%p2094_p13) }
 0x1b1   : > { %v1586_v34 = vld [vmem:[#allocation2 + $0x10] sm:$0xff] (!%p2094_p13) }
 0x1b2   : > { %v1512_v44 = vadd.f32 %v1470_v40, %v582_v37  ;;  %v1473_v45 = vadd.f32 %v2316_v42, %v2204_v41  ;;  %1658 = vperm.xlu0 (!%p2094_p13), %2413, %v1560_v11   ;;  %v1587_v41 = vld [vmem:[#allocation2 + $0x18] sm:$0xff] (!%p2094_p13)  ;;  %v1585_v42 = vld [vmem:[#allocation2 + $0x8] sm:$0xff] (!%p2094_p13) }
 0x1b3   : > { %v2205_v47 = vpop.f32.mrb[60].mxu0  ;;  %1663 = vperm.xlu1 (!%p2094_p13), %2414, %v1561_v10   ;;  %v1594_v10 = vld [vmem:[#allocation2 + $0x50] sm:$0xff] (!%p2094_p13) }
 0x1b4   : > { %1544 = vst [vmem:[#allocation2 + $0xe0] sm:$0xff] %v1512_v44  ;;  %v1513_v46 = vadd.f32 %v1473_v45, %v583_v43  ;;  %v2317_v48 = vpop.f32.mrb[60].mxu1  ;;  %v2206_v49 = vpop.f32.mrb[61].mxu0 }
 0x1b5   : > { %v2318_v50 = vpop.f32.mrb[61].mxu1  ;;  %v2207_v51 = vadd.f32 %v2206_v49, %v2205_v47  ;;  %v2208_v53 = vpop.f32.mrb[62].mxu0  ;;  %v1589_v49 = vld [vmem:[#allocation2 + $0x28] sm:$0xff] (!%p2094_p13) }
 0x1b6   : > { %1545 = vst [vmem:[#allocation2 + $0xe8] sm:$0xff] %v1513_v46  ;;  %v2319_v52 = vadd.f32 %v2318_v50, %v2317_v48  ;;  %v2320_v54 = vpop.f32.mrb[62].mxu1  ;;  %v2209_v56 = vpop.f32.mrb[63].mxu0  ;;  %1668 = vperm.xlu0 (!%p2094_p13), %2413, %v1562_v13   ;;  %v1588_v50 = vld [vmem:[#allocation2 + $0x20] sm:$0xff] (!%p2094_p13) }
 0x1b7   : > { %v2321_v57 = vpop.f32.mrb[63].mxu1  ;;  %v2210_v59 = vadd.f32 %v2209_v56, %v2208_v53  ;;  %1673 = vperm.xlu1 (!%p2094_p13), %2414, %v1563_v12  }
 0x1b8   : > { %v1478_v58 = vadd.f32 %v2319_v52, %v2207_v51  ;;  %v2322_v60 = vadd.f32 %v2321_v57, %v2320_v54  ;;  %1551 = sbr.rel (%p2094_p13) target bundleno = 612 (0x264), region = 82  ;;  %v1591_v57 = vld [vmem:[#allocation2 + $0x38] sm:$0xff] (!%p2094_p13) }
 0x1ba   : > { %v1514_v62 = vadd.f32 %v1478_v58, %v584_v55  ;;  %v1481_v63 = vadd.f32 %v2322_v60, %v2210_v59  ;;  %1678 = vperm.xlu0 (!%p2094_p13), %2413, %v1564_v15   ;;  %v1590_v58 = vld [vmem:[#allocation2 + $0x30] sm:$0xff] (!%p2094_p13) }
 0x1bb   : > { %1683 = vperm.xlu1 (!%p2094_p13), %2414, %v1565_v14  }
 0x1bc   : > { %1546 = vst [vmem:[#allocation2 + $0xf0] sm:$0xff] %v1514_v62  ;;  %v1515_v0 = vadd.f32 %v1481_v63, %v585_v61 }
 0x1be   : > { %1547 = vst [vmem:[#allocation2 + $0xf8] sm:$0xff] %v1515_v0  ;;  %1688 = vperm.xlu0 (!%p2094_p13), %2413, %v1566_v17   ;;  %v1597_v17 = vld [vmem:[#allocation2 + $0x68] sm:$0xff] (!%p2094_p13) }
 0x1bf   : > { %1693 = vperm.xlu1 %2414, %v1567_v16  }
 0x1c2   : > { %1698 = vperm.xlu0 %2413, %v1568_v19  }
 0x1c3   : > { %1703 = vperm.xlu1 %2414, %v1569_v18   ;;  %v1596_v18 = vld [vmem:[#allocation2 + $0x60] sm:$0xff] }
 0x1c6   : > { %1708 = vperm.xlu0 %2413, %v1570_v21  }
 0x1c7   : > { %1713 = vperm.xlu1 %2414, %v1571_v20  }
 0x1ca   : > { %1718 = vperm.xlu0 %2413, %v1572_v23  }
 0x1cb   : > { %1723 = vperm.xlu1 %2414, %v1573_v22  }
 0x1ce   : > { %1728 = vperm.xlu0 %2413, %v1574_v25   ;;  %v1599_v25 = vld [vmem:[#allocation2 + $0x78] sm:$0xff] }
 0x1cf   : > { %1733 = vperm.xlu1 %2414, %v1575_v24  }
 0x1d2   : > { %1738 = vperm.xlu0 %2413, %v1576_v27  }
 0x1d3   : > { %1743 = vperm.xlu1 %2414, %v1577_v26   ;;  %v1598_v26 = vld [vmem:[#allocation2 + $0x70] sm:$0xff] }
 0x1d6   : > { %1748 = vperm.xlu0 %2413, %v1578_v29  }
 0x1d7   : > { %1753 = vperm.xlu1 %2414, %v1579_v28  }
 0x1da   : > { %1758 = vperm.xlu0 %2413, %v1580_v31  }
 0x1db   : > { %1763 = vperm.xlu1 %2414, %v1581_v30  }
 0x1de   : > { %1768 = vperm.xlu0 %2413, %v1582_v33   ;;  %v1601_v33 = vld [vmem:[#allocation2 + $0x88] sm:$0xff] }
 0x1df   : > { %1773 = vperm.xlu1 %2414, %v1583_v32  }
 0x221   : > { %v1619_v38 = vpop.permute.xlu0 %1618 }
 0x222   : > { %v1629_v37 = vpop.permute.xlu1 %1628  ;;  %v1776_v40 = vmul.f32 %v1619_v38, %v1584_v35 }
 0x223   : > { %v1778_v39 = vmul.f32 %v1629_v37, %v1586_v34  ;;  %v1600_v34 = vld [vmem:[#allocation2 + $0x80] sm:$0xff] }
 0x224   : > { %v1815_v44 = vadd.f32 %v2749_v36, %v1776_v40 }
 0x225   : > { %v1817_v43 = vadd.f32 %v2749_v36, %v1778_v39  ;;  %v1624_v46 = vpop.permute.xlu0 %1623 }
 0x226   : > { %v1634_v45 = vpop.permute.xlu1 %1633  ;;  %1847 = vst [vmem:[%s2644_s10] sm:$0xff] %v1815_v44  ;;  %v1777_v48 = vmul.f32 %v1624_v46, %v1585_v42  ;;  %v1603_v42 = vld [vmem:[#allocation2 + $0x98] sm:$0xff] }
 0x227   : > { %1849 = vst [vmem:[%s2644_s10 + $0x10] sm:$0xff] %v1817_v43  ;;  %v1779_v47 = vmul.f32 %v1634_v45, %v1587_v41  ;;  %v1602_v43 = vld [vmem:[#allocation2 + $0x90] sm:$0xff] }
 0x228   : > { %v1816_v52 = vadd.f32 %v2749_v36, %v1777_v48 }
 0x229   : > { %v1818_v51 = vadd.f32 %v2749_v36, %v1779_v47  ;;  %v1639_v54 = vpop.permute.xlu0 %1638 }
 0x22a   : > { %v1644_v53 = vpop.permute.xlu1 %1643  ;;  %1848 = vst [vmem:[%s2644_s10 + $0x8] sm:$0xff] %v1816_v52  ;;  %v1780_v56 = vmul.f32 %v1639_v54, %v1588_v50  ;;  %v1605_v50 = vld [vmem:[#allocation2 + $0xa8] sm:$0xff] }
 0x22b   : > { %1850 = vst [vmem:[%s2644_s10 + $0x18] sm:$0xff] %v1818_v51  ;;  %v1781_v55 = vmul.f32 %v1644_v53, %v1589_v49  ;;  %v1604_v51 = vld [vmem:[#allocation2 + $0xa0] sm:$0xff] }
 0x22c   : > { %v1819_v60 = vadd.f32 %v2749_v36, %v1780_v56 }
 0x22d   : > { %v1820_v59 = vadd.f32 %v2749_v36, %v1781_v55  ;;  %v1649_v62 = vpop.permute.xlu0 %1648 }
 0x22e   : > { %v1654_v61 = vpop.permute.xlu1 %1653  ;;  %1851 = vst [vmem:[%s2644_s10 + $0x20] sm:$0xff] %v1819_v60  ;;  %v1782_v0 = vmul.f32 %v1649_v62, %v1590_v58  ;;  %v1607_v58 = vld [vmem:[#allocation2 + $0xb8] sm:$0xff] }
 0x22f   : > { %1852 = vst [vmem:[%s2644_s10 + $0x28] sm:$0xff] %v1820_v59  ;;  %v1783_v63 = vmul.f32 %v1654_v61, %v1591_v57  ;;  %v1606_v59 = vld [vmem:[#allocation2 + $0xb0] sm:$0xff] }
 0x230   : > { %v1821_v4 = vadd.f32 %v2749_v36, %v1782_v0 }
 0x231   : > { %v1822_v3 = vadd.f32 %v2749_v36, %v1783_v63  ;;  %v1659_v6 = vpop.permute.xlu0 %1658 }
 0x232   : > { %v1664_v5 = vpop.permute.xlu1 %1663  ;;  %1853 = vst [vmem:[%s2644_s10 + $0x30] sm:$0xff] %v1821_v4  ;;  %v1784_v8 = vmul.f32 %v1659_v6, %v1592_v2  ;;  %v1609_v2 = vld [vmem:[#allocation2 + $0xc8] sm:$0xff] }
 0x233   : > { %1854 = vst [vmem:[%s2644_s10 + $0x38] sm:$0xff] %v1822_v3  ;;  %v1785_v7 = vmul.f32 %v1664_v5, %v1593_v1  ;;  %v1608_v3 = vld [vmem:[#allocation2 + $0xc0] sm:$0xff] }
 0x234   : > { %v1823_v12 = vadd.f32 %v2749_v36, %v1784_v8 }
 0x235   : > { %v1824_v11 = vadd.f32 %v2749_v36, %v1785_v7  ;;  %v1669_v14 = vpop.permute.xlu0 %1668 }
 0x236   : > { %v1674_v13 = vpop.permute.xlu1 %1673  ;;  %1855 = vst [vmem:[%s2644_s10 + $0x40] sm:$0xff] %v1823_v12  ;;  %v1786_v16 = vmul.f32 %v1669_v14, %v1594_v10  ;;  %v1611_v10 = vld [vmem:[#allocation2 + $0xd8] sm:$0xff] }
 0x237   : > { %1856 = vst [vmem:[%s2644_s10 + $0x48] sm:$0xff] %v1824_v11  ;;  %v1787_v15 = vmul.f32 %v1674_v13, %v1595_v9  ;;  %v1610_v11 = vld [vmem:[#allocation2 + $0xd0] sm:$0xff] }
 0x238   : > { %v1825_v20 = vadd.f32 %v2749_v36, %v1786_v16 }
 0x239   : > { %v1826_v19 = vadd.f32 %v2749_v36, %v1787_v15  ;;  %v1679_v22 = vpop.permute.xlu0 %1678 }
 0x23a   : > { %v1684_v21 = vpop.permute.xlu1 %1683  ;;  %1857 = vst [vmem:[%s2644_s10 + $0x50] sm:$0xff] %v1825_v20  ;;  %v1788_v24 = vmul.f32 %v1679_v22, %v1596_v18  ;;  %v1613_v18 = vld [vmem:[#allocation2 + $0xe8] sm:$0xff] }
 0x23b   : > { %1858 = vst [vmem:[%s2644_s10 + $0x58] sm:$0xff] %v1826_v19  ;;  %v1789_v23 = vmul.f32 %v1684_v21, %v1597_v17  ;;  %v1612_v19 = vld [vmem:[#allocation2 + $0xe0] sm:$0xff] }
 0x23c   : > { %v1827_v28 = vadd.f32 %v2749_v36, %v1788_v24 }
 0x23d   : > { %v1828_v27 = vadd.f32 %v2749_v36, %v1789_v23  ;;  %v1689_v30 = vpop.permute.xlu0 %1688 }
 0x23e   : > { %v1694_v29 = vpop.permute.xlu1 %1693  ;;  %1859 = vst [vmem:[%s2644_s10 + $0x60] sm:$0xff] %v1827_v28  ;;  %v1790_v32 = vmul.f32 %v1689_v30, %v1598_v26  ;;  %v1615_v26 = vld [vmem:[#allocation2 + $0xf8] sm:$0xff] }
 0x23f   : > { %1860 = vst [vmem:[%s2644_s10 + $0x68] sm:$0xff] %v1828_v27  ;;  %v1791_v31 = vmul.f32 %v1694_v29, %v1599_v25  ;;  %v1614_v27 = vld [vmem:[#allocation2 + $0xf0] sm:$0xff] }
 0x240   : > { %v1829_v37 = vadd.f32 %v2749_v36, %v1790_v32 }
 0x241   : > { %v1830_v35 = vadd.f32 %v2749_v36, %v1791_v31  ;;  %v1699_v39 = vpop.permute.xlu0 %1698 }
 0x242   : > { %v1704_v38 = vpop.permute.xlu1 %1703  ;;  %1861 = vst [vmem:[%s2644_s10 + $0x70] sm:$0xff] %v1829_v37  ;;  %v1792_v41 = vmul.f32 %v1699_v39, %v1600_v34 }
 0x243   : > { %1862 = vst [vmem:[%s2644_s10 + $0x78] sm:$0xff] %v1830_v35  ;;  %v1793_v40 = vmul.f32 %v1704_v38, %v1601_v33 }
 0x244   : > { %v1831_v45 = vadd.f32 %v2749_v36, %v1792_v41 }
 0x245   : > { %v1832_v44 = vadd.f32 %v2749_v36, %v1793_v40  ;;  %v1709_v47 = vpop.permute.xlu0 %1708 }
 0x246   : > { %v1714_v46 = vpop.permute.xlu1 %1713  ;;  %1863 = vst [vmem:[%s2644_s10 + $0x80] sm:$0xff] %v1831_v45  ;;  %v1794_v49 = vmul.f32 %v1709_v47, %v1602_v43 }
 0x247   : > { %1864 = vst [vmem:[%s2644_s10 + $0x88] sm:$0xff] %v1832_v44  ;;  %v1795_v48 = vmul.f32 %v1714_v46, %v1603_v42 }
 0x248   : > { %v1833_v53 = vadd.f32 %v2749_v36, %v1794_v49 }
 0x249   : > { %v1834_v52 = vadd.f32 %v2749_v36, %v1795_v48  ;;  %v1719_v55 = vpop.permute.xlu0 %1718 }
 0x24a   : > { %v1724_v54 = vpop.permute.xlu1 %1723  ;;  %1865 = vst [vmem:[%s2644_s10 + $0x90] sm:$0xff] %v1833_v53  ;;  %v1796_v57 = vmul.f32 %v1719_v55, %v1604_v51 }
 0x24b   : > { %1866 = vst [vmem:[%s2644_s10 + $0x98] sm:$0xff] %v1834_v52  ;;  %v1797_v56 = vmul.f32 %v1724_v54, %v1605_v50 }
 0x24c   : > { %v1835_v61 = vadd.f32 %v2749_v36, %v1796_v57 }
 0x24d   : > { %v1836_v60 = vadd.f32 %v2749_v36, %v1797_v56  ;;  %v1729_v63 = vpop.permute.xlu0 %1728 }
 0x24e   : > { %v1734_v62 = vpop.permute.xlu1 %1733  ;;  %1867 = vst [vmem:[%s2644_s10 + $0xa0] sm:$0xff] %v1835_v61  ;;  %v1798_v1 = vmul.f32 %v1729_v63, %v1606_v59 }
 0x24f   : > { %1868 = vst [vmem:[%s2644_s10 + $0xa8] sm:$0xff] %v1836_v60  ;;  %v1799_v0 = vmul.f32 %v1734_v62, %v1607_v58 }
 0x250   : > { %v1837_v5 = vadd.f32 %v2749_v36, %v1798_v1 }
 0x251   : > { %v1838_v4 = vadd.f32 %v2749_v36, %v1799_v0  ;;  %v1739_v7 = vpop.permute.xlu0 %1738 }
 0x252   : > { %v1744_v6 = vpop.permute.xlu1 %1743  ;;  %1869 = vst [vmem:[%s2644_s10 + $0xb0] sm:$0xff] %v1837_v5  ;;  %v1800_v9 = vmul.f32 %v1739_v7, %v1608_v3 }
 0x253   : > { %1870 = vst [vmem:[%s2644_s10 + $0xb8] sm:$0xff] %v1838_v4  ;;  %v1801_v8 = vmul.f32 %v1744_v6, %v1609_v2 }
 0x254   : > { %v1839_v13 = vadd.f32 %v2749_v36, %v1800_v9 }
 0x255   : > { %v1840_v12 = vadd.f32 %v2749_v36, %v1801_v8  ;;  %v1749_v15 = vpop.permute.xlu0 %1748 }
 0x256   : > { %v1754_v14 = vpop.permute.xlu1 %1753  ;;  %1871 = vst [vmem:[%s2644_s10 + $0xc0] sm:$0xff] %v1839_v13  ;;  %v1802_v17 = vmul.f32 %v1749_v15, %v1610_v11 }
 0x257   : > { %1872 = vst [vmem:[%s2644_s10 + $0xc8] sm:$0xff] %v1840_v12  ;;  %v1803_v16 = vmul.f32 %v1754_v14, %v1611_v10 }
 0x258   : > { %v1841_v21 = vadd.f32 %v2749_v36, %v1802_v17 }
 0x259   : > { %v1842_v20 = vadd.f32 %v2749_v36, %v1803_v16  ;;  %v1759_v23 = vpop.permute.xlu0 %1758 }
 0x25a   : > { %v1764_v22 = vpop.permute.xlu1 %1763  ;;  %1873 = vst [vmem:[%s2644_s10 + $0xd0] sm:$0xff] %v1841_v21  ;;  %v1804_v25 = vmul.f32 %v1759_v23, %v1612_v19 }
 0x25b   : > { %1874 = vst [vmem:[%s2644_s10 + $0xd8] sm:$0xff] %v1842_v20  ;;  %v1805_v24 = vmul.f32 %v1764_v22, %v1613_v18 }
 0x25c   : > { %v1843_v29 = vadd.f32 %v2749_v36, %v1804_v25 }
 0x25d   : > { %v1844_v28 = vadd.f32 %v2749_v36, %v1805_v24  ;;  %v1769_v31 = vpop.permute.xlu0 %1768 }
 0x25e   : > { %v1774_v30 = vpop.permute.xlu1 %1773  ;;  %1875 = vst [vmem:[%s2644_s10 + $0xe0] sm:$0xff] %v1843_v29  ;;  %v1806_v33 = vmul.f32 %v1769_v31, %v1614_v27 }
 0x25f   : > { %1876 = vst [vmem:[%s2644_s10 + $0xe8] sm:$0xff] %v1844_v28  ;;  %v1807_v32 = vmul.f32 %v1774_v30, %v1615_v26 }
 0x260   : > { %v1845_v35 = vadd.f32 %v2749_v36, %v1806_v33 }
 0x261   : > { %v1846_v34 = vadd.f32 %v2749_v36, %v1807_v32 }
 0x262   : > { %1877 = vst [vmem:[%s2644_s10 + $0xf0] sm:$0xff] %v1845_v35 }
 0x263   : > { %1878 = vst [vmem:[%s2644_s10 + $0xf8] sm:$0xff] %v1846_v34 }
 0x264 PF: > { %s14_s21 = sadd.s32 1, %s2469_s21   ;;  %s2841_s15 = smov %s2449_s16 }
 0x265   : > { %p11_p0 = scmp.ge.s32.totalorder %s14_s21, 10   ;;  %s2842_s16 = smov %s2549_s28 }
 0x266   : > { %s2843_s17 = smov %s2461_s19  ;;  %s2844_s18 = smov %s2465_s20 }
 0x267   : > { %s2845_s19 = smov %s2848_s22  ;;  %s2846_s20 = smov %s2852_s23 }
 0x268   :  { %13 = sbr.rel (!%p11_p0) target bundleno = 4 (0x4), region = 123 }

</bundles_post_ra>
